<compile_context>
chip_gen: v7x
topology: tpu7x:2x2x1
jax: 0.10.0
libtpu: 0.0.40
codegen_flags: <defaults>
</compile_context>

<pallas_src>
import functools

import jax
import jax.numpy as jnp
from jax.experimental import pallas as pl
from jax.experimental.pallas import tpu as pltpu

IMG_SHAPE = (1, 32, 32)
IN_DIM = 1 * 32 * 32            # 1024
OUT_DIM = 64                    # true output width
OUT_PAD = 128                   # lane-dense padded output width (sliced back to 64)
NEG_SLOPE = 0.2

# (in_features, out_features) per layer, matching the nn.Sequential
LAYER_DIMS = [
    (IN_DIM, IN_DIM),   # Linear(1024, 1024) + LeakyReLU(0.2)
    (IN_DIM, 512),      # Linear(1024, 512)  + LeakyReLU(0.2)
    (512, 256),         # Linear(512, 256)   + LeakyReLU(0.2)
    (256, 128),         # Linear(256, 128)   + LeakyReLU(0.2)
    (128, 64),          # Linear(128, 64)    + LeakyReLU(0.2)
    (64, OUT_DIM),      # Linear(64, 64)     (no activation)
]
# Zero-padded shapes actually fed to the kernel (tail widened to 128 lanes).
PADDED_DIMS = [
    (1024, 1024),
    (1024, 512),
    (512, 256),
    (256, 128),
    (128, 128),
    (128, 128),
]
NUM_LAYERS = len(LAYER_DIMS)


def _round_up(x, m):
    return ((x + m - 1) // m) * m


@functools.lru_cache(maxsize=1)
def _tpu_tuning():
    """Generation-aware tiling knobs.

    v5e / v6e: 128 MiB VMEM, 1 TensorCore -> big batch tiles, generous VMEM cap.
    v7x (and anything unrecognized): 64 MiB VMEM, 2 TensorCores -> conservative
    VMEM cap, and force >= 2 grid steps so the "parallel" batch axis shards
    across both cores.
    """
    try:
        kind = jax.devices()[0].device_kind.lower()
    except Exception:  # pragma: no cover - be robust to odd runtimes
        kind = ""
    if ("v5 lite" in kind) or ("v5e" in kind) or ("v5lite" in kind) or ("v6" in kind):
        return {"default_tile": 1024, "max_tile": 2048, "min_tiles": 1,
                "vmem_cap": 100 << 20}
    return {"default_tile": 512, "max_tile": 1024, "min_tiles": 2,
            "vmem_cap": 48 << 20}


def _mlp_kernel(x_ref, *refs):
    """Whole 6-layer MLP on one (TB, 1024) batch tile.

    refs = (w1, b1, ..., w6, b6, out_ref).  Weights are bf16 (or f32), biases f32.
    Matmuls accumulate in f32 on the MXU; bias add + LeakyReLU in f32 on the VPU.
    """
    out_ref = refs[-1]
    wb = refs[:-1]

    h = x_ref[...].astype(jnp.float32)
    for i in range(NUM_LAYERS):
        w = wb[2 * i][...]
        b = wb[2 * i + 1][...].astype(jnp.float32)
        h = jnp.dot(h.astype(w.dtype), w, preferred_element_type=jnp.float32) + b
        if i < NUM_LAYERS - 1:
            h = jnp.where(h > 0, h, NEG_SLOPE * h)   # LeakyReLU(0.2)
    out_ref[...] = h.astype(out_ref.dtype)


def init_params(key, dtype=jnp.float32):
    """PyTorch-style Linear init: U(-1/sqrt(fan_in), 1/sqrt(fan_in)).

    Weights are returned already transposed to (in, out); biases are (1, out)."""
    params = []
    for (fan_in, fan_out) in LAYER_DIMS:
        key, kw, kb = jax.random.split(key, 3)
        bound = 1.0 / jnp.sqrt(float(fan_in))
        w = jax.random.uniform(kw, (fan_in, fan_out), dtype, -bound, bound)
        b = jax.random.uniform(kb, (1, fan_out), dtype, -bound, bound)
        params.append((w, b))
    return params


def prepare_params(params, weight_dtype=jnp.bfloat16):
    """Zero-pad the tail layers to 128 lanes and cast weights to `weight_dtype`.

    Padding with zeros is exact: padded activation columns are 0 and padded weight
    rows/cols are 0, so output columns [:64] are unchanged and [64:128] are 0."""
    prepared = []
    for i, (w, b) in enumerate(params):
        pin, pout = PADDED_DIMS[i]
        fin, fout = w.shape
        w = jnp.pad(w, ((0, pin - fin), (0, pout - fout)))
        b = jnp.pad(b, ((0, 0), (0, pout - fout)))
        prepared.append((w.astype(weight_dtype), b.astype(jnp.float32)))
    return prepared


def _vmem_limit_bytes(flat_params, tb, cap):
    """Scoped-VMEM budget from the actual buffer sizes (+ generous margin)."""
    # Resident weights/biases (assume pipeline keeps 2 buffers each).
    weight_bytes = sum(2 * int(t.size) * t.dtype.itemsize for t in flat_params)
    # Double-buffered input / output tiles.
    io_bytes = 2 * tb * IN_DIM * 4 + 2 * tb * OUT_PAD * 4
    # Generous allowance for in-kernel activation temporaries (h, casts, dot outputs).
    act_bytes = 6 * tb * IN_DIM * 4
    margin = 8 << 20
    need = weight_bytes + io_bytes + act_bytes + margin
    return int(min(cap, max(need, 24 << 20)))


@functools.partial(jax.jit, static_argnames=("block_batch",))
def discriminator_forward(img, prepared_params, *, block_batch=None):
    """img: (B, 1, 32, 32) float32 -> (B, 64) float32.

    `prepared_params` must come from prepare_params().  `block_batch` overrides the
    generation-aware default batch-tile size."""
    B = img.shape[0]
    x = img.reshape(B, -1).astype(jnp.float32)      # == img.view(B, -1)

    tune = _tpu_tuning()
    bb = tune["default_tile"] if block_batch is None else block_batch
    bb = max(8, min(int(bb), tune["max_tile"]))

    # --- batch- and generation-aware tile selection ---
    min_tiles = tune["min_tiles"] if B > 8 else 1
    num_tiles = max(pl.cdiv(B, bb), min_tiles)
    if min_tiles > 1 and num_tiles > 1:
        # Even tile count -> balanced split across the 2 TensorCores.
        num_tiles = _round_up(num_tiles, 2)
    TB = min(_round_up(pl.cdiv(B, num_tiles), 8), tune["max_tile"])
    B_pad = _round_up(B, TB)
    num_tiles = B_pad // TB

    if B_pad != B:
        x = jnp.pad(x, ((0, B_pad - B), (0, 0)))

    flat_params = [t for wb in prepared_params for t in wb]

    # Weights/biases: full-array blocks with a constant index_map -> DMA'd once,
    # kept resident in VMEM across the whole batch grid.
    weight_specs = []
    for (w, b) in prepared_params:
        weight_specs.append(pl.BlockSpec(w.shape, lambda i: (0, 0)))
        weight_specs.append(pl.BlockSpec(b.shape, lambda i: (0, 0)))

    in_specs = [pl.BlockSpec((TB, IN_DIM), lambda i: (i, 0))] + weight_specs
    out_specs = pl.BlockSpec((TB, OUT_PAD), lambda i: (i, 0))

    flops = 2 * B_pad * sum(m * n for (m, n) in PADDED_DIMS)
    bytes_accessed = (
        B_pad * IN_DIM * 4
        + sum(int(t.size) * t.dtype.itemsize for t in flat_params)
        + B_pad * OUT_PAD * 4
    )

    out = pl.pallas_call(
        _mlp_kernel,
        out_shape=jax.ShapeDtypeStruct((B_pad, OUT_PAD), jnp.float32),
        grid=(num_tiles,),
        in_specs=in_specs,
        out_specs=out_specs,
        compiler_params=pltpu.CompilerParams(
            dimension_semantics=("parallel",),      # megacore sharding on 2-TC chips
            vmem_limit_bytes=_vmem_limit_bytes(flat_params, TB, tune["vmem_cap"]),
        ),
        cost_estimate=pl.CostEstimate(
            flops=flops, transcendentals=0, bytes_accessed=bytes_accessed),
    )(x, *flat_params)

    return out[:B, :OUT_DIM]


def _reference_forward(img, params, weight_dtype=jnp.bfloat16):
    """Plain-JAX reference.

    weight_dtype=bf16 replicates the kernel numerics (bf16 operands, f32 accumulation).
    weight_dtype=f32 is the "true" f32 Discriminator (HIGHEST matmul precision)."""
    precision = (jax.lax.Precision.HIGHEST if weight_dtype == jnp.float32 else None)
    h = img.reshape(img.shape[0], -1).astype(jnp.float32)
    for i, (w, b) in enumerate(params):
        h = jnp.dot(h.astype(weight_dtype), w.astype(weight_dtype),
                    preferred_element_type=jnp.float32,
                    precision=precision) + b.astype(jnp.float32)
        if i < len(params) - 1:
            h = jnp.where(h > 0, h, NEG_SLOPE * h)
    return h


if __name__ == "__main__":
    key = jax.random.PRNGKey(0)
    k_img, k_img2, k_params = jax.random.split(key, 3)

    params = init_params(k_params)
    prepared_bf16 = prepare_params(params, weight_dtype=jnp.bfloat16)
    prepared_f32 = prepare_params(params, weight_dtype=jnp.float32)

    # --- Small batch: single/few grid steps ---
    batch = 2
    img = jax.random.normal(k_img, (batch,) + IMG_SHAPE, dtype=jnp.float32)
    out = jax.block_until_ready(discriminator_forward(img, prepared_bf16))
    assert out.shape == (batch, OUT_DIM), out.shape

    ref_bf16 = _reference_forward(img, params, weight_dtype=jnp.bfloat16)
    ref_f32 = _reference_forward(img, params, weight_dtype=jnp.float32)

    # Exact-numerics check (kernel vs bf16-matched reference).
    assert jnp.allclose(out, ref_bf16, atol=1e-3, rtol=1e-3), \
        float(jnp.max(jnp.abs(out - ref_bf16)))
    # Parity vs the true f32 model: documents the expected bf16-weight deviation.
    assert jnp.allclose(out, ref_f32, atol=2e-2, rtol=2e-2), \
        float(jnp.max(jnp.abs(out - ref_f32)))

    # f32-weight kernel path: tight parity with the f32 model.
    out_f32w = jax.block_until_ready(discriminator_forward(img, prepared_f32))
    assert jnp.allclose(out_f32w, ref_f32, atol=2e-2, rtol=2e-2), \
        float(jnp.max(jnp.abs(out_f32w - ref_f32)))

    # --- Larger batch with a small tile: exercises the multi-step batch grid /
    # pipelining path (>= 2 tiles, even tile count on 2-core chips).
    batch2 = 32
    img2 = jax.random.normal(k_img2, (batch2,) + IMG_SHAPE, dtype=jnp.float32)
    out2 = jax.block_until_ready(discriminator_forward(img2, prepared_bf16, block_batch=8))
    ref2 = _reference_forward(img2, params, weight_dtype=jnp.bfloat16)
    assert out2.shape == (batch2, OUT_DIM), out2.shape
    assert jnp.allclose(out2, ref2, atol=1e-3, rtol=1e-3), \
        float(jnp.max(jnp.abs(out2 - ref2)))

    print("KERNEL_OK")
</pallas_src>

<mosaic_0001>
module attributes {stable_mosaic.version = 11 : i64} {
  func.func @_mlp_kernel(%arg0: i32, %arg1: memref<8x1024xf32, #tpu.memory_space<vmem>>, %arg2: memref<1024x1024xbf16, #tpu.memory_space<vmem>>, %arg3: memref<1x1024xf32, #tpu.memory_space<vmem>>, %arg4: memref<1024x512xbf16, #tpu.memory_space<vmem>>, %arg5: memref<1x512xf32, #tpu.memory_space<vmem>>, %arg6: memref<512x256xbf16, #tpu.memory_space<vmem>>, %arg7: memref<1x256xf32, #tpu.memory_space<vmem>>, %arg8: memref<256x128xbf16, #tpu.memory_space<vmem>>, %arg9: memref<1x128xf32, #tpu.memory_space<vmem>>, %arg10: memref<128x128xbf16, #tpu.memory_space<vmem>>, %arg11: memref<1x128xf32, #tpu.memory_space<vmem>>, %arg12: memref<128x128xbf16, #tpu.memory_space<vmem>>, %arg13: memref<1x128xf32, #tpu.memory_space<vmem>>, %arg14: memref<8x128xf32, #tpu.memory_space<vmem>>) attributes {dimension_semantics = [#tpu.dimension_semantics<parallel>], iteration_bounds = array<i64: 1>, scalar_prefetch = 0 : i64, scratch_operands = 0 : i64, tpu.core_type = #tpu.core_type<tc>, window_params = [{transform_indices = @transform_0, window_bounds = array<i64: 8, 1024>}, {pipeline_mode = #tpu.pipeline_mode<synchronous>, transform_indices = @transform_1, window_bounds = array<i64: 1024, 1024>}, {pipeline_mode = #tpu.pipeline_mode<synchronous>, transform_indices = @transform_2, window_bounds = array<i64: 1, 1024>}, {pipeline_mode = #tpu.pipeline_mode<synchronous>, transform_indices = @transform_3, window_bounds = array<i64: 1024, 512>}, {pipeline_mode = #tpu.pipeline_mode<synchronous>, transform_indices = @transform_4, window_bounds = array<i64: 1, 512>}, {pipeline_mode = #tpu.pipeline_mode<synchronous>, transform_indices = @transform_5, window_bounds = array<i64: 512, 256>}, {pipeline_mode = #tpu.pipeline_mode<synchronous>, transform_indices = @transform_6, window_bounds = array<i64: 1, 256>}, {pipeline_mode = #tpu.pipeline_mode<synchronous>, transform_indices = @transform_7, window_bounds = array<i64: 256, 128>}, {pipeline_mode = #tpu.pipeline_mode<synchronous>, transform_indices = @transform_8, window_bounds = array<i64: 1, 128>}, {pipeline_mode = #tpu.pipeline_mode<synchronous>, transform_indices = @transform_9, window_bounds = array<i64: 128, 128>}, {pipeline_mode = #tpu.pipeline_mode<synchronous>, transform_indices = @transform_10, window_bounds = array<i64: 1, 128>}, {pipeline_mode = #tpu.pipeline_mode<synchronous>, transform_indices = @transform_11, window_bounds = array<i64: 128, 128>}, {pipeline_mode = #tpu.pipeline_mode<synchronous>, transform_indices = @transform_12, window_bounds = array<i64: 1, 128>}, {transform_indices = @transform_13, window_bounds = array<i64: 8, 128>}]} {
    %c0 = arith.constant 0 : index
    %c0_0 = arith.constant 0 : index
    %0 = vector.load %arg1[%c0, %c0_0] : memref<8x1024xf32, #tpu.memory_space<vmem>>, vector<8x1024xf32>
    %c0_1 = arith.constant 0 : index
    %c0_2 = arith.constant 0 : index
    %1 = vector.load %arg2[%c0_1, %c0_2] : memref<1024x1024xbf16, #tpu.memory_space<vmem>>, vector<1024x1024xbf16>
    %c0_3 = arith.constant 0 : index
    %c0_4 = arith.constant 0 : index
    %2 = vector.load %arg3[%c0_3, %c0_4] : memref<1x1024xf32, #tpu.memory_space<vmem>>, vector<1x1024xf32>
    %3 = arith.truncf %0 : vector<8x1024xf32> to vector<8x1024xbf16>
    %cst = arith.constant dense<0.000000e+00> : vector<8x1024xf32>
    %4 = tpu.matmul %3, %1, %cst {dimension_numbers = #tpu.dot_dimension_numbers<[1], [0], [0], [1], [0, 0, 1, 1], [], []>} : vector<8x1024xbf16>, vector<1024x1024xbf16>, vector<8x1024xf32> -> vector<8x1024xf32>
    %5 = vector.broadcast %2 : vector<1x1024xf32> to vector<8x1024xf32>
    %6 = arith.addf %4, %5 : vector<8x1024xf32>
    %cst_5 = arith.constant 0.000000e+00 : f32
    %7 = vector.broadcast %cst_5 : f32 to vector<8x1024xf32>
    %8 = arith.cmpf ogt, %6, %7 : vector<8x1024xf32>
    %cst_6 = arith.constant 2.000000e-01 : f32
    %9 = vector.broadcast %cst_6 : f32 to vector<8x1024xf32>
    %10 = arith.mulf %9, %6 : vector<8x1024xf32>
    %11 = arith.select %8, %6, %10 : vector<8x1024xi1>, vector<8x1024xf32>
    %c0_7 = arith.constant 0 : index
    %c0_8 = arith.constant 0 : index
    %12 = vector.load %arg4[%c0_7, %c0_8] : memref<1024x512xbf16, #tpu.memory_space<vmem>>, vector<1024x512xbf16>
    %c0_9 = arith.constant 0 : index
    %c0_10 = arith.constant 0 : index
    %13 = vector.load %arg5[%c0_9, %c0_10] : memref<1x512xf32, #tpu.memory_space<vmem>>, vector<1x512xf32>
    %14 = arith.truncf %11 : vector<8x1024xf32> to vector<8x1024xbf16>
    %cst_11 = arith.constant dense<0.000000e+00> : vector<8x512xf32>
    %15 = tpu.matmul %14, %12, %cst_11 {dimension_numbers = #tpu.dot_dimension_numbers<[1], [0], [0], [1], [0, 0, 1, 1], [], []>} : vector<8x1024xbf16>, vector<1024x512xbf16>, vector<8x512xf32> -> vector<8x512xf32>
    %16 = vector.broadcast %13 : vector<1x512xf32> to vector<8x512xf32>
    %17 = arith.addf %15, %16 : vector<8x512xf32>
    %cst_12 = arith.constant 0.000000e+00 : f32
    %18 = vector.broadcast %cst_12 : f32 to vector<8x512xf32>
    %19 = arith.cmpf ogt, %17, %18 : vector<8x512xf32>
    %cst_13 = arith.constant 2.000000e-01 : f32
    %20 = vector.broadcast %cst_13 : f32 to vector<8x512xf32>
    %21 = arith.mulf %20, %17 : vector<8x512xf32>
    %22 = arith.select %19, %17, %21 : vector<8x512xi1>, vector<8x512xf32>
    %c0_14 = arith.constant 0 : index
    %c0_15 = arith.constant 0 : index
    %23 = vector.load %arg6[%c0_14, %c0_15] : memref<512x256xbf16, #tpu.memory_space<vmem>>, vector<512x256xbf16>
    %c0_16 = arith.constant 0 : index
    %c0_17 = arith.constant 0 : index
    %24 = vector.load %arg7[%c0_16, %c0_17] : memref<1x256xf32, #tpu.memory_space<vmem>>, vector<1x256xf32>
    %25 = arith.truncf %22 : vector<8x512xf32> to vector<8x512xbf16>
    %cst_18 = arith.constant dense<0.000000e+00> : vector<8x256xf32>
    %26 = tpu.matmul %25, %23, %cst_18 {dimension_numbers = #tpu.dot_dimension_numbers<[1], [0], [0], [1], [0, 0, 1, 1], [], []>} : vector<8x512xbf16>, vector<512x256xbf16>, vector<8x256xf32> -> vector<8x256xf32>
    %27 = vector.broadcast %24 : vector<1x256xf32> to vector<8x256xf32>
    %28 = arith.addf %26, %27 : vector<8x256xf32>
    %cst_19 = arith.constant 0.000000e+00 : f32
    %29 = vector.broadcast %cst_19 : f32 to vector<8x256xf32>
    %30 = arith.cmpf ogt, %28, %29 : vector<8x256xf32>
    %cst_20 = arith.constant 2.000000e-01 : f32
    %31 = vector.broadcast %cst_20 : f32 to vector<8x256xf32>
    %32 = arith.mulf %31, %28 : vector<8x256xf32>
    %33 = arith.select %30, %28, %32 : vector<8x256xi1>, vector<8x256xf32>
    %c0_21 = arith.constant 0 : index
    %c0_22 = arith.constant 0 : index
    %34 = vector.load %arg8[%c0_21, %c0_22] : memref<256x128xbf16, #tpu.memory_space<vmem>>, vector<256x128xbf16>
    %c0_23 = arith.constant 0 : index
    %c0_24 = arith.constant 0 : index
    %35 = vector.load %arg9[%c0_23, %c0_24] : memref<1x128xf32, #tpu.memory_space<vmem>>, vector<1x128xf32>
    %36 = arith.truncf %33 : vector<8x256xf32> to vector<8x256xbf16>
    %cst_25 = arith.constant dense<0.000000e+00> : vector<8x128xf32>
    %37 = tpu.matmul %36, %34, %cst_25 {dimension_numbers = #tpu.dot_dimension_numbers<[1], [0], [0], [1], [0, 0, 1, 1], [], []>} : vector<8x256xbf16>, vector<256x128xbf16>, vector<8x128xf32> -> vector<8x128xf32>
    %38 = vector.broadcast %35 : vector<1x128xf32> to vector<8x128xf32>
    %39 = arith.addf %37, %38 : vector<8x128xf32>
    %cst_26 = arith.constant 0.000000e+00 : f32
    %40 = vector.broadcast %cst_26 : f32 to vector<8x128xf32>
    %41 = arith.cmpf ogt, %39, %40 : vector<8x128xf32>
    %cst_27 = arith.constant 2.000000e-01 : f32
    %42 = vector.broadcast %cst_27 : f32 to vector<8x128xf32>
    %43 = arith.mulf %42, %39 : vector<8x128xf32>
    %44 = arith.select %41, %39, %43 : vector<8x128xi1>, vector<8x128xf32>
    %c0_28 = arith.constant 0 : index
    %c0_29 = arith.constant 0 : index
    %45 = vector.load %arg10[%c0_28, %c0_29] : memref<128x128xbf16, #tpu.memory_space<vmem>>, vector<128x128xbf16>
    %c0_30 = arith.constant 0 : index
    %c0_31 = arith.constant 0 : index
    %46 = vector.load %arg11[%c0_30, %c0_31] : memref<1x128xf32, #tpu.memory_space<vmem>>, vector<1x128xf32>
    %47 = arith.truncf %44 : vector<8x128xf32> to vector<8x128xbf16>
    %cst_32 = arith.constant dense<0.000000e+00> : vector<8x128xf32>
    %48 = tpu.matmul %47, %45, %cst_32 {dimension_numbers = #tpu.dot_dimension_numbers<[1], [0], [0], [1], [0, 0, 1, 1], [], []>} : vector<8x128xbf16>, vector<128x128xbf16>, vector<8x128xf32> -> vector<8x128xf32>
    %49 = vector.broadcast %46 : vector<1x128xf32> to vector<8x128xf32>
    %50 = arith.addf %48, %49 : vector<8x128xf32>
    %cst_33 = arith.constant 0.000000e+00 : f32
    %51 = vector.broadcast %cst_33 : f32 to vector<8x128xf32>
    %52 = arith.cmpf ogt, %50, %51 : vector<8x128xf32>
    %cst_34 = arith.constant 2.000000e-01 : f32
    %53 = vector.broadcast %cst_34 : f32 to vector<8x128xf32>
    %54 = arith.mulf %53, %50 : vector<8x128xf32>
    %55 = arith.select %52, %50, %54 : vector<8x128xi1>, vector<8x128xf32>
    %c0_35 = arith.constant 0 : index
    %c0_36 = arith.constant 0 : index
    %56 = vector.load %arg12[%c0_35, %c0_36] : memref<128x128xbf16, #tpu.memory_space<vmem>>, vector<128x128xbf16>
    %c0_37 = arith.constant 0 : index
    %c0_38 = arith.constant 0 : index
    %57 = vector.load %arg13[%c0_37, %c0_38] : memref<1x128xf32, #tpu.memory_space<vmem>>, vector<1x128xf32>
    %58 = arith.truncf %55 : vector<8x128xf32> to vector<8x128xbf16>
    %cst_39 = arith.constant dense<0.000000e+00> : vector<8x128xf32>
    %59 = tpu.matmul %58, %56, %cst_39 {dimension_numbers = #tpu.dot_dimension_numbers<[1], [0], [0], [1], [0, 0, 1, 1], [], []>} : vector<8x128xbf16>, vector<128x128xbf16>, vector<8x128xf32> -> vector<8x128xf32>
    %60 = vector.broadcast %57 : vector<1x128xf32> to vector<8x128xf32>
    %61 = arith.addf %59, %60 : vector<8x128xf32>
    %c0_40 = arith.constant 0 : index
    %c0_41 = arith.constant 0 : index
    %62 = vector.load %arg14[%c0_40, %c0_41] : memref<8x128xf32, #tpu.memory_space<vmem>>, vector<8x128xf32>
    tpu.vector_store %arg14[%c0_40, %c0_41], %61 {strides = array<i32>} : memref<8x128xf32, #tpu.memory_space<vmem>>, vector<8x128xf32>,
    return
  }
  func.func @transform_0(%arg0: i32) -> (i32, i32) {
    %c0_i32 = arith.constant 0 : i32
    %c0_i32_0 = arith.constant 0 : i32
    return %arg0, %c0_i32 : i32, i32
  }
  func.func @transform_1(%arg0: i32) -> (i32, i32) {
    %c0_i32 = arith.constant 0 : i32
    %c0_i32_0 = arith.constant 0 : i32
    %c0_i32_1 = arith.constant 0 : i32
    return %c0_i32, %c0_i32_0 : i32, i32
  }
  func.func @transform_2(%arg0: i32) -> (i32, i32) {
    %c0_i32 = arith.constant 0 : i32
    %c0_i32_0 = arith.constant 0 : i32
    %c0_i32_1 = arith.constant 0 : i32
    return %c0_i32, %c0_i32_0 : i32, i32
  }
  func.func @transform_3(%arg0: i32) -> (i32, i32) {
    %c0_i32 = arith.constant 0 : i32
    %c0_i32_0 = arith.constant 0 : i32
    %c0_i32_1 = arith.constant 0 : i32
    return %c0_i32, %c0_i32_0 : i32, i32
  }
  func.func @transform_4(%arg0: i32) -> (i32, i32) {
    %c0_i32 = arith.constant 0 : i32
    %c0_i32_0 = arith.constant 0 : i32
    %c0_i32_1 = arith.constant 0 : i32
    return %c0_i32, %c0_i32_0 : i32, i32
  }
  func.func @transform_5(%arg0: i32) -> (i32, i32) {
    %c0_i32 = arith.constant 0 : i32
    %c0_i32_0 = arith.constant 0 : i32
    %c0_i32_1 = arith.constant 0 : i32
    return %c0_i32, %c0_i32_0 : i32, i32
  }
  func.func @transform_6(%arg0: i32) -> (i32, i32) {
    %c0_i32 = arith.constant 0 : i32
    %c0_i32_0 = arith.constant 0 : i32
    %c0_i32_1 = arith.constant 0 : i32
    return %c0_i32, %c0_i32_0 : i32, i32
  }
  func.func @transform_7(%arg0: i32) -> (i32, i32) {
    %c0_i32 = arith.constant 0 : i32
    %c0_i32_0 = arith.constant 0 : i32
    %c0_i32_1 = arith.constant 0 : i32
    return %c0_i32, %c0_i32_0 : i32, i32
  }
  func.func @transform_8(%arg0: i32) -> (i32, i32) {
    %c0_i32 = arith.constant 0 : i32
    %c0_i32_0 = arith.constant 0 : i32
    %c0_i32_1 = arith.constant 0 : i32
    return %c0_i32, %c0_i32_0 : i32, i32
  }
  func.func @transform_9(%arg0: i32) -> (i32, i32) {
    %c0_i32 = arith.constant 0 : i32
    %c0_i32_0 = arith.constant 0 : i32
    %c0_i32_1 = arith.constant 0 : i32
    return %c0_i32, %c0_i32_0 : i32, i32
  }
  func.func @transform_10(%arg0: i32) -> (i32, i32) {
    %c0_i32 = arith.constant 0 : i32
    %c0_i32_0 = arith.constant 0 : i32
    %c0_i32_1 = arith.constant 0 : i32
    return %c0_i32, %c0_i32_0 : i32, i32
  }
  func.func @transform_11(%arg0: i32) -> (i32, i32) {
    %c0_i32 = arith.constant 0 : i32
    %c0_i32_0 = arith.constant 0 : i32
    %c0_i32_1 = arith.constant 0 : i32
    return %c0_i32, %c0_i32_0 : i32, i32
  }
  func.func @transform_12(%arg0: i32) -> (i32, i32) {
    %c0_i32 = arith.constant 0 : i32
    %c0_i32_0 = arith.constant 0 : i32
    %c0_i32_1 = arith.constant 0 : i32
    return %c0_i32, %c0_i32_0 : i32, i32
  }
  func.func @transform_13(%arg0: i32) -> (i32, i32) {
    %c0_i32 = arith.constant 0 : i32
    %c0_i32_0 = arith.constant 0 : i32
    return %arg0, %c0_i32 : i32, i32
  }
}

</mosaic_0001>

<bundles_post_ra>
// kernel: discriminator_forward.1
= control target key start
LH: loop header
LB: loop body
LE: loop exit
PB: predicated region body
PF: predicated region fallthrough
CT: control target
= control target key end

     0   :  { %18 = vsyncpa [#allocation3], 0  ;;  %s9077_s0 = inlined_call_operand.vmem [shape: f32[8,1024], index: 0, kind: input, shape index: {}]   ;;  %s9078_s1 = inlined_call_operand.hbm [shape: bf16[1024,1024], index: 1, kind: input, shape index: {}]   ;;  %s9079_s2 = inlined_call_operand.hbm [shape: f32[1,1024], index: 2, kind: input, shape index: {}]   ;;  %s9080_s3 = inlined_call_operand.hbm [shape: bf16[1024,512], index: 3, kind: input, shape index: {}]   ;;  %s9081_s4 = inlined_call_operand.hbm [shape: f32[1,512], index: 4, kind: input, shape index: {}]   ;;  %s9082_s5 = inlined_call_operand.hbm [shape: bf16[512,256], index: 5, kind: input, shape index: {}]   ;;  %s9083_s6 = inlined_call_operand.hbm [shape: f32[1,256], index: 6, kind: input, shape index: {}]   ;;  %s9084_s7 = inlined_call_operand.hbm [shape: bf16[256,128], index: 7, kind: input, shape index: {}]   ;;  %s9085_s8 = inlined_call_operand.hbm [shape: f32[1,128], index: 8, kind: input, shape index: {}]   ;;  %s9086_s9 = inlined_call_operand.hbm [shape: bf16[128,128], index: 9, kind: input, shape index: {}]   ;;  %s9087_s10 = inlined_call_operand.hbm [shape: f32[1,128], index: 10, kind: input, shape index: {}]   ;;  %s9088_s11 = inlined_call_operand.hbm [shape: bf16[128,128], index: 11, kind: input, shape index: {}]   ;;  %s9089_s12 = inlined_call_operand.hbm [shape: f32[1,128], index: 12, kind: input, shape index: {}]   ;;  %s9090_s13 = inlined_call_operand.vmem [shape: f32[8,128], index: 13, kind: output, shape index: {}]  }
   0x1   :  { %19 = vsyncpa [#allocation5], 0 }
   0x2   :  { %20 = vsyncpa [#allocation8], 0 }
   0x3   :  { %21 = vsyncpa [#allocation11], 0 }
   0x4   :  { %22 = vsyncpa [#allocation14], 0 }
   0x5   :  { %23 = vsyncpa [#allocation17], 0 }
   0x6   :  { %24 = vsyncpa [#allocation20], 0  ;;  %s8669_s25 = smov [#allocation4]   ;;  %s8670_s27 = smov [#allocation7]  }
   0x7   :  { %s45_s26 = sshll.u32 %s8669_s25, 4  ;;  %s67_s28 = sshll.u32 %s8670_s27, 4  ;;  %s46_s26 = int_to_ptr.vmem [resolvable:$true] %s45_s26  ;;  %s68_s28 = int_to_ptr.vmem [resolvable:$true] %s67_s28 }
   0x8   :  { %s8391_s14 = scalar_lea.hbm %s9079_s2, 128 }
   0x9   :  { %p8392_p0 = scmp.ne.s32.totalorder %s9079_s2, %s8391_s14  ;;  %p8395_p1 = scmp.lt.u32.totalorder %s8391_s14, %s9079_s2 }
   0xb   :  { %p8397_p2 = pnand %p8395_p1, %p8392_p0 }
   0xd   :  { %8400 = shalt.err (!%p8397_p2)
}
   0xe   :  { %s8401_s19 = scalar_lea.vmem %s46_s26, 128  ;;  %p8406_p4 = scmp.lt.s32.totalorder %s46_s26, %s46_s26 }
   0xf   :  { %p8402_p3 = scmp.ne.s32.totalorder %s46_s26, %s8401_s19  ;;  %p8407_p5 = scmp.lt.s32.totalorder %s8401_s19, %s8401_s19 }
  0x11   :  { %p8408_p6 = por %p8407_p5, %p8406_p4 }
  0x13   :  { %p8409_p7 = pnand %p8408_p6, %p8402_p3 }
  0x15   :  { %8412 = shalt.err (!%p8409_p7)
}
  0x16   :  { %48 = dma.hbm_to_vmem [thread:$0]  %s9079_s2, 128, %s46_s26, [#allocation5]  }
  0x17   :  { %s8413_s24 = scalar_lea.hbm %s9081_s4, 64 }
  0x18   :  { %p8414_p8 = scmp.ne.s32.totalorder %s9081_s4, %s8413_s24  ;;  %p8417_p9 = scmp.lt.u32.totalorder %s8413_s24, %s9081_s4 }
  0x1a   :  { %p8419_p10 = pnand %p8417_p9, %p8414_p8 }
  0x1c   :  { %8422 = shalt.err (!%p8419_p10)
}
  0x1d   :  { %s8423_s14 = scalar_lea.vmem %s68_s28, 64  ;;  %p8428_p12 = scmp.lt.s32.totalorder %s68_s28, %s68_s28 }
  0x1e   :  { %p8424_p11 = scmp.ne.s32.totalorder %s68_s28, %s8423_s14  ;;  %p8429_p13 = scmp.lt.s32.totalorder %s8423_s14, %s8423_s14 }
  0x20   :  { %p8430_p0 = por %p8429_p13, %p8428_p12 }
  0x22   :  { %p8431_p1 = pnand %p8430_p0, %p8424_p11 }
  0x24   :  { %8434 = shalt.err (!%p8431_p1)
}
  0x25   :  { %70 = dma.hbm_to_vmem [thread:$0]  %s9081_s4, 64, %s68_s28, [#allocation8]  }
  0x26   :  { %s8671_s15 = smov [#allocation10]   ;;  %s8672_s17 = smov [#allocation13]  }
  0x27   :  { %s89_s16 = sshll.u32 %s8671_s15, 4  ;;  %s111_s18 = sshll.u32 %s8672_s17, 4  ;;  %s90_s16 = int_to_ptr.vmem [resolvable:$true] %s89_s16  ;;  %s112_s18 = int_to_ptr.vmem [resolvable:$true] %s111_s18 }
  0x28   :  { %s8435_s21 = scalar_lea.hbm %s9083_s6, 32 }
  0x29   :  { %p8436_p2 = scmp.ne.s32.totalorder %s9083_s6, %s8435_s21  ;;  %p8439_p3 = scmp.lt.u32.totalorder %s8435_s21, %s9083_s6 }
  0x2b   :  { %p8441_p4 = pnand %p8439_p3, %p8436_p2 }
  0x2d   :  { %8444 = shalt.err (!%p8441_p4)
}
  0x2e   :  { %s8445_s4 = scalar_lea.vmem %s90_s16, 32  ;;  %p8450_p6 = scmp.lt.s32.totalorder %s90_s16, %s90_s16 }
  0x2f   :  { %p8446_p5 = scmp.ne.s32.totalorder %s90_s16, %s8445_s4  ;;  %p8451_p7 = scmp.lt.s32.totalorder %s8445_s4, %s8445_s4 }
  0x31   :  { %p8452_p8 = por %p8451_p7, %p8450_p6 }
  0x33   :  { %p8453_p9 = pnand %p8452_p8, %p8446_p5 }
  0x35   :  { %8456 = shalt.err (!%p8453_p9)
}
  0x36   :  { %92 = dma.hbm_to_vmem [thread:$0]  %s9083_s6, 32, %s90_s16, [#allocation11]  }
  0x37   :  { %s8457_s14 = scalar_lea.hbm %s9085_s8, 16 }
  0x38   :  { %p8458_p10 = scmp.ne.s32.totalorder %s9085_s8, %s8457_s14  ;;  %p8461_p11 = scmp.lt.u32.totalorder %s8457_s14, %s9085_s8 }
  0x3a   :  { %p8463_p12 = pnand %p8461_p11, %p8458_p10 }
  0x3c   :  { %8466 = shalt.err (!%p8463_p12)
}
  0x3d   :  { %s8467_s19 = scalar_lea.vmem %s112_s18, 16  ;;  %s8471_s20 = scalar_lea.vmem %s112_s18, 32 }
  0x3e   :  { %p8468_p13 = scmp.ne.s32.totalorder %s112_s18, %s8467_s19  ;;  %p8472_p0 = scmp.lt.s32.totalorder %s112_s18, %s112_s18 }
  0x3f   :  { %p8473_p1 = scmp.lt.s32.totalorder %s8471_s20, %s8467_s19 }
  0x41   :  { %p8474_p2 = por %p8473_p1, %p8472_p0 }
  0x43   :  { %p8475_p3 = pnand %p8474_p2, %p8468_p13 }
  0x45   :  { %8478 = shalt.err (!%p8475_p3)
}
  0x46   :  { %114 = dma.hbm_to_vmem [thread:$0]  %s9085_s8, 16, %s112_s18, [#allocation14]  }
  0x47   :  { %s8673_s21 = smov [#allocation16]   ;;  %s8674_s23 = smov [#allocation2]  }
  0x48   :  { %s133_s22 = sshll.u32 %s8673_s21, 4  ;;  %s32_s24 = sshll.u32 %s8674_s23, 4  ;;  %s134_s22 = int_to_ptr.vmem [resolvable:$true] %s133_s22  ;;  %s8809_s24 = int_to_ptr.vmem [resolvable:$true] %s32_s24 }
  0x49   :  { %s8479_s28 = scalar_lea.hbm %s9087_s10, 16 }
  0x4a   :  { %p8480_p4 = scmp.ne.s32.totalorder %s9087_s10, %s8479_s28  ;;  %p8483_p5 = scmp.lt.u32.totalorder %s8479_s28, %s9087_s10 }
  0x4c   :  { %p8485_p6 = pnand %p8483_p5, %p8480_p4 }
  0x4e   :  { %8488 = shalt.err (!%p8485_p6)
}
  0x4f   :  { %s8489_s8 = scalar_lea.vmem %s134_s22, 16  ;;  %s8493_s18 = scalar_lea.vmem %s134_s22, 32 }
  0x50   :  { %p8490_p7 = scmp.ne.s32.totalorder %s134_s22, %s8489_s8  ;;  %p8494_p8 = scmp.lt.s32.totalorder %s134_s22, %s134_s22 }
  0x51   :  { %p8495_p9 = scmp.lt.s32.totalorder %s8493_s18, %s8489_s8 }
  0x53   :  { %p8496_p10 = por %p8495_p9, %p8494_p8 }
  0x55   :  { %p8497_p11 = pnand %p8496_p10, %p8490_p7 }
  0x57   :  { %8500 = shalt.err (!%p8497_p11)
}
  0x58   :  { %136 = dma.hbm_to_vmem [thread:$0]  %s9087_s10, 16, %s134_s22, [#allocation17]  }
  0x59   :  { %s8501_s19 = scalar_lea.hbm %s9078_s1, 65536 }
  0x5a   :  { %p8502_p12 = scmp.ne.s32.totalorder %s9078_s1, %s8501_s19  ;;  %p8505_p13 = scmp.lt.u32.totalorder %s8501_s19, %s9078_s1 }
  0x5c   :  { %p8507_p0 = pnand %p8505_p13, %p8502_p12 }
  0x5e   :  { %8510 = shalt.err (!%p8507_p0)
}
  0x5f   :  { %s8511_s23 = scalar_lea.vmem %s8809_s24, 65536  ;;  %p8516_p2 = scmp.lt.s32.totalorder %s8809_s24, %s8809_s24 }
  0x60   :  { %p8512_p1 = scmp.ne.s32.totalorder %s8809_s24, %s8511_s23  ;;  %p8517_p3 = scmp.lt.s32.totalorder %s8511_s23, %s8511_s23 }
  0x62   :  { %p8518_p4 = por %p8517_p3, %p8516_p2 }
  0x64   :  { %p8519_p5 = pnand %p8518_p4, %p8512_p1 }
  0x66   :  { %8522 = shalt.err (!%p8519_p5)
}
  0x67   :  { %s8675_s10 = smov 512   ;;  %s8676_s22 = smov 32  }
  0x68   :  { %38 = dma.hbm_to_vmem [thread:$0]  %s9078_s1, 65536, %s8809_s24, [#allocation3], %s8675_s10, %s8675_s10, %s8676_s22  }
  0x69   :  { %s8677_s28 = smov [#allocation6]   ;;  %s8523_s14 = scalar_lea.hbm %s9080_s3, 32768 }
  0x6a   :  { %s54_s27 = sshll.u32 %s8677_s28, 4  ;;  %p8524_p6 = scmp.ne.s32.totalorder %s9080_s3, %s8523_s14  ;;  %s55_s27 = int_to_ptr.vmem [resolvable:$true] %s54_s27 }
  0x6b   :  { %p8527_p7 = scmp.lt.u32.totalorder %s8523_s14, %s9080_s3 }
  0x6d   :  { %p8529_p8 = pnand %p8527_p7, %p8524_p6 }
  0x6f   :  { %8532 = shalt.err (!%p8529_p8)
}
  0x70   :  { %s8533_s15 = scalar_lea.vmem %s55_s27, 32768  ;;  %p8538_p10 = scmp.lt.s32.totalorder %s55_s27, %s55_s27 }
  0x71   :  { %p8534_p9 = scmp.ne.s32.totalorder %s55_s27, %s8533_s15  ;;  %p8539_p11 = scmp.lt.s32.totalorder %s8533_s15, %s8533_s15 }
  0x73   :  { %p8540_p12 = por %p8539_p11, %p8538_p10 }
  0x75   :  { %p8541_p13 = pnand %p8540_p12, %p8534_p9 }
  0x77   :  { %8544 = shalt.err (!%p8541_p13)
}
  0x78   :  { %s8678_s1 = smov 256   ;;  %s8679_s24 = smov 16  }
  0x79   :  { %60 = dma.hbm_to_vmem [thread:$0]  %s9080_s3, 32768, %s55_s27, [#allocation5], %s8678_s1, %s8678_s1, %s8679_s24  }
  0x7a   :  { %s8680_s20 = smov [#allocation9]   ;;  %s8545_s23 = scalar_lea.hbm %s9082_s5, 8192 }
  0x7b   :  { %s76_s6 = sshll.u32 %s8680_s20, 4  ;;  %p8546_p0 = scmp.ne.s32.totalorder %s9082_s5, %s8545_s23  ;;  %s77_s6 = int_to_ptr.vmem [resolvable:$true] %s76_s6 }
  0x7c   :  { %p8549_p1 = scmp.lt.u32.totalorder %s8545_s23, %s9082_s5 }
  0x7e   :  { %p8551_p2 = pnand %p8549_p1, %p8546_p0 }
  0x80   :  { %8554 = shalt.err (!%p8551_p2)
}
  0x81   :  { %s8555_s28 = scalar_lea.vmem %s77_s6, 8192  ;;  %p8560_p4 = scmp.lt.s32.totalorder %s77_s6, %s77_s6 }
  0x82   :  { %p8556_p3 = scmp.ne.s32.totalorder %s77_s6, %s8555_s28  ;;  %p8561_p5 = scmp.lt.s32.totalorder %s8555_s28, %s8555_s28 }
  0x84   :  { %p8562_p6 = por %p8561_p5, %p8560_p4 }
  0x86   :  { %p8563_p7 = pnand %p8562_p6, %p8556_p3 }
  0x88   :  { %8566 = shalt.err (!%p8563_p7)
}
  0x89   :  { %s8681_s3 = smov 128   ;;  %s8682_s27 = smov 8  }
  0x8a   :  { %82 = dma.hbm_to_vmem [thread:$0]  %s9082_s5, 8192, %s77_s6, [#allocation8], %s8681_s3, %s8681_s3, %s8682_s27  }
  0x8b   :  { %s8683_s14 = smov [#allocation12]   ;;  %s8567_s26 = scalar_lea.hbm %s9084_s7, 2048 }
  0x8c   :  { %s98_s8 = sshll.u32 %s8683_s14, 4  ;;  %p8568_p8 = scmp.ne.s32.totalorder %s9084_s7, %s8567_s26  ;;  %s99_s8 = int_to_ptr.vmem [resolvable:$true] %s98_s8 }
  0x8d   :  { %p8571_p9 = scmp.lt.u32.totalorder %s8567_s26, %s9084_s7 }
  0x8f   :  { %p8573_p10 = pnand %p8571_p9, %p8568_p8 }
  0x91   :  { %8576 = shalt.err (!%p8573_p10)
}
  0x92   :  { %s8577_s19 = scalar_lea.vmem %s99_s8, 2048  ;;  %p8582_p12 = scmp.lt.s32.totalorder %s99_s8, %s99_s8 }
  0x93   :  { %p8578_p11 = scmp.ne.s32.totalorder %s99_s8, %s8577_s19  ;;  %p8583_p13 = scmp.lt.s32.totalorder %s8577_s19, %s8577_s19 }
  0x95   :  { %p8584_p0 = por %p8583_p13, %p8582_p12 }
  0x97   :  { %p8585_p1 = pnand %p8584_p0, %p8578_p11 }
  0x99   :  { %8588 = shalt.err (!%p8585_p1)
}
  0x9a   :  { %s8684_s5 = smov 64   ;;  %s8685_s20 = smov 4  }
  0x9b   :  { %104 = dma.hbm_to_vmem [thread:$0]  %s9084_s7, 2048, %s99_s8, [#allocation11], %s8684_s5, %s8684_s5, %s8685_s20  }
  0x9c   :  { %s8686_s21 = smov [#allocation15]   ;;  %s8687_s10 = smov [#allocation18]  }
  0x9d   :  { %s120_s23 = sshll.u32 %s8686_s21, 4  ;;  %s142_s22 = sshll.u32 %s8687_s10, 4  ;;  %s121_s23 = int_to_ptr.vmem [resolvable:$true] %s120_s23  ;;  %s143_s22 = int_to_ptr.vmem [resolvable:$true] %s142_s22 }
  0x9e   :  { %s8589_s28 = scalar_lea.hbm %s9086_s9, 1024 }
  0x9f   :  { %p8590_p2 = scmp.ne.s32.totalorder %s9086_s9, %s8589_s28  ;;  %p8593_p3 = scmp.lt.u32.totalorder %s8589_s28, %s9086_s9 }
  0xa1   :  { %p8595_p4 = pnand %p8593_p3, %p8590_p2 }
  0xa3   :  { %8598 = shalt.err (!%p8595_p4)
}
  0xa4   :  { %s8599_s7 = scalar_lea.vmem %s121_s23, 1024  ;;  %p8604_p6 = scmp.lt.s32.totalorder %s121_s23, %s121_s23 }
  0xa5   :  { %p8600_p5 = scmp.ne.s32.totalorder %s121_s23, %s8599_s7  ;;  %p8605_p7 = scmp.lt.s32.totalorder %s8599_s7, %s8599_s7 }
  0xa7   :  { %p8606_p8 = por %p8605_p7, %p8604_p6 }
  0xa9   :  { %p8607_p9 = pnand %p8606_p8, %p8600_p5 }
  0xab   :  { %8610 = shalt.err (!%p8607_p9)
}
  0xac   :  { %126 = dma.hbm_to_vmem [thread:$0]  %s9086_s9, 1024, %s121_s23, [#allocation14], %s8684_s5, %s8684_s5, %s8685_s20  }
  0xad   :  { %s8611_s26 = scalar_lea.hbm %s9088_s11, 1024 }
  0xae   :  { %p8612_p10 = scmp.ne.s32.totalorder %s9088_s11, %s8611_s26  ;;  %p8615_p11 = scmp.lt.u32.totalorder %s8611_s26, %s9088_s11 }
  0xb0   :  { %p8617_p12 = pnand %p8615_p11, %p8612_p10 }
  0xb2   :  { %8620 = shalt.err (!%p8617_p12)
}
  0xb3   :  { %s8621_s19 = scalar_lea.vmem %s143_s22, 1024  ;;  %p8626_p0 = scmp.lt.s32.totalorder %s143_s22, %s143_s22 }
  0xb4   :  { %p8622_p13 = scmp.ne.s32.totalorder %s143_s22, %s8621_s19  ;;  %p8627_p1 = scmp.lt.s32.totalorder %s8621_s19, %s8621_s19 }
  0xb6   :  { %p8628_p2 = por %p8627_p1, %p8626_p0 }
  0xb8   :  { %p8629_p3 = pnand %p8628_p2, %p8622_p13 }
  0xba   :  { %8632 = shalt.err (!%p8629_p3)
}
  0xbb   :  { %148 = dma.hbm_to_vmem [thread:$0]  %s9088_s11, 1024, %s143_s22, [#allocation17], %s8684_s5, %s8684_s5, %s8685_s20  }
  0xbc   :  { %s8688_s16 = smov [#allocation19]   ;;  %s8633_s25 = scalar_lea.hbm %s9089_s12, 16 }
  0xbd   :  { %s155_s21 = sshll.u32 %s8688_s16, 4  ;;  %p8634_p4 = scmp.ne.s32.totalorder %s9089_s12, %s8633_s25  ;;  %s156_s21 = int_to_ptr.vmem [resolvable:$true] %s155_s21 }
  0xbe   :  { %p8637_p5 = scmp.lt.u32.totalorder %s8633_s25, %s9089_s12 }
  0xc0   :  { %p8639_p6 = pnand %p8637_p5, %p8634_p4 }
  0xc2   :  { %8642 = shalt.err (!%p8639_p6)
}
  0xc3   :  { %s8643_s29 = scalar_lea.vmem %s156_s21, 16  ;;  %s8647_s11 = scalar_lea.vmem %s156_s21, 32 }
  0xc4   :  { %p8644_p7 = scmp.ne.s32.totalorder %s156_s21, %s8643_s29  ;;  %p8648_p8 = scmp.lt.s32.totalorder %s156_s21, %s156_s21 }
  0xc5   :  { %p8649_p9 = scmp.lt.s32.totalorder %s8647_s11, %s8643_s29 }
  0xc7   :  { %p8650_p10 = por %p8649_p9, %p8648_p8 }
  0xc9   :  { %p8651_p11 = pnand %p8650_p10, %p8644_p7 }
  0xcb   :  { %8654 = shalt.err (!%p8651_p11)
}
  0xcc   :  { %158 = dma.hbm_to_vmem [thread:$0]  %s9089_s12, 16, %s156_s21, [#allocation20]  }
  0xcd   :  { %8655 = dma.done.wait [#allocation3], 65536  }
  0xce   :  { %8656 = vsyncadd [#allocation3], 4294901760 }
  0xcf   :  { %8657 = dma.done.wait [#allocation5], 32896  }
  0xd0   :  { %8658 = vsyncadd [#allocation5], 4294934400 }
  0xd1   :  { %8659 = dma.done.wait [#allocation8], 8256  }
  0xd2   :  { %8660 = vsyncadd [#allocation8], 4294959040 }
  0xd3   :  { %8661 = dma.done.wait [#allocation11], 2080  }
  0xd4   :  { %8662 = vsyncadd [#allocation11], 4294965216 }
  0xd5   :  { %8663 = dma.done.wait [#allocation14], 1040  }
  0xd6   :  { %8664 = vsyncadd [#allocation14], 4294966256 }
  0xd7   :  { %8665 = dma.done.wait [#allocation17], 1040  }
  0xd8   :  { %8666 = vsyncadd [#allocation17], 4294966256 }
  0xd9   :  { %8667 = dma.done.wait [#allocation20], 16  }
  0xda   :  { %8668 = vsyncadd [#allocation20], 4294967280  ;;  %v204_v0 = vld [vmem:[#allocation2] sm:$0xff]  ;;  %v205_v2 = vld [vmem:[#allocation2 + $0x8] sm:$0xff]  ;;  %vm8690_vm14 = vmmov 0  }
  0xdb   :  { %v208_v1 = vld [vmem:[#allocation2 + $0x20] sm:$0xff]  ;;  %v209_v4 = vld [vmem:[#allocation2 + $0x28] sm:$0xff] }
  0xdc   :  { %v6820_v3 = vcombine.high %v204_v0, %v208_v1  ;;  %v6819_v5 = vcombine.low %v204_v0, %v208_v1  ;;  %v212_v6 = vld [vmem:[#allocation2 + $0x40] sm:$0xff]  ;;  %v6822_v8 = vcombine.high %v205_v2, %v209_v4  ;;  %v6821_v9 = vcombine.low %v205_v2, %v209_v4  ;;  %v213_v11 = vld [vmem:[#allocation2 + $0x48] sm:$0xff] }
  0xdd   :  { %v216_v7 = vld [vmem:[#allocation2 + $0x60] sm:$0xff]  ;;  %v217_v12 = vld [vmem:[#allocation2 + $0x68] sm:$0xff] }
  0xde   :  { %v6828_v10 = vcombine.high %v212_v6, %v216_v7  ;;  %v220_v13 = vld [vmem:[#allocation2 + $0x80] sm:$0xff]  ;;  %3326 = vmatprep.subr.bf16.mxu0 %v6820_v3  ;;  %v6830_v14 = vcombine.high %v213_v11, %v217_v12  ;;  %v221_v16 = vld [vmem:[#allocation2 + $0x88] sm:$0xff]  ;;  %3490 = vmatprep.subr.bf16.mxu1 %v6822_v8  ;;  %v6827_v18 = vcombine.low %v212_v6, %v216_v7 }
  0xdf   :  { %v224_v15 = vld [vmem:[#allocation2 + $0xa0] sm:$0xff]  ;;  %v225_v17 = vld [vmem:[#allocation2 + $0xa8] sm:$0xff]  ;;  %3327 = vmatpush1.bf16.msra.mxu0 %v6819_v5  ;;  %3491 = vmatpush1.bf16.msra.mxu1 %v6821_v9  ;;  %v6829_v19 = vcombine.low %v213_v11, %v217_v12 }
  0xe0   :  { %3328 = vmatprep.subr.bf16.mxu0 %v6828_v10  ;;  %v6836_v20 = vcombine.high %v220_v13, %v224_v15  ;;  %3492 = vmatprep.subr.bf16.mxu1 %v6830_v14  ;;  %v6838_v21 = vcombine.high %v221_v16, %v225_v17  ;;  %v228_v22 = vld [vmem:[#allocation2 + $0xc0] sm:$0xff]  ;;  %v229_v24 = vld [vmem:[#allocation2 + $0xc8] sm:$0xff]  ;;  %v6835_v26 = vcombine.low %v220_v13, %v224_v15 }
  0xe1   :  { %v232_v23 = vld [vmem:[#allocation2 + $0xe0] sm:$0xff]  ;;  %v233_v25 = vld [vmem:[#allocation2 + $0xe8] sm:$0xff]  ;;  %v6837_v27 = vcombine.low %v221_v16, %v225_v17 }
  0xe2   :  { %v6844_v28 = vcombine.high %v228_v22, %v232_v23  ;;  %v6846_v29 = vcombine.high %v229_v24, %v233_v25  ;;  %v236_v30 = vld [vmem:[#allocation2 + $0x100] sm:$0xff]  ;;  %v237_v32 = vld [vmem:[#allocation2 + $0x108] sm:$0xff]  ;;  %v6843_v34 = vcombine.low %v228_v22, %v232_v23  ;;  %v6845_v35 = vcombine.low %v229_v24, %v233_v25 }
  0xe3   :  { %3329 = vmatpush1.bf16.msra.mxu0 %v6827_v18  ;;  %3493 = vmatpush1.bf16.msra.mxu1 %v6829_v19  ;;  %v240_v31 = vld [vmem:[#allocation2 + $0x120] sm:$0xff]  ;;  %v241_v33 = vld [vmem:[#allocation2 + $0x128] sm:$0xff] }
  0xe4   :  { %3330 = vmatprep.subr.bf16.mxu0 %v6836_v20  ;;  %3494 = vmatprep.subr.bf16.mxu1 %v6838_v21  ;;  %v6852_v36 = vcombine.high %v236_v30, %v240_v31  ;;  %v6854_v37 = vcombine.high %v237_v32, %v241_v33  ;;  %v244_v38 = vld [vmem:[#allocation2 + $0x140] sm:$0xff]  ;;  %v245_v40 = vld [vmem:[#allocation2 + $0x148] sm:$0xff]  ;;  %v6851_v42 = vcombine.low %v236_v30, %v240_v31 }
  0xe5   :  { %v248_v39 = vld [vmem:[#allocation2 + $0x160] sm:$0xff]  ;;  %v249_v41 = vld [vmem:[#allocation2 + $0x168] sm:$0xff]  ;;  %v6853_v43 = vcombine.low %v237_v32, %v241_v33 }
  0xe6   :  { %v6860_v44 = vcombine.high %v244_v38, %v248_v39  ;;  %v6862_v45 = vcombine.high %v245_v40, %v249_v41  ;;  %v252_v46 = vld [vmem:[#allocation2 + $0x180] sm:$0xff]  ;;  %v253_v48 = vld [vmem:[#allocation2 + $0x188] sm:$0xff]  ;;  %v6859_v50 = vcombine.low %v244_v38, %v248_v39  ;;  %v6861_v51 = vcombine.low %v245_v40, %v249_v41 }
  0xe7   :  { %3331 = vmatpush1.bf16.msra.mxu0 %v6835_v26  ;;  %3495 = vmatpush1.bf16.msra.mxu1 %v6837_v27  ;;  %v256_v47 = vld [vmem:[#allocation2 + $0x1a0] sm:$0xff]  ;;  %v257_v49 = vld [vmem:[#allocation2 + $0x1a8] sm:$0xff] }
  0xe8   :  { %3332 = vmatprep.subr.bf16.mxu0 %v6844_v28  ;;  %3496 = vmatprep.subr.bf16.mxu1 %v6846_v29  ;;  %v6868_v52 = vcombine.high %v252_v46, %v256_v47  ;;  %v197_v53 = vld [vmem:[%s9077_s0 + $0x8] sm:$0xff]  ;;  %v6870_v54 = vcombine.high %v253_v48, %v257_v49  ;;  %v260_v55 = vld [vmem:[#allocation2 + $0x1c0] sm:$0xff]  ;;  %v6867_v60 = vcombine.low %v252_v46, %v256_v47 }
  0xe9   :  { %v264_v56 = vld [vmem:[#allocation2 + $0x1e0] sm:$0xff]  ;;  %v8924_v57 = vpack.c.bf16 %v197_v53, %v197_v53  ;;  %v261_v58 = vld [vmem:[#allocation2 + $0x1c8] sm:$0xff]  ;;  %v6869_v61 = vcombine.low %v253_v48, %v257_v49 }
  0xea   :  { %v265_v59 = vld [vmem:[#allocation2 + $0x1e8] sm:$0xff]  ;;  %v6876_v62 = vcombine.high %v260_v55, %v264_v56  ;;  %v268_v0 = vld [vmem:[#allocation2 + $0x200] sm:$0xff]  ;;  %v6875_v4 = vcombine.low %v260_v55, %v264_v56 }
  0xeb   :  { %3333 = vmatpush1.bf16.msra.mxu0 %v6843_v34  ;;  %3497 = vmatpush1.bf16.msra.mxu1 %v6845_v35  ;;  %v6878_v63 = vcombine.high %v261_v58, %v265_v59  ;;  %v272_v1 = vld [vmem:[#allocation2 + $0x220] sm:$0xff]  ;;  %v269_v2 = vld [vmem:[#allocation2 + $0x208] sm:$0xff]  ;;  %v6877_v5 = vcombine.low %v261_v58, %v265_v59 }
  0xec   :  { %3334 = vmatprep.subr.bf16.mxu0 %v6852_v36  ;;  %3498 = vmatprep.subr.bf16.mxu1 %v6854_v37  ;;  %v273_v3 = vld [vmem:[#allocation2 + $0x228] sm:$0xff]  ;;  %v6884_v6 = vcombine.high %v268_v0, %v272_v1  ;;  %v276_v8 = vld [vmem:[#allocation2 + $0x240] sm:$0xff]  ;;  %v6883_v12 = vcombine.low %v268_v0, %v272_v1 }
  0xed   :  { %3358 = vmatprep.mubr.bf16.mxu0 %v8924_v57  ;;  %3522 = vmatprep.mubr.bf16.mxu1 %v8924_v57  ;;  %v6886_v7 = vcombine.high %v269_v2, %v273_v3  ;;  %v280_v9 = vld [vmem:[#allocation2 + $0x260] sm:$0xff]  ;;  %v277_v10 = vld [vmem:[#allocation2 + $0x248] sm:$0xff]  ;;  %v6885_v13 = vcombine.low %v269_v2, %v273_v3 }
  0xee   :  { %v281_v11 = vld [vmem:[#allocation2 + $0x268] sm:$0xff]  ;;  %v6892_v14 = vcombine.high %v276_v8, %v280_v9  ;;  %v284_v16 = vld [vmem:[#allocation2 + $0x280] sm:$0xff]  ;;  %v6891_v20 = vcombine.low %v276_v8, %v280_v9 }
  0xef   :  { %3335 = vmatpush1.bf16.msra.mxu0 %v6851_v42  ;;  %3499 = vmatpush1.bf16.msra.mxu1 %v6853_v43  ;;  %v6894_v15 = vcombine.high %v277_v10, %v281_v11  ;;  %v288_v17 = vld [vmem:[#allocation2 + $0x2a0] sm:$0xff]  ;;  %v285_v18 = vld [vmem:[#allocation2 + $0x288] sm:$0xff]  ;;  %v6893_v21 = vcombine.low %v277_v10, %v281_v11 }
  0xf0   :  { %3336 = vmatprep.subr.bf16.mxu0 %v6860_v44  ;;  %3500 = vmatprep.subr.bf16.mxu1 %v6862_v45  ;;  %v289_v19 = vld [vmem:[#allocation2 + $0x2a8] sm:$0xff]  ;;  %v6900_v22 = vcombine.high %v284_v16, %v288_v17  ;;  %v292_v24 = vld [vmem:[#allocation2 + $0x2c0] sm:$0xff]  ;;  %v6899_v28 = vcombine.low %v284_v16, %v288_v17 }
  0xf1   :  { %v6902_v23 = vcombine.high %v285_v18, %v289_v19  ;;  %v296_v25 = vld [vmem:[#allocation2 + $0x2e0] sm:$0xff]  ;;  %v293_v26 = vld [vmem:[#allocation2 + $0x2c8] sm:$0xff]  ;;  %v6901_v29 = vcombine.low %v285_v18, %v289_v19 }
  0xf2   :  { %v297_v27 = vld [vmem:[#allocation2 + $0x2e8] sm:$0xff]  ;;  %v6908_v30 = vcombine.high %v292_v24, %v296_v25  ;;  %v300_v32 = vld [vmem:[#allocation2 + $0x300] sm:$0xff]  ;;  %v6907_v36 = vcombine.low %v292_v24, %v296_v25 }
  0xf3   :  { %3337 = vmatpush1.bf16.msra.mxu0 %v6859_v50  ;;  %3501 = vmatpush1.bf16.msra.mxu1 %v6861_v51  ;;  %v6910_v31 = vcombine.high %v293_v26, %v297_v27  ;;  %v304_v33 = vld [vmem:[#allocation2 + $0x320] sm:$0xff]  ;;  %v301_v34 = vld [vmem:[#allocation2 + $0x308] sm:$0xff]  ;;  %v6909_v37 = vcombine.low %v293_v26, %v297_v27 }
  0xf4   :  { %3338 = vmatprep.subr.bf16.mxu0 %v6868_v52  ;;  %3502 = vmatprep.subr.bf16.mxu1 %v6870_v54  ;;  %v305_v35 = vld [vmem:[#allocation2 + $0x328] sm:$0xff]  ;;  %v6916_v38 = vcombine.high %v300_v32, %v304_v33  ;;  %v308_v40 = vld [vmem:[#allocation2 + $0x340] sm:$0xff]  ;;  %v6915_v44 = vcombine.low %v300_v32, %v304_v33 }
  0xf5   :  { %v6918_v39 = vcombine.high %v301_v34, %v305_v35  ;;  %v312_v41 = vld [vmem:[#allocation2 + $0x360] sm:$0xff]  ;;  %v309_v42 = vld [vmem:[#allocation2 + $0x348] sm:$0xff]  ;;  %v6917_v45 = vcombine.low %v301_v34, %v305_v35 }
  0xf6   :  { %v313_v43 = vld [vmem:[#allocation2 + $0x368] sm:$0xff]  ;;  %v6924_v46 = vcombine.high %v308_v40, %v312_v41  ;;  %v316_v48 = vld [vmem:[#allocation2 + $0x380] sm:$0xff]  ;;  %v6923_v52 = vcombine.low %v308_v40, %v312_v41 }
  0xf7   :  { %3339 = vmatpush1.bf16.msra.mxu0 %v6867_v60  ;;  %3503 = vmatpush1.bf16.msra.mxu1 %v6869_v61  ;;  %v6926_v47 = vcombine.high %v309_v42, %v313_v43  ;;  %v320_v49 = vld [vmem:[#allocation2 + $0x3a0] sm:$0xff]  ;;  %v317_v50 = vld [vmem:[#allocation2 + $0x388] sm:$0xff]  ;;  %v6925_v53 = vcombine.low %v309_v42, %v313_v43 }
  0xf8   :  { %3340 = vmatprep.subr.bf16.mxu0 %v6876_v62  ;;  %3504 = vmatprep.subr.bf16.mxu1 %v6878_v63  ;;  %v321_v51 = vld [vmem:[#allocation2 + $0x3a8] sm:$0xff]  ;;  %v6932_v54 = vcombine.high %v316_v48, %v320_v49  ;;  %v324_v56 = vld [vmem:[#allocation2 + $0x3c0] sm:$0xff]  ;;  %v6931_v61 = vcombine.low %v316_v48, %v320_v49 }
  0xf9   :  { %v6934_v55 = vcombine.high %v317_v50, %v321_v51  ;;  %v328_v58 = vld [vmem:[#allocation2 + $0x3e0] sm:$0xff]  ;;  %v325_v59 = vld [vmem:[#allocation2 + $0x3c8] sm:$0xff]  ;;  %v6933_v62 = vcombine.low %v317_v50, %v321_v51 }
  0xfa   :  { %v329_v60 = vld [vmem:[#allocation2 + $0x3e8] sm:$0xff]  ;;  %v6940_v63 = vcombine.high %v324_v56, %v328_v58  ;;  %v332_v1 = vld [vmem:[#allocation2 + $0x400] sm:$0xff] }
  0xfb   :  { %3341 = vmatpush1.bf16.msra.mxu0 %v6875_v4  ;;  %3505 = vmatpush1.bf16.msra.mxu1 %v6877_v5  ;;  %v6942_v0 = vcombine.high %v325_v59, %v329_v60  ;;  %v336_v2 = vld [vmem:[#allocation2 + $0x420] sm:$0xff]  ;;  %v333_v3 = vld [vmem:[#allocation2 + $0x408] sm:$0xff]  ;;  %v6939_v5 = vcombine.low %v324_v56, %v328_v58 }
  0xfc   :  { %3342 = vmatprep.subr.bf16.mxu0 %v6884_v6  ;;  %3506 = vmatprep.subr.bf16.mxu1 %v6886_v7  ;;  %v337_v4 = vld [vmem:[#allocation2 + $0x428] sm:$0xff]  ;;  %v196_v6 = vld [vmem:[%s9077_s0] sm:$0xff]  ;;  %v6941_v7 = vcombine.low %v325_v59, %v329_v60  ;;  %v6948_v8 = vcombine.high %v332_v1, %v336_v2  ;;  %v6947_v16 = vcombine.low %v332_v1, %v336_v2 }
  0xfd   :  { %v6950_v9 = vcombine.high %v333_v3, %v337_v4  ;;  %v340_v10 = vld [vmem:[#allocation2 + $0x440] sm:$0xff]  ;;  %v6949_v17 = vcombine.low %v333_v3, %v337_v4  ;;  %v353_v24 = vld [vmem:[#allocation2 + $0x4a8] sm:$0xff] }
  0xfe   :  { %v344_v11 = vld [vmem:[#allocation2 + $0x460] sm:$0xff]  ;;  %v361_v32 = vld [vmem:[#allocation2 + $0x4e8] sm:$0xff] }
  0xff   :  { %3343 = vmatpush1.bf16.msra.mxu0 %v6883_v12  ;;  %3507 = vmatpush1.bf16.msra.mxu1 %v6885_v13  ;;  %v8931_v12 = vpack.c.bf16 %v196_v6, %v196_v6  ;;  %v341_v13 = vld [vmem:[#allocation2 + $0x448] sm:$0xff]  ;;  %v6956_v18 = vcombine.high %v340_v10, %v344_v11  ;;  %v6955_v25 = vcombine.low %v340_v10, %v344_v11  ;;  %v400_v6 = vld [vmem:[#allocation2 + $0x620] sm:$0xff] }
 0x100   :  { %3344 = vmatprep.subr.bf16.mxu0 %v6892_v14  ;;  %3508 = vmatprep.subr.bf16.mxu1 %v6894_v15  ;;  %v345_v14 = vld [vmem:[#allocation2 + $0x468] sm:$0xff]  ;;  %v199_v15 = vld [vmem:[%s9077_s0 + $0x18] sm:$0xff] }
 0x101   :  { %v6958_v19 = vcombine.high %v341_v13, %v345_v14  ;;  %v6957_v26 = vcombine.low %v341_v13, %v345_v14  ;;  %v369_v40 = vld [vmem:[#allocation2 + $0x528] sm:$0xff]  ;;  %v404_v14 = vld [vmem:[#allocation2 + $0x640] sm:$0xff] }
 0x102   :  { %v377_v48 = vld [vmem:[#allocation2 + $0x568] sm:$0xff] }
 0x103   :  { %3345 = vmatpush1.bf16.msra.mxu0 %v6891_v20  ;;  %3509 = vmatpush1.bf16.msra.mxu1 %v6893_v21  ;;  %v348_v20 = vld [vmem:[#allocation2 + $0x480] sm:$0xff]  ;;  %v385_v56 = vld [vmem:[#allocation2 + $0x5a8] sm:$0xff] }
 0x104   :  { %3346 = vmatprep.subr.bf16.mxu0 %v6900_v22  ;;  %3510 = vmatprep.subr.bf16.mxu1 %v6902_v23  ;;  %v352_v21 = vld [vmem:[#allocation2 + $0x4a0] sm:$0xff]  ;;  %v349_v22 = vld [vmem:[#allocation2 + $0x488] sm:$0xff]  ;;  %v8936_v23 = vpack.c.bf16 %v199_v15, %v199_v15 }
 0x105   :  { %v6964_v27 = vcombine.high %v348_v20, %v352_v21  ;;  %v6963_v33 = vcombine.low %v348_v20, %v352_v21  ;;  %v6965_v34 = vcombine.low %v349_v22, %v353_v24  ;;  %v393_v1 = vld [vmem:[#allocation2 + $0x5e8] sm:$0xff]  ;;  %v408_v15 = vld [vmem:[#allocation2 + $0x660] sm:$0xff] }
 0x106   :  { %v7020_v21 = vcombine.high %v404_v14, %v408_v15 }
 0x107   :  { %3347 = vmatpush1.bf16.msra.mxu0 %v6899_v28  ;;  %3511 = vmatpush1.bf16.msra.mxu1 %v6901_v29  ;;  %v356_v28 = vld [vmem:[#allocation2 + $0x4c0] sm:$0xff] }
 0x108   :  { %3348 = vmatprep.subr.bf16.mxu0 %v6908_v30  ;;  %3512 = vmatprep.subr.bf16.mxu1 %v6910_v31  ;;  %v360_v29 = vld [vmem:[#allocation2 + $0x4e0] sm:$0xff]  ;;  %v357_v30 = vld [vmem:[#allocation2 + $0x4c8] sm:$0xff]  ;;  %v6966_v31 = vcombine.high %v349_v22, %v353_v24 }
 0x109   :  { %v6972_v35 = vcombine.high %v356_v28, %v360_v29  ;;  %v6971_v41 = vcombine.low %v356_v28, %v360_v29  ;;  %v6973_v42 = vcombine.low %v357_v30, %v361_v32  ;;  %v412_v22 = vld [vmem:[#allocation2 + $0x680] sm:$0xff]  ;;  %v7019_v28 = vcombine.low %v404_v14, %v408_v15  ;;  %v198_v14 = vld [vmem:[%s9077_s0 + $0x10] sm:$0xff] }
 0x10a   :  { %v416_v24 = vld [vmem:[#allocation2 + $0x6a0] sm:$0xff] }
 0x10b   :  { %3349 = vmatpush1.bf16.msra.mxu0 %v6907_v36  ;;  %3513 = vmatpush1.bf16.msra.mxu1 %v6909_v37  ;;  %v364_v36 = vld [vmem:[#allocation2 + $0x500] sm:$0xff] }
 0x10c   :  { %3350 = vmatprep.subr.bf16.mxu0 %v6916_v38  ;;  %3514 = vmatprep.subr.bf16.mxu1 %v6918_v39  ;;  %v368_v37 = vld [vmem:[#allocation2 + $0x520] sm:$0xff]  ;;  %v365_v38 = vld [vmem:[#allocation2 + $0x508] sm:$0xff]  ;;  %v6974_v39 = vcombine.high %v357_v30, %v361_v32  ;;  %v7028_v30 = vcombine.high %v412_v22, %v416_v24 }
 0x10d   :  { %v6980_v43 = vcombine.high %v364_v36, %v368_v37  ;;  %v6979_v49 = vcombine.low %v364_v36, %v368_v37  ;;  %v6981_v50 = vcombine.low %v365_v38, %v369_v40  ;;  %v424_v32 = vld [vmem:[#allocation2 + $0x6e0] sm:$0xff]  ;;  %v7027_v36 = vcombine.low %v412_v22, %v416_v24  ;;  %v201_v24 = vld [vmem:[%s9077_s0 + $0x28] sm:$0xff] }
 0x10f   :  { %3351 = vmatpush1.bf16.msra.mxu0 %v6915_v44  ;;  %3515 = vmatpush1.bf16.msra.mxu1 %v6917_v45  ;;  %v372_v44 = vld [vmem:[#allocation2 + $0x540] sm:$0xff] }
 0x110   :  { %3352 = vmatprep.subr.bf16.mxu0 %v6924_v46  ;;  %3516 = vmatprep.subr.bf16.mxu1 %v6926_v47  ;;  %v376_v45 = vld [vmem:[#allocation2 + $0x560] sm:$0xff]  ;;  %v373_v46 = vld [vmem:[#allocation2 + $0x548] sm:$0xff]  ;;  %v6982_v47 = vcombine.high %v365_v38, %v369_v40 }
 0x111   :  { %v6988_v51 = vcombine.high %v372_v44, %v376_v45  ;;  %v6987_v58 = vcombine.low %v372_v44, %v376_v45  ;;  %v6989_v59 = vcombine.low %v373_v46, %v377_v48  ;;  %v432_v40 = vld [vmem:[#allocation2 + $0x720] sm:$0xff] }
 0x113   :  { %3353 = vmatpush1.bf16.msra.mxu0 %v6923_v52  ;;  %3517 = vmatpush1.bf16.msra.mxu1 %v6925_v53  ;;  %v380_v52 = vld [vmem:[#allocation2 + $0x580] sm:$0xff] }
 0x114   :  { %3354 = vmatprep.subr.bf16.mxu0 %v6932_v54  ;;  %3518 = vmatprep.subr.bf16.mxu1 %v6934_v55  ;;  %v384_v53 = vld [vmem:[#allocation2 + $0x5a0] sm:$0xff]  ;;  %v381_v54 = vld [vmem:[#allocation2 + $0x588] sm:$0xff]  ;;  %v6990_v55 = vcombine.high %v373_v46, %v377_v48 }
 0x115   :  { %v6996_v60 = vcombine.high %v380_v52, %v384_v53  ;;  %v6995_v2 = vcombine.low %v380_v52, %v384_v53  ;;  %v6997_v3 = vcombine.low %v381_v54, %v385_v56  ;;  %v440_v48 = vld [vmem:[#allocation2 + $0x760] sm:$0xff] }
 0x117   :  { %3355 = vmatpush1.bf16.msra.mxu0 %v6931_v61  ;;  %3519 = vmatpush1.bf16.msra.mxu1 %v6933_v62  ;;  %v388_v61 = vld [vmem:[#allocation2 + $0x5c0] sm:$0xff] }
 0x118   :  { %3356 = vmatprep.subr.bf16.mxu0 %v6940_v63  ;;  %3520 = vmatprep.subr.bf16.mxu1 %v6942_v0  ;;  %v392_v62 = vld [vmem:[#allocation2 + $0x5e0] sm:$0xff]  ;;  %v389_v63 = vld [vmem:[#allocation2 + $0x5c8] sm:$0xff]  ;;  %v6998_v0 = vcombine.high %v381_v54, %v385_v56 }
 0x119   :  { %v7004_v4 = vcombine.high %v388_v61, %v392_v62  ;;  %v7003_v10 = vcombine.low %v388_v61, %v392_v62  ;;  %v7005_v11 = vcombine.low %v389_v63, %v393_v1  ;;  %v448_v56 = vld [vmem:[#allocation2 + $0x7a0] sm:$0xff] }
 0x11b   :  { %3357 = vmatpush1.bf16.msra.mxu0 %v6939_v5  ;;  %3521 = vmatpush1.bf16.msra.mxu1 %v6941_v7  ;;  %v396_v5 = vld [vmem:[#allocation2 + $0x600] sm:$0xff]  ;;  %v397_v7 = vld [vmem:[#allocation2 + $0x608] sm:$0xff] }
 0x11c   :  { %3367 = vmatprep.subr.bf16.mxu0 %v6948_v8  ;;  %3531 = vmatprep.subr.bf16.mxu1 %v6950_v9  ;;  %v7006_v8 = vcombine.high %v389_v63, %v393_v1  ;;  %v401_v9 = vld [vmem:[#allocation2 + $0x628] sm:$0xff]  ;;  %v7012_v13 = vcombine.high %v396_v5, %v400_v6  ;;  %v456_v1 = vld [vmem:[#allocation2 + $0x7e0] sm:$0xff] }
 0x11d   :  { %v7013_v20 = vcombine.low %v397_v7, %v401_v9 }
 0x11e   :  { %3359 = vmatmul.mubr.bf16.vlgmr.msra.gmra.mrb[0].mxu0 %v8931_v12  ;;  %3523 = vmatmul.mubr.bf16.vlgmr.msra.gmra.mrb[0].mxu1 %v8931_v12 }
 0x11f   :  { %3368 = vmatpush1.bf16.msra.mxu0 %v6947_v16  ;;  %3532 = vmatpush1.bf16.msra.mxu1 %v6949_v17  ;;  %v405_v16 = vld [vmem:[#allocation2 + $0x648] sm:$0xff]  ;;  %v7014_v17 = vcombine.high %v397_v7, %v401_v9  ;;  %v464_v9 = vld [vmem:[#allocation2 + $0x820] sm:$0xff] }
 0x120   :  { %3369 = vmatprep.subr.bf16.mxu0 %v6956_v18  ;;  %3533 = vmatprep.subr.bf16.mxu1 %v6958_v19  ;;  %v409_v18 = vld [vmem:[#allocation2 + $0x668] sm:$0xff]  ;;  %v7011_v19 = vcombine.low %v396_v5, %v400_v6  ;;  %v460_v6 = vld [vmem:[#allocation2 + $0x800] sm:$0xff] }
 0x121   :  { %3399 = vmatprep.mubr.bf16.mxu0 %v8936_v23  ;;  %3563 = vmatprep.mubr.bf16.mxu1 %v8936_v23  ;;  %v7021_v29 = vcombine.low %v405_v16, %v409_v18 }
 0x123   :  { %3370 = vmatpush1.bf16.msra.mxu0 %v6955_v25  ;;  %3534 = vmatpush1.bf16.msra.mxu1 %v6957_v26  ;;  %v413_v25 = vld [vmem:[#allocation2 + $0x688] sm:$0xff]  ;;  %v7022_v26 = vcombine.high %v405_v16, %v409_v18  ;;  %v468_v16 = vld [vmem:[#allocation2 + $0x840] sm:$0xff]  ;;  %v7076_v18 = vcombine.high %v460_v6, %v464_v9 }
 0x124   :  { %3371 = vmatprep.subr.bf16.mxu0 %v6964_v27  ;;  %3535 = vmatprep.subr.bf16.mxu1 %v6966_v31  ;;  %v417_v27 = vld [vmem:[#allocation2 + $0x6a8] sm:$0xff]  ;;  %v420_v31 = vld [vmem:[#allocation2 + $0x6c0] sm:$0xff] }
 0x125   :  { %v7029_v37 = vcombine.low %v413_v25, %v417_v27  ;;  %v7036_v38 = vcombine.high %v420_v31, %v424_v32  ;;  %v7035_v44 = vcombine.low %v420_v31, %v424_v32  ;;  %v477_v32 = vld [vmem:[#allocation2 + $0x888] sm:$0xff] }
 0x127   :  { %3372 = vmatpush1.bf16.msra.mxu0 %v6963_v33  ;;  %3536 = vmatpush1.bf16.msra.mxu1 %v6965_v34  ;;  %v421_v33 = vld [vmem:[#allocation2 + $0x6c8] sm:$0xff]  ;;  %v7030_v34 = vcombine.high %v413_v25, %v417_v27  ;;  %v8948_v25 = vpack.c.bf16 %v198_v14, %v198_v14 }
 0x128   :  { %3373 = vmatprep.subr.bf16.mxu0 %v6972_v35  ;;  %3537 = vmatprep.subr.bf16.mxu1 %v6974_v39  ;;  %v425_v35 = vld [vmem:[#allocation2 + $0x6e8] sm:$0xff]  ;;  %v428_v39 = vld [vmem:[#allocation2 + $0x700] sm:$0xff] }
 0x129   :  { %v7037_v45 = vcombine.low %v421_v33, %v425_v35  ;;  %v7044_v46 = vcombine.high %v428_v39, %v432_v40  ;;  %v7043_v52 = vcombine.low %v428_v39, %v432_v40  ;;  %v488_v39 = vld [vmem:[#allocation2 + $0x8e0] sm:$0xff]  ;;  %v485_v40 = vld [vmem:[#allocation2 + $0x8c8] sm:$0xff] }
 0x12b   :  { %3374 = vmatpush1.bf16.msra.mxu0 %v6971_v41  ;;  %3538 = vmatpush1.bf16.msra.mxu1 %v6973_v42  ;;  %v429_v41 = vld [vmem:[#allocation2 + $0x708] sm:$0xff]  ;;  %v7038_v42 = vcombine.high %v421_v33, %v425_v35 }
 0x12c   :  { %3375 = vmatprep.subr.bf16.mxu0 %v6980_v43  ;;  %3539 = vmatprep.subr.bf16.mxu1 %v6982_v47  ;;  %v433_v43 = vld [vmem:[#allocation2 + $0x728] sm:$0xff]  ;;  %v436_v47 = vld [vmem:[#allocation2 + $0x740] sm:$0xff] }
 0x12d   :  { %v7045_v53 = vcombine.low %v429_v41, %v433_v43  ;;  %v7052_v54 = vcombine.high %v436_v47, %v440_v48  ;;  %v7051_v61 = vcombine.low %v436_v47, %v440_v48  ;;  %v481_v33 = vld [vmem:[#allocation2 + $0x8a8] sm:$0xff]  ;;  %v496_v47 = vld [vmem:[#allocation2 + $0x920] sm:$0xff] }
 0x12e   :  { %v493_v48 = vld [vmem:[#allocation2 + $0x908] sm:$0xff] }
 0x12f   :  { %3376 = vmatpush1.bf16.msra.mxu0 %v6979_v49  ;;  %3540 = vmatpush1.bf16.msra.mxu1 %v6981_v50  ;;  %v437_v49 = vld [vmem:[#allocation2 + $0x748] sm:$0xff]  ;;  %v7046_v50 = vcombine.high %v429_v41, %v433_v43  ;;  %v7094_v41 = vcombine.high %v477_v32, %v481_v33 }
 0x130   :  { %3377 = vmatprep.subr.bf16.mxu0 %v6988_v51  ;;  %3541 = vmatprep.subr.bf16.mxu1 %v6990_v55  ;;  %v441_v51 = vld [vmem:[#allocation2 + $0x768] sm:$0xff]  ;;  %v444_v55 = vld [vmem:[#allocation2 + $0x780] sm:$0xff] }
 0x131   :  { %v7053_v62 = vcombine.low %v437_v49, %v441_v51  ;;  %v7060_v63 = vcombine.high %v444_v55, %v448_v56  ;;  %v7059_v5 = vcombine.low %v444_v55, %v448_v56  ;;  %v504_v55 = vld [vmem:[#allocation2 + $0x960] sm:$0xff]  ;;  %v501_v56 = vld [vmem:[#allocation2 + $0x948] sm:$0xff] }
 0x133   :  { %3378 = vmatpush1.bf16.msra.mxu0 %v6987_v58  ;;  %3542 = vmatpush1.bf16.msra.mxu1 %v6989_v59  ;;  %v445_v58 = vld [vmem:[#allocation2 + $0x788] sm:$0xff]  ;;  %v7054_v59 = vcombine.high %v437_v49, %v441_v51 }
 0x134   :  { %3379 = vmatprep.subr.bf16.mxu0 %v6996_v60  ;;  %3543 = vmatprep.subr.bf16.mxu1 %v6998_v0  ;;  %v449_v60 = vld [vmem:[#allocation2 + $0x7a8] sm:$0xff]  ;;  %v452_v0 = vld [vmem:[#allocation2 + $0x7c0] sm:$0xff] }
 0x135   :  { %v7061_v7 = vcombine.low %v445_v58, %v449_v60  ;;  %v7067_v15 = vcombine.low %v452_v0, %v456_v1 }
 0x137   :  { %3380 = vmatpush1.bf16.msra.mxu0 %v6995_v2  ;;  %3544 = vmatpush1.bf16.msra.mxu1 %v6997_v3  ;;  %v453_v2 = vld [vmem:[#allocation2 + $0x7c8] sm:$0xff]  ;;  %v7062_v3 = vcombine.high %v445_v58, %v449_v60 }
 0x138   :  { %3381 = vmatprep.subr.bf16.mxu0 %v7004_v4  ;;  %3545 = vmatprep.subr.bf16.mxu1 %v7006_v8  ;;  %v457_v4 = vld [vmem:[#allocation2 + $0x7e8] sm:$0xff]  ;;  %v7068_v8 = vcombine.high %v452_v0, %v456_v1  ;;  %v512_v0 = vld [vmem:[#allocation2 + $0x9a0] sm:$0xff] }
 0x139   :  { %v509_v1 = vld [vmem:[#allocation2 + $0x988] sm:$0xff] }
 0x13b   :  { %3382 = vmatpush1.bf16.msra.mxu0 %v7003_v10  ;;  %3546 = vmatpush1.bf16.msra.mxu1 %v7005_v11  ;;  %v461_v10 = vld [vmem:[#allocation2 + $0x808] sm:$0xff] }
 0x13c   :  { %3383 = vmatprep.subr.bf16.mxu0 %v7012_v13  ;;  %3547 = vmatprep.subr.bf16.mxu1 %v7014_v17  ;;  %v465_v11 = vld [vmem:[#allocation2 + $0x828] sm:$0xff]  ;;  %v7070_v13 = vcombine.high %v453_v2, %v457_v4  ;;  %v7069_v17 = vcombine.low %v453_v2, %v457_v4 }
 0x13d   :  { %v7078_v22 = vcombine.high %v461_v10, %v465_v11  ;;  %v7077_v27 = vcombine.low %v461_v10, %v465_v11  ;;  %v521_v11 = vld [vmem:[#allocation2 + $0x9e8] sm:$0xff] }
 0x13f   :  { %3384 = vmatpush1.bf16.msra.mxu0 %v7011_v19  ;;  %3548 = vmatpush1.bf16.msra.mxu1 %v7013_v20  ;;  %v472_v19 = vld [vmem:[#allocation2 + $0x860] sm:$0xff]  ;;  %v469_v20 = vld [vmem:[#allocation2 + $0x848] sm:$0xff] }
 0x140   :  { %3385 = vmatprep.subr.bf16.mxu0 %v7020_v21  ;;  %3549 = vmatprep.subr.bf16.mxu1 %v7022_v26  ;;  %v473_v21 = vld [vmem:[#allocation2 + $0x868] sm:$0xff]  ;;  %v7075_v26 = vcombine.low %v460_v6, %v464_v9  ;;  %v7083_v35 = vcombine.low %v468_v16, %v472_v19 }
 0x141   :  { %v7086_v31 = vcombine.high %v469_v20, %v473_v21  ;;  %v517_v9 = vld [vmem:[#allocation2 + $0x9c8] sm:$0xff] }
 0x143   :  { %3386 = vmatpush1.bf16.msra.mxu0 %v7019_v28  ;;  %3550 = vmatpush1.bf16.msra.mxu1 %v7021_v29  ;;  %v7084_v28 = vcombine.high %v468_v16, %v472_v19  ;;  %v476_v29 = vld [vmem:[#allocation2 + $0x880] sm:$0xff]  ;;  %v7134_v19 = vcombine.high %v517_v9, %v521_v11 }
 0x144   :  { %3387 = vmatprep.subr.bf16.mxu0 %v7028_v30  ;;  %3551 = vmatprep.subr.bf16.mxu1 %v7030_v34  ;;  %v480_v30 = vld [vmem:[#allocation2 + $0x8a0] sm:$0xff]  ;;  %v8950_v34 = vpack.c.bf16 %v201_v24, %v201_v24 }
 0x145   :  { %v7091_v43 = vcombine.low %v476_v29, %v480_v30  ;;  %v524_v16 = vld [vmem:[#allocation2 + $0xa00] sm:$0xff] }
 0x147   :  { %3388 = vmatpush1.bf16.msra.mxu0 %v7027_v36  ;;  %3552 = vmatpush1.bf16.msra.mxu1 %v7029_v37  ;;  %v7085_v36 = vcombine.low %v469_v20, %v473_v21  ;;  %v7092_v37 = vcombine.high %v476_v29, %v480_v30  ;;  %v529_v20 = vld [vmem:[#allocation2 + $0xa28] sm:$0xff] }
 0x148   :  { %3389 = vmatprep.subr.bf16.mxu0 %v7036_v38  ;;  %3553 = vmatprep.subr.bf16.mxu1 %v7038_v42  ;;  %v484_v38 = vld [vmem:[#allocation2 + $0x8c0] sm:$0xff]  ;;  %v489_v42 = vld [vmem:[#allocation2 + $0x8e8] sm:$0xff] }
 0x149   :  { %v7102_v49 = vcombine.high %v485_v40, %v489_v42  ;;  %v7099_v51 = vcombine.low %v484_v38, %v488_v39  ;;  %v537_v30 = vld [vmem:[#allocation2 + $0xa68] sm:$0xff] }
 0x14b   :  { %3390 = vmatpush1.bf16.msra.mxu0 %v7035_v44  ;;  %3554 = vmatpush1.bf16.msra.mxu1 %v7037_v45  ;;  %v7093_v44 = vcombine.low %v477_v32, %v481_v33  ;;  %v7100_v45 = vcombine.high %v484_v38, %v488_v39  ;;  %v545_v39 = vld [vmem:[#allocation2 + $0xaa8] sm:$0xff] }
 0x14c   :  { %3391 = vmatprep.subr.bf16.mxu0 %v7044_v46  ;;  %3555 = vmatprep.subr.bf16.mxu1 %v7046_v50  ;;  %v492_v46 = vld [vmem:[#allocation2 + $0x900] sm:$0xff]  ;;  %v497_v50 = vld [vmem:[#allocation2 + $0x928] sm:$0xff] }
 0x14d   :  { %v7110_v58 = vcombine.high %v493_v48, %v497_v50  ;;  %v7107_v60 = vcombine.low %v492_v46, %v496_v47 }
 0x14f   :  { %3392 = vmatpush1.bf16.msra.mxu0 %v7043_v52  ;;  %3556 = vmatpush1.bf16.msra.mxu1 %v7045_v53  ;;  %v7101_v52 = vcombine.low %v485_v40, %v489_v42  ;;  %v7108_v53 = vcombine.high %v492_v46, %v496_v47  ;;  %v553_v47 = vld [vmem:[#allocation2 + $0xae8] sm:$0xff] }
 0x150   :  { %3393 = vmatprep.subr.bf16.mxu0 %v7052_v54  ;;  %3557 = vmatprep.subr.bf16.mxu1 %v7054_v59  ;;  %v500_v54 = vld [vmem:[#allocation2 + $0x940] sm:$0xff]  ;;  %v505_v59 = vld [vmem:[#allocation2 + $0x968] sm:$0xff] }
 0x151   :  { %v7118_v2 = vcombine.high %v501_v56, %v505_v59  ;;  %v7115_v4 = vcombine.low %v500_v54, %v504_v55 }
 0x153   :  { %3394 = vmatpush1.bf16.msra.mxu0 %v7051_v61  ;;  %3558 = vmatpush1.bf16.msra.mxu1 %v7053_v62  ;;  %v7109_v61 = vcombine.low %v493_v48, %v497_v50  ;;  %v7116_v62 = vcombine.high %v500_v54, %v504_v55  ;;  %v561_v55 = vld [vmem:[#allocation2 + $0xb28] sm:$0xff] }
 0x154   :  { %3395 = vmatprep.subr.bf16.mxu0 %v7060_v63  ;;  %3559 = vmatprep.subr.bf16.mxu1 %v7062_v3  ;;  %v508_v63 = vld [vmem:[#allocation2 + $0x980] sm:$0xff]  ;;  %v513_v3 = vld [vmem:[#allocation2 + $0x9a8] sm:$0xff] }
 0x155   :  { %v7124_v6 = vcombine.high %v508_v63, %v512_v0  ;;  %v7126_v10 = vcombine.high %v509_v1, %v513_v3  ;;  %v7125_v14 = vcombine.low %v509_v1, %v513_v3 }
 0x157   :  { %3396 = vmatpush1.bf16.msra.mxu0 %v7059_v5  ;;  %3560 = vmatpush1.bf16.msra.mxu1 %v7061_v7  ;;  %v7117_v5 = vcombine.low %v501_v56, %v505_v59  ;;  %v516_v7 = vld [vmem:[#allocation2 + $0x9c0] sm:$0xff] }
 0x158   :  { %3397 = vmatprep.subr.bf16.mxu0 %v7068_v8  ;;  %3561 = vmatprep.subr.bf16.mxu1 %v7070_v13  ;;  %v520_v8 = vld [vmem:[#allocation2 + $0x9e0] sm:$0xff]  ;;  %v7123_v13 = vcombine.low %v508_v63, %v512_v0  ;;  %v569_v0 = vld [vmem:[#allocation2 + $0xb68] sm:$0xff] }
 0x159   :  { %v7131_v21 = vcombine.low %v516_v7, %v520_v8 }
 0x15b   :  { %3398 = vmatpush1.bf16.msra.mxu0 %v7067_v15  ;;  %3562 = vmatpush1.bf16.msra.mxu1 %v7069_v17  ;;  %v7132_v15 = vcombine.high %v516_v7, %v520_v8  ;;  %v528_v17 = vld [vmem:[#allocation2 + $0xa20] sm:$0xff]  ;;  %v577_v8 = vld [vmem:[#allocation2 + $0xba8] sm:$0xff] }
 0x15c   :  { %3408 = vmatprep.subr.bf16.mxu0 %v7076_v18  ;;  %3572 = vmatprep.subr.bf16.mxu1 %v7078_v22  ;;  %v525_v18 = vld [vmem:[#allocation2 + $0xa08] sm:$0xff]  ;;  %v7133_v22 = vcombine.low %v517_v9, %v521_v11  ;;  %v7140_v24 = vcombine.high %v524_v16, %v528_v17 }
 0x15d   :  { %v7142_v29 = vcombine.high %v525_v18, %v529_v20  ;;  %v7141_v32 = vcombine.low %v525_v18, %v529_v20 }
 0x15e   :  { %3400 = vmatmul.mubr.bf16.vlgmr.msra.gmra.mrb[0].mxu0 %v8948_v25  ;;  %3564 = vmatmul.mubr.bf16.vlgmr.msra.gmra.mrb[0].mxu1 %v8948_v25 }
 0x15f   :  { %3409 = vmatpush1.bf16.msra.mxu0 %v7075_v26  ;;  %3573 = vmatpush1.bf16.msra.mxu1 %v7077_v27  ;;  %v532_v26 = vld [vmem:[#allocation2 + $0xa40] sm:$0xff] }
 0x160   :  { %3410 = vmatprep.subr.bf16.mxu0 %v7084_v28  ;;  %3574 = vmatprep.subr.bf16.mxu1 %v7086_v31  ;;  %v536_v27 = vld [vmem:[#allocation2 + $0xa60] sm:$0xff]  ;;  %v533_v28 = vld [vmem:[#allocation2 + $0xa48] sm:$0xff]  ;;  %v7139_v31 = vcombine.low %v524_v16, %v528_v17 }
 0x161   :  { %3440 = vmatprep.mubr.bf16.mxu0 %v8950_v34  ;;  %3604 = vmatprep.mubr.bf16.mxu1 %v8950_v34  ;;  %v7148_v33 = vcombine.high %v532_v26, %v536_v27  ;;  %v7150_v38 = vcombine.high %v533_v28, %v537_v30  ;;  %v7147_v40 = vcombine.low %v532_v26, %v536_v27  ;;  %v585_v17 = vld [vmem:[#allocation2 + $0xbe8] sm:$0xff] }
 0x162   :  { %v593_v26 = vld [vmem:[#allocation2 + $0xc28] sm:$0xff] }
 0x163   :  { %3411 = vmatpush1.bf16.msra.mxu0 %v7083_v35  ;;  %3575 = vmatpush1.bf16.msra.mxu1 %v7085_v36  ;;  %v540_v35 = vld [vmem:[#allocation2 + $0xa80] sm:$0xff] }
 0x164   :  { %3412 = vmatprep.subr.bf16.mxu0 %v7092_v37  ;;  %3576 = vmatprep.subr.bf16.mxu1 %v7094_v41  ;;  %v544_v36 = vld [vmem:[#allocation2 + $0xaa0] sm:$0xff]  ;;  %v541_v37 = vld [vmem:[#allocation2 + $0xa88] sm:$0xff]  ;;  %v7149_v41 = vcombine.low %v533_v28, %v537_v30 }
 0x165   :  { %v7156_v42 = vcombine.high %v540_v35, %v544_v36  ;;  %v7158_v46 = vcombine.high %v541_v37, %v545_v39  ;;  %v7155_v48 = vcombine.low %v540_v35, %v544_v36  ;;  %v200_v28 = vld [vmem:[%s9077_s0 + $0x20] sm:$0xff]  ;;  %v597_v35 = vld [vmem:[#allocation2 + $0xc48] sm:$0xff] }
 0x166   :  { %v596_v30 = vld [vmem:[#allocation2 + $0xc40] sm:$0xff]  ;;  %v601_v36 = vld [vmem:[#allocation2 + $0xc68] sm:$0xff] }
 0x167   :  { %3413 = vmatpush1.bf16.msra.mxu0 %v7091_v43  ;;  %3577 = vmatpush1.bf16.msra.mxu1 %v7093_v44  ;;  %v548_v43 = vld [vmem:[#allocation2 + $0xac0] sm:$0xff] }
 0x168   :  { %3414 = vmatprep.subr.bf16.mxu0 %v7100_v45  ;;  %3578 = vmatprep.subr.bf16.mxu1 %v7102_v49  ;;  %v552_v44 = vld [vmem:[#allocation2 + $0xae0] sm:$0xff]  ;;  %v549_v45 = vld [vmem:[#allocation2 + $0xac8] sm:$0xff]  ;;  %v7157_v49 = vcombine.low %v541_v37, %v545_v39  ;;  %v8962_v39 = vpack.c.bf16 %v200_v28, %v200_v28 }
 0x169   :  { %v7164_v50 = vcombine.high %v548_v43, %v552_v44  ;;  %v7166_v54 = vcombine.high %v549_v45, %v553_v47  ;;  %v7163_v56 = vcombine.low %v548_v43, %v552_v44  ;;  %v604_v43 = vld [vmem:[#allocation2 + $0xc80] sm:$0xff]  ;;  %v649_v28 = vld [vmem:[#allocation2 + $0xde8] sm:$0xff] }
 0x16a   :  { %v608_v44 = vld [vmem:[#allocation2 + $0xca0] sm:$0xff] }
 0x16b   :  { %3415 = vmatpush1.bf16.msra.mxu0 %v7099_v51  ;;  %3579 = vmatpush1.bf16.msra.mxu1 %v7101_v52  ;;  %v556_v51 = vld [vmem:[#allocation2 + $0xb00] sm:$0xff] }
 0x16c   :  { %3416 = vmatprep.subr.bf16.mxu0 %v7108_v53  ;;  %3580 = vmatprep.subr.bf16.mxu1 %v7110_v58  ;;  %v560_v52 = vld [vmem:[#allocation2 + $0xb20] sm:$0xff]  ;;  %v557_v53 = vld [vmem:[#allocation2 + $0xb08] sm:$0xff]  ;;  %v7165_v58 = vcombine.low %v549_v45, %v553_v47 }
 0x16d   :  { %v7172_v59 = vcombine.high %v556_v51, %v560_v52  ;;  %v7174_v63 = vcombine.high %v557_v53, %v561_v55  ;;  %v7171_v1 = vcombine.low %v556_v51, %v560_v52  ;;  %v605_v45 = vld [vmem:[#allocation2 + $0xc88] sm:$0xff]  ;;  %v7220_v51 = vcombine.high %v604_v43, %v608_v44  ;;  %v612_v52 = vld [vmem:[#allocation2 + $0xcc0] sm:$0xff] }
 0x16e   :  { %v609_v47 = vld [vmem:[#allocation2 + $0xca8] sm:$0xff] }
 0x16f   :  { %3417 = vmatpush1.bf16.msra.mxu0 %v7107_v60  ;;  %3581 = vmatpush1.bf16.msra.mxu1 %v7109_v61  ;;  %v564_v60 = vld [vmem:[#allocation2 + $0xb40] sm:$0xff] }
 0x170   :  { %3418 = vmatprep.subr.bf16.mxu0 %v7116_v62  ;;  %3582 = vmatprep.subr.bf16.mxu1 %v7118_v2  ;;  %v568_v61 = vld [vmem:[#allocation2 + $0xb60] sm:$0xff]  ;;  %v565_v62 = vld [vmem:[#allocation2 + $0xb48] sm:$0xff]  ;;  %v7173_v2 = vcombine.low %v557_v53, %v561_v55  ;;  %v7222_v55 = vcombine.high %v605_v45, %v609_v47 }
 0x171   :  { %v7180_v3 = vcombine.high %v564_v60, %v568_v61  ;;  %v7182_v7 = vcombine.high %v565_v62, %v569_v0  ;;  %v7179_v9 = vcombine.low %v564_v60, %v568_v61  ;;  %v616_v53 = vld [vmem:[#allocation2 + $0xce0] sm:$0xff] }
 0x172   :  { %v7228_v60 = vcombine.high %v612_v52, %v616_v53  ;;  %v620_v61 = vld [vmem:[#allocation2 + $0xd00] sm:$0xff] }
 0x173   :  { %3419 = vmatpush1.bf16.msra.mxu0 %v7115_v4  ;;  %3583 = vmatpush1.bf16.msra.mxu1 %v7117_v5  ;;  %v572_v4 = vld [vmem:[#allocation2 + $0xb80] sm:$0xff] }
 0x174   :  { %3420 = vmatprep.subr.bf16.mxu0 %v7124_v6  ;;  %3584 = vmatprep.subr.bf16.mxu1 %v7126_v10  ;;  %v576_v5 = vld [vmem:[#allocation2 + $0xba0] sm:$0xff]  ;;  %v573_v6 = vld [vmem:[#allocation2 + $0xb88] sm:$0xff]  ;;  %v7181_v10 = vcombine.low %v565_v62, %v569_v0 }
 0x175   :  { %v7188_v11 = vcombine.high %v572_v4, %v576_v5  ;;  %v7190_v16 = vcombine.high %v573_v6, %v577_v8  ;;  %v7187_v18 = vcombine.low %v572_v4, %v576_v5  ;;  %v7189_v20 = vcombine.low %v573_v6, %v577_v8  ;;  %v624_v62 = vld [vmem:[#allocation2 + $0xd20] sm:$0xff] }
 0x176   :  { %v7236_v4 = vcombine.high %v620_v61, %v624_v62  ;;  %v628_v5 = vld [vmem:[#allocation2 + $0xd40] sm:$0xff] }
 0x177   :  { %3421 = vmatpush1.bf16.msra.mxu0 %v7123_v13  ;;  %3585 = vmatpush1.bf16.msra.mxu1 %v7125_v14  ;;  %v580_v13 = vld [vmem:[#allocation2 + $0xbc0] sm:$0xff] }
 0x178   :  { %3422 = vmatprep.subr.bf16.mxu0 %v7132_v15  ;;  %3586 = vmatprep.subr.bf16.mxu1 %v7134_v19  ;;  %v584_v14 = vld [vmem:[#allocation2 + $0xbe0] sm:$0xff]  ;;  %v581_v15 = vld [vmem:[#allocation2 + $0xbc8] sm:$0xff] }
 0x179   :  { %v588_v19 = vld [vmem:[#allocation2 + $0xc00] sm:$0xff]  ;;  %v7198_v27 = vcombine.high %v581_v15, %v585_v17 }
 0x17a   :  { %v632_v6 = vld [vmem:[#allocation2 + $0xd60] sm:$0xff] }
 0x17b   :  { %3423 = vmatpush1.bf16.msra.mxu0 %v7131_v21  ;;  %3587 = vmatpush1.bf16.msra.mxu1 %v7133_v22  ;;  %v7196_v21 = vcombine.high %v580_v13, %v584_v14  ;;  %v592_v22 = vld [vmem:[#allocation2 + $0xc20] sm:$0xff] }
 0x17c   :  { %3424 = vmatprep.subr.bf16.mxu0 %v7140_v24  ;;  %3588 = vmatprep.subr.bf16.mxu1 %v7142_v29  ;;  %v589_v24 = vld [vmem:[#allocation2 + $0xc08] sm:$0xff]  ;;  %v7195_v29 = vcombine.low %v580_v13, %v584_v14  ;;  %v7244_v13 = vcombine.high %v628_v5, %v632_v6  ;;  %v636_v14 = vld [vmem:[#allocation2 + $0xd80] sm:$0xff] }
 0x17d   :  { %v7206_v37 = vcombine.high %v589_v24, %v593_v26 }
 0x17f   :  { %3425 = vmatpush1.bf16.msra.mxu0 %v7139_v31  ;;  %3589 = vmatpush1.bf16.msra.mxu1 %v7141_v32  ;;  %v7197_v31 = vcombine.low %v581_v15, %v585_v17  ;;  %v7204_v32 = vcombine.high %v588_v19, %v592_v22  ;;  %v640_v15 = vld [vmem:[#allocation2 + $0xda0] sm:$0xff] }
 0x180   :  { %3426 = vmatprep.subr.bf16.mxu0 %v7148_v33  ;;  %3590 = vmatprep.subr.bf16.mxu1 %v7150_v38  ;;  %v600_v33 = vld [vmem:[#allocation2 + $0xc60] sm:$0xff]  ;;  %v203_v38 = vld [vmem:[%s9077_s0 + $0x38] sm:$0xff] }
 0x183   :  { %3427 = vmatpush1.bf16.msra.mxu0 %v7147_v40  ;;  %3591 = vmatpush1.bf16.msra.mxu1 %v7149_v41  ;;  %v7203_v40 = vcombine.low %v588_v19, %v592_v22  ;;  %v7205_v41 = vcombine.low %v589_v24, %v593_v26  ;;  %v7243_v19 = vcombine.low %v628_v5, %v632_v6  ;;  %v644_v22 = vld [vmem:[#allocation2 + $0xdc0] sm:$0xff]  ;;  %v645_v26 = vld [vmem:[#allocation2 + $0xdc8] sm:$0xff] }
 0x184   :  { %3428 = vmatprep.subr.bf16.mxu0 %v7156_v42  ;;  %3592 = vmatprep.subr.bf16.mxu1 %v7158_v46  ;;  %v7212_v42 = vcombine.high %v596_v30, %v600_v33  ;;  %v7214_v46 = vcombine.high %v597_v35, %v601_v36  ;;  %v648_v24 = vld [vmem:[#allocation2 + $0xde0] sm:$0xff]  ;;  %v685_v6 = vld [vmem:[#allocation2 + $0xf08] sm:$0xff] }
 0x185   :  { %v688_v5 = vld [vmem:[#allocation2 + $0xf20] sm:$0xff] }
 0x187   :  { %3429 = vmatpush1.bf16.msra.mxu0 %v7155_v48  ;;  %3593 = vmatpush1.bf16.msra.mxu1 %v7157_v49  ;;  %v8964_v48 = vpack.c.bf16 %v203_v38, %v203_v38  ;;  %v7211_v49 = vcombine.low %v596_v30, %v600_v33  ;;  %v656_v33 = vld [vmem:[#allocation2 + $0xe20] sm:$0xff]  ;;  %v7259_v38 = vcombine.low %v644_v22, %v648_v24 }
 0x188   :  { %3430 = vmatprep.subr.bf16.mxu0 %v7164_v50  ;;  %3594 = vmatprep.subr.bf16.mxu1 %v7166_v54  ;;  %v7213_v50 = vcombine.low %v597_v35, %v601_v36  ;;  %v613_v54 = vld [vmem:[#allocation2 + $0xcc8] sm:$0xff]  ;;  %v7262_v36 = vcombine.high %v645_v26, %v649_v28 }
 0x189   :  { %v653_v35 = vld [vmem:[#allocation2 + $0xe08] sm:$0xff] }
 0x18b   :  { %3431 = vmatpush1.bf16.msra.mxu0 %v7163_v56  ;;  %3595 = vmatpush1.bf16.msra.mxu1 %v7165_v58  ;;  %v617_v56 = vld [vmem:[#allocation2 + $0xce8] sm:$0xff]  ;;  %v7219_v58 = vcombine.low %v604_v43, %v608_v44  ;;  %v664_v43 = vld [vmem:[#allocation2 + $0xe60] sm:$0xff] }
 0x18c   :  { %3432 = vmatprep.subr.bf16.mxu0 %v7172_v59  ;;  %3596 = vmatprep.subr.bf16.mxu1 %v7174_v63  ;;  %v7221_v59 = vcombine.low %v605_v45, %v609_v47  ;;  %v621_v63 = vld [vmem:[#allocation2 + $0xd08] sm:$0xff]  ;;  %v7230_v0 = vcombine.high %v613_v54, %v617_v56 }
 0x18d   :  { %v661_v44 = vld [vmem:[#allocation2 + $0xe48] sm:$0xff] }
 0x18f   :  { %3433 = vmatpush1.bf16.msra.mxu0 %v7171_v1  ;;  %3597 = vmatpush1.bf16.msra.mxu1 %v7173_v2  ;;  %v625_v1 = vld [vmem:[#allocation2 + $0xd28] sm:$0xff]  ;;  %v7227_v2 = vcombine.low %v612_v52, %v616_v53  ;;  %v672_v52 = vld [vmem:[#allocation2 + $0xea0] sm:$0xff] }
 0x190   :  { %3434 = vmatprep.subr.bf16.mxu0 %v7180_v3  ;;  %3598 = vmatprep.subr.bf16.mxu1 %v7182_v7  ;;  %v7229_v3 = vcombine.low %v613_v54, %v617_v56  ;;  %v629_v7 = vld [vmem:[#allocation2 + $0xd48] sm:$0xff]  ;;  %v7238_v8 = vcombine.high %v621_v63, %v625_v1 }
 0x191   :  { %v669_v53 = vld [vmem:[#allocation2 + $0xe88] sm:$0xff] }
 0x193   :  { %3435 = vmatpush1.bf16.msra.mxu0 %v7179_v9  ;;  %3599 = vmatpush1.bf16.msra.mxu1 %v7181_v10  ;;  %v633_v9 = vld [vmem:[#allocation2 + $0xd68] sm:$0xff]  ;;  %v7235_v10 = vcombine.low %v620_v61, %v624_v62  ;;  %v680_v61 = vld [vmem:[#allocation2 + $0xee0] sm:$0xff] }
 0x194   :  { %3436 = vmatprep.subr.bf16.mxu0 %v7188_v11  ;;  %3600 = vmatprep.subr.bf16.mxu1 %v7190_v16  ;;  %v7237_v11 = vcombine.low %v621_v63, %v625_v1  ;;  %v637_v16 = vld [vmem:[#allocation2 + $0xd88] sm:$0xff]  ;;  %v7246_v17 = vcombine.high %v629_v7, %v633_v9 }
 0x195   :  { %v677_v62 = vld [vmem:[#allocation2 + $0xec8] sm:$0xff] }
 0x197   :  { %3437 = vmatpush1.bf16.msra.mxu0 %v7187_v18  ;;  %3601 = vmatpush1.bf16.msra.mxu1 %v7189_v20  ;;  %v641_v18 = vld [vmem:[#allocation2 + $0xda8] sm:$0xff]  ;;  %v7245_v20 = vcombine.low %v629_v7, %v633_v9 }
 0x198   :  { %3438 = vmatprep.subr.bf16.mxu0 %v7196_v21  ;;  %3602 = vmatprep.subr.bf16.mxu1 %v7198_v27  ;;  %v7252_v21 = vcombine.high %v636_v14, %v640_v15  ;;  %v7254_v27 = vcombine.high %v637_v16, %v641_v18  ;;  %v7253_v30 = vcombine.low %v637_v16, %v641_v18 }
 0x19b   :  { %3439 = vmatpush1.bf16.msra.mxu0 %v7195_v29  ;;  %3603 = vmatpush1.bf16.msra.mxu1 %v7197_v31  ;;  %v7251_v29 = vcombine.low %v636_v14, %v640_v15  ;;  %v7260_v31 = vcombine.high %v644_v22, %v648_v24  ;;  %v696_v14 = vld [vmem:[#allocation2 + $0xf60] sm:$0xff]  ;;  %v693_v15 = vld [vmem:[#allocation2 + $0xf48] sm:$0xff] }
 0x19c   :  { %3449 = vmatprep.subr.bf16.mxu0 %v7204_v32  ;;  %3613 = vmatprep.subr.bf16.mxu1 %v7206_v37  ;;  %v652_v32 = vld [vmem:[#allocation2 + $0xe00] sm:$0xff]  ;;  %v657_v37 = vld [vmem:[#allocation2 + $0xe28] sm:$0xff] }
 0x19d   :  { %v7270_v45 = vcombine.high %v653_v35, %v657_v37  ;;  %v7267_v47 = vcombine.low %v652_v32, %v656_v33  ;;  %v704_v22 = vld [vmem:[#allocation2 + $0xfa0] sm:$0xff]  ;;  %v701_v24 = vld [vmem:[#allocation2 + $0xf88] sm:$0xff] }
 0x19e   :  { %3441 = vmatmul.mubr.bf16.vlgmr.msra.gmra.mrb[0].mxu0 %v8962_v39  ;;  %3605 = vmatmul.mubr.bf16.vlgmr.msra.gmra.mrb[0].mxu1 %v8962_v39 }
 0x19f   :  { %3450 = vmatpush1.bf16.msra.mxu0 %v7203_v40  ;;  %3614 = vmatpush1.bf16.msra.mxu1 %v7205_v41  ;;  %v7261_v40 = vcombine.low %v645_v26, %v649_v28  ;;  %v7268_v41 = vcombine.high %v652_v32, %v656_v33  ;;  %v712_v32 = vld [vmem:[#allocation2 + $0xfe0] sm:$0xff]  ;;  %v709_v33 = vld [vmem:[#allocation2 + $0xfc8] sm:$0xff] }
 0x1a0   :  { %3451 = vmatprep.subr.bf16.mxu0 %v7212_v42  ;;  %3615 = vmatprep.subr.bf16.mxu1 %v7214_v46  ;;  %v660_v42 = vld [vmem:[#allocation2 + $0xe40] sm:$0xff]  ;;  %v665_v46 = vld [vmem:[#allocation2 + $0xe68] sm:$0xff] }
 0x1a1   :  { %3481 = vmatprep.mubr.bf16.mxu0 %v8964_v48  ;;  %3645 = vmatprep.mubr.bf16.mxu1 %v8964_v48  ;;  %v7278_v54 = vcombine.high %v661_v44, %v665_v46  ;;  %v7275_v56 = vcombine.low %v660_v42, %v664_v43 }
 0x1a3   :  { %3452 = vmatpush1.bf16.msra.mxu0 %v7211_v49  ;;  %3616 = vmatpush1.bf16.msra.mxu1 %v7213_v50  ;;  %v7269_v49 = vcombine.low %v653_v35, %v657_v37  ;;  %v7276_v50 = vcombine.high %v660_v42, %v664_v43  ;;  %v210_v42 = vld [vmem:[#allocation2 + $0x30] sm:$0xff]  ;;  %v207_v43 = vld [vmem:[#allocation2 + $0x18] sm:$0xff] }
 0x1a4   :  { %3453 = vmatprep.subr.bf16.mxu0 %v7220_v51  ;;  %3617 = vmatprep.subr.bf16.mxu1 %v7222_v55  ;;  %v668_v51 = vld [vmem:[#allocation2 + $0xe80] sm:$0xff]  ;;  %v673_v55 = vld [vmem:[#allocation2 + $0xea8] sm:$0xff] }
 0x1a5   :  { %v7286_v63 = vcombine.high %v669_v53, %v673_v55  ;;  %v7283_v1 = vcombine.low %v668_v51, %v672_v52 }
 0x1a7   :  { %3454 = vmatpush1.bf16.msra.mxu0 %v7219_v58  ;;  %3618 = vmatpush1.bf16.msra.mxu1 %v7221_v59  ;;  %v7277_v58 = vcombine.low %v661_v44, %v665_v46  ;;  %v7284_v59 = vcombine.high %v668_v51, %v672_v52  ;;  %v211_v46 = vld [vmem:[#allocation2 + $0x38] sm:$0xff]  ;;  %v214_v51 = vld [vmem:[#allocation2 + $0x50] sm:$0xff] }
 0x1a8   :  { %3455 = vmatprep.subr.bf16.mxu0 %v7228_v60  ;;  %3619 = vmatprep.subr.bf16.mxu1 %v7230_v0  ;;  %v676_v60 = vld [vmem:[#allocation2 + $0xec0] sm:$0xff]  ;;  %v681_v0 = vld [vmem:[#allocation2 + $0xee8] sm:$0xff]  ;;  %v218_v52 = vld [vmem:[#allocation2 + $0x70] sm:$0xff] }
 0x1a9   :  { %v7294_v7 = vcombine.high %v677_v62, %v681_v0  ;;  %v7291_v9 = vcombine.low %v676_v60, %v680_v61 }
 0x1ab   :  { %3456 = vmatpush1.bf16.msra.mxu0 %v7227_v2  ;;  %3620 = vmatpush1.bf16.msra.mxu1 %v7229_v3  ;;  %v7285_v2 = vcombine.low %v669_v53, %v673_v55  ;;  %v7292_v3 = vcombine.high %v676_v60, %v680_v61  ;;  %v215_v53 = vld [vmem:[#allocation2 + $0x58] sm:$0xff]  ;;  %v6832_v60 = vcombine.high %v214_v51, %v218_v52  ;;  %v222_v61 = vld [vmem:[#allocation2 + $0x90] sm:$0xff] }
 0x1ac   :  { %3457 = vmatprep.subr.bf16.mxu0 %v7236_v4  ;;  %3621 = vmatprep.subr.bf16.mxu1 %v7238_v8  ;;  %v684_v4 = vld [vmem:[#allocation2 + $0xf00] sm:$0xff]  ;;  %v689_v8 = vld [vmem:[#allocation2 + $0xf28] sm:$0xff]  ;;  %v219_v55 = vld [vmem:[#allocation2 + $0x78] sm:$0xff] }
 0x1ad   :  { %v7302_v16 = vcombine.high %v685_v6, %v689_v8  ;;  %v7299_v18 = vcombine.low %v684_v4, %v688_v5 }
 0x1af   :  { %3458 = vmatpush1.bf16.msra.mxu0 %v7235_v10  ;;  %3622 = vmatpush1.bf16.msra.mxu1 %v7237_v11  ;;  %v7293_v10 = vcombine.low %v677_v62, %v681_v0  ;;  %v7300_v11 = vcombine.high %v684_v4, %v688_v5  ;;  %v226_v62 = vld [vmem:[#allocation2 + $0xb0] sm:$0xff]  ;;  %v6834_v0 = vcombine.high %v215_v53, %v219_v55 }
 0x1b0   :  { %3459 = vmatprep.subr.bf16.mxu0 %v7244_v13  ;;  %3623 = vmatprep.subr.bf16.mxu1 %v7246_v17  ;;  %v692_v13 = vld [vmem:[#allocation2 + $0xf40] sm:$0xff]  ;;  %v697_v17 = vld [vmem:[#allocation2 + $0xf68] sm:$0xff]  ;;  %v6840_v4 = vcombine.high %v222_v61, %v226_v62 }
 0x1b1   :  { %v7310_v26 = vcombine.high %v693_v15, %v697_v17  ;;  %v7307_v28 = vcombine.low %v692_v13, %v696_v14 }
 0x1b3   :  { %3460 = vmatpush1.bf16.msra.mxu0 %v7243_v19  ;;  %3624 = vmatpush1.bf16.msra.mxu1 %v7245_v20  ;;  %v7301_v19 = vcombine.low %v685_v6, %v689_v8  ;;  %v7308_v20 = vcombine.high %v692_v13, %v696_v14  ;;  %v230_v6 = vld [vmem:[#allocation2 + $0xd0] sm:$0xff]  ;;  %v231_v8 = vld [vmem:[#allocation2 + $0xd8] sm:$0xff] }
 0x1b4   :  { %3461 = vmatprep.subr.bf16.mxu0 %v7252_v21  ;;  %3625 = vmatprep.subr.bf16.mxu1 %v7254_v27  ;;  %v700_v21 = vld [vmem:[#allocation2 + $0xf80] sm:$0xff]  ;;  %v705_v27 = vld [vmem:[#allocation2 + $0xfa8] sm:$0xff] }
 0x1b5   :  { %v7318_v35 = vcombine.high %v701_v24, %v705_v27  ;;  %v7315_v37 = vcombine.low %v700_v21, %v704_v22 }
 0x1b7   :  { %3462 = vmatpush1.bf16.msra.mxu0 %v7251_v29  ;;  %3626 = vmatpush1.bf16.msra.mxu1 %v7253_v30  ;;  %v7309_v29 = vcombine.low %v693_v15, %v697_v17  ;;  %v7316_v30 = vcombine.high %v700_v21, %v704_v22  ;;  %v238_v15 = vld [vmem:[#allocation2 + $0x110] sm:$0xff]  ;;  %v239_v17 = vld [vmem:[#allocation2 + $0x118] sm:$0xff] }
 0x1b8   :  { %3463 = vmatprep.subr.bf16.mxu0 %v7260_v31  ;;  %3627 = vmatprep.subr.bf16.mxu1 %v7262_v36  ;;  %v708_v31 = vld [vmem:[#allocation2 + $0xfc0] sm:$0xff]  ;;  %v713_v36 = vld [vmem:[#allocation2 + $0xfe8] sm:$0xff]  ;;  %v246_v22 = vld [vmem:[#allocation2 + $0x150] sm:$0xff] }
 0x1b9   :  { %v7326_v44 = vcombine.high %v709_v33, %v713_v36 }
 0x1bb   :  { %3464 = vmatpush1.bf16.msra.mxu0 %v7259_v38  ;;  %3628 = vmatpush1.bf16.msra.mxu1 %v7261_v40  ;;  %v7317_v38 = vcombine.low %v701_v24, %v705_v27  ;;  %v7324_v40 = vcombine.high %v708_v31, %v712_v32  ;;  %v250_v24 = vld [vmem:[#allocation2 + $0x170] sm:$0xff]  ;;  %v251_v27 = vld [vmem:[#allocation2 + $0x178] sm:$0xff] }
 0x1bc   :  { %3465 = vmatprep.subr.bf16.mxu0 %v7268_v41  ;;  %3629 = vmatprep.subr.bf16.mxu1 %v7270_v45  ;;  %v206_v41 = vld [vmem:[#allocation2 + $0x10] sm:$0xff] }
 0x1bd   :  { %v202_v45 = vld [vmem:[%s9077_s0 + $0x30] sm:$0xff] }
 0x1bf   :  { %3466 = vmatpush1.bf16.msra.mxu0 %v7267_v47  ;;  %3630 = vmatpush1.bf16.msra.mxu1 %v7269_v49  ;;  %v7323_v47 = vcombine.low %v708_v31, %v712_v32  ;;  %v7325_v49 = vcombine.low %v709_v33, %v713_v36  ;;  %v254_v32 = vld [vmem:[#allocation2 + $0x190] sm:$0xff]  ;;  %v259_v36 = vld [vmem:[#allocation2 + $0x1b8] sm:$0xff] }
 0x1c0   :  { %3467 = vmatprep.subr.bf16.mxu0 %v7276_v50  ;;  %3631 = vmatprep.subr.bf16.mxu1 %v7278_v54  ;;  %v6824_v50 = vcombine.high %v206_v41, %v210_v42  ;;  %v6826_v54 = vcombine.high %v207_v43, %v211_v46  ;;  %v258_v33 = vld [vmem:[#allocation2 + $0x1b0] sm:$0xff] }
 0x1c3   :  { %3468 = vmatpush1.bf16.msra.mxu0 %v7275_v56  ;;  %3632 = vmatpush1.bf16.msra.mxu1 %v7277_v58  ;;  %v8973_v56 = vpack.c.bf16 %v202_v45, %v202_v45  ;;  %v6823_v58 = vcombine.low %v206_v41, %v210_v42  ;;  %v262_v42 = vld [vmem:[#allocation2 + $0x1d0] sm:$0xff]  ;;  %v267_v45 = vld [vmem:[#allocation2 + $0x1f8] sm:$0xff] }
 0x1c4   :  { %3469 = vmatprep.subr.bf16.mxu0 %v7284_v59  ;;  %3633 = vmatprep.subr.bf16.mxu1 %v7286_v63  ;;  %v6825_v59 = vcombine.low %v207_v43, %v211_v46  ;;  %v223_v63 = vld [vmem:[#allocation2 + $0x98] sm:$0xff]  ;;  %v266_v43 = vld [vmem:[#allocation2 + $0x1f0] sm:$0xff]  ;;  %v6871_v46 = vcombine.low %v254_v32, %v258_v33 }
 0x1c7   :  { %3470 = vmatpush1.bf16.msra.mxu0 %v7283_v1  ;;  %3634 = vmatpush1.bf16.msra.mxu1 %v7285_v2  ;;  %v227_v1 = vld [vmem:[#allocation2 + $0xb8] sm:$0xff]  ;;  %v6831_v2 = vcombine.low %v214_v51, %v218_v52  ;;  %v270_v51 = vld [vmem:[#allocation2 + $0x210] sm:$0xff] }
 0x1c8   :  { %3471 = vmatprep.subr.bf16.mxu0 %v7292_v3  ;;  %3635 = vmatprep.subr.bf16.mxu1 %v7294_v7  ;;  %v6833_v3 = vcombine.low %v215_v53, %v219_v55  ;;  %v6842_v5 = vcombine.high %v223_v63, %v227_v1  ;;  %v234_v7 = vld [vmem:[#allocation2 + $0xf0] sm:$0xff]  ;;  %v271_v53 = vld [vmem:[#allocation2 + $0x218] sm:$0xff]  ;;  %v6879_v55 = vcombine.low %v262_v42, %v266_v43 }
 0x1c9   :  { %v6848_v13 = vcombine.high %v230_v6, %v234_v7  ;;  %v274_v52 = vld [vmem:[#allocation2 + $0x230] sm:$0xff] }
 0x1cb   :  { %3472 = vmatpush1.bf16.msra.mxu0 %v7291_v9  ;;  %3636 = vmatpush1.bf16.msra.mxu1 %v7293_v10  ;;  %v235_v9 = vld [vmem:[#allocation2 + $0xf8] sm:$0xff]  ;;  %v6839_v10 = vcombine.low %v222_v61, %v226_v62  ;;  %v278_v61 = vld [vmem:[#allocation2 + $0x250] sm:$0xff] }
 0x1cc   :  { %3473 = vmatprep.subr.bf16.mxu0 %v7300_v11  ;;  %3637 = vmatprep.subr.bf16.mxu1 %v7302_v16  ;;  %v6841_v11 = vcombine.low %v223_v63, %v227_v1  ;;  %v6850_v14 = vcombine.high %v231_v8, %v235_v9  ;;  %v242_v16 = vld [vmem:[#allocation2 + $0x130] sm:$0xff]  ;;  %v279_v63 = vld [vmem:[#allocation2 + $0x258] sm:$0xff]  ;;  %v6887_v1 = vcombine.low %v270_v51, %v274_v52 }
 0x1cd   :  { %v6856_v21 = vcombine.high %v238_v15, %v242_v16  ;;  %v282_v62 = vld [vmem:[#allocation2 + $0x270] sm:$0xff] }
 0x1cf   :  { %3474 = vmatpush1.bf16.msra.mxu0 %v7299_v18  ;;  %3638 = vmatpush1.bf16.msra.mxu1 %v7301_v19  ;;  %v243_v18 = vld [vmem:[#allocation2 + $0x138] sm:$0xff]  ;;  %v6847_v19 = vcombine.low %v230_v6, %v234_v7  ;;  %v290_v6 = vld [vmem:[#allocation2 + $0x2b0] sm:$0xff] }
 0x1d0   :  { %3475 = vmatprep.subr.bf16.mxu0 %v7308_v20  ;;  %3639 = vmatprep.subr.bf16.mxu1 %v7310_v26  ;;  %v6849_v20 = vcombine.low %v231_v8, %v235_v9  ;;  %v247_v26 = vld [vmem:[#allocation2 + $0x158] sm:$0xff]  ;;  %v6895_v9 = vcombine.low %v278_v61, %v282_v62 }
 0x1d1   :  { %v6866_v31 = vcombine.high %v247_v26, %v251_v27  ;;  %v287_v7 = vld [vmem:[#allocation2 + $0x298] sm:$0xff] }
 0x1d2   :  { %v291_v8 = vld [vmem:[#allocation2 + $0x2b8] sm:$0xff] }
 0x1d3   :  { %3476 = vmatpush1.bf16.msra.mxu0 %v7307_v28  ;;  %3640 = vmatpush1.bf16.msra.mxu1 %v7309_v29  ;;  %v6855_v28 = vcombine.low %v238_v15, %v242_v16  ;;  %v6857_v29 = vcombine.low %v239_v17, %v243_v18  ;;  %v298_v15 = vld [vmem:[#allocation2 + $0x2f0] sm:$0xff]  ;;  %v295_v16 = vld [vmem:[#allocation2 + $0x2d8] sm:$0xff] }
 0x1d4   :  { %3477 = vmatprep.subr.bf16.mxu0 %v7316_v30  ;;  %3641 = vmatprep.subr.bf16.mxu1 %v7318_v35  ;;  %v6864_v30 = vcombine.high %v246_v22, %v250_v24  ;;  %v255_v35 = vld [vmem:[#allocation2 + $0x198] sm:$0xff] }
 0x1d5   :  { %v6874_v41 = vcombine.high %v255_v35, %v259_v36 }
 0x1d7   :  { %3478 = vmatpush1.bf16.msra.mxu0 %v7315_v37  ;;  %3642 = vmatpush1.bf16.msra.mxu1 %v7317_v38  ;;  %v6863_v37 = vcombine.low %v246_v22, %v250_v24  ;;  %v6865_v38 = vcombine.low %v247_v26, %v251_v27  ;;  %v306_v22 = vld [vmem:[#allocation2 + $0x330] sm:$0xff]  ;;  %v303_v24 = vld [vmem:[#allocation2 + $0x318] sm:$0xff] }
 0x1d8   :  { %3479 = vmatprep.subr.bf16.mxu0 %v7324_v40  ;;  %3643 = vmatprep.subr.bf16.mxu1 %v7326_v44  ;;  %v6872_v40 = vcombine.high %v254_v32, %v258_v33  ;;  %v263_v44 = vld [vmem:[#allocation2 + $0x1d8] sm:$0xff]  ;;  %v314_v32 = vld [vmem:[#allocation2 + $0x370] sm:$0xff] }
 0x1d9   :  { %v307_v26 = vld [vmem:[#allocation2 + $0x338] sm:$0xff] }
 0x1da   :  { %v311_v33 = vld [vmem:[#allocation2 + $0x358] sm:$0xff] }
 0x1db   :  { %3480 = vmatpush1.bf16.msra.mxu0 %v7323_v47  ;;  %3644 = vmatpush1.bf16.msra.mxu1 %v7325_v49  ;;  %v6873_v47 = vcombine.low %v255_v35, %v259_v36  ;;  %v6880_v49 = vcombine.high %v262_v42, %v266_v43  ;;  %v315_v35 = vld [vmem:[#allocation2 + $0x378] sm:$0xff]  ;;  %v322_v42 = vld [vmem:[#allocation2 + $0x3b0] sm:$0xff] }
 0x1dc   :  { %3654 = vmatprep.subr.bf16.mxu0 %v6824_v50  ;;  %3818 = vmatprep.subr.bf16.mxu1 %v6826_v54  ;;  %v6882_v50 = vcombine.high %v263_v44, %v267_v45  ;;  %v275_v54 = vld [vmem:[#allocation2 + $0x238] sm:$0xff] }
 0x1dd   :  { %v319_v43 = vld [vmem:[#allocation2 + $0x398] sm:$0xff] }
 0x1de   :  { %3482 = vmatmul.mubr.bf16.vlgmr.msra.gmra.mrb[0].mxu0 %v8973_v56  ;;  %3646 = vmatmul.mubr.bf16.vlgmr.msra.gmra.mrb[0].mxu1 %v8973_v56 }
 0x1df   :  { %3655 = vmatpush1.bf16.msra.mxu0 %v6823_v58  ;;  %3819 = vmatpush1.bf16.msra.mxu1 %v6825_v59  ;;  %v6881_v58 = vcombine.low %v263_v44, %v267_v45  ;;  %v6888_v59 = vcombine.high %v270_v51, %v274_v52  ;;  %v323_v44 = vld [vmem:[#allocation2 + $0x3b8] sm:$0xff]  ;;  %v330_v51 = vld [vmem:[#allocation2 + $0x3f0] sm:$0xff] }
 0x1e0   :  { %3656 = vmatprep.subr.bf16.mxu0 %v6832_v60  ;;  %3820 = vmatprep.subr.bf16.mxu1 %v6834_v0  ;;  %v6890_v60 = vcombine.high %v271_v53, %v275_v54  ;;  %v283_v0 = vld [vmem:[#allocation2 + $0x278] sm:$0xff] }
 0x1e1   :  { %3686 = vmatprep.mubr.bf16.mxu0 %v8924_v57  ;;  %3850 = vmatprep.mubr.bf16.mxu1 %v8924_v57  ;;  %v6858_v57 = vcombine.high %v239_v17, %v243_v18  ;;  %v299_v17 = vld [vmem:[#allocation2 + $0x2f8] sm:$0xff] }
 0x1e2   :  { %v327_v52 = vld [vmem:[#allocation2 + $0x3d8] sm:$0xff] }
 0x1e3   :  { %3657 = vmatpush1.bf16.msra.mxu0 %v6831_v2  ;;  %3821 = vmatpush1.bf16.msra.mxu1 %v6833_v3  ;;  %v6889_v2 = vcombine.low %v271_v53, %v275_v54  ;;  %v6896_v3 = vcombine.high %v278_v61, %v282_v62  ;;  %v331_v53 = vld [vmem:[#allocation2 + $0x3f8] sm:$0xff]  ;;  %v338_v61 = vld [vmem:[#allocation2 + $0x430] sm:$0xff] }
 0x1e4   :  { %3658 = vmatprep.subr.bf16.mxu0 %v6840_v4  ;;  %3822 = vmatprep.subr.bf16.mxu1 %v6842_v5  ;;  %v6898_v4 = vcombine.high %v279_v63, %v283_v0  ;;  %v286_v5 = vld [vmem:[#allocation2 + $0x290] sm:$0xff]  ;;  %v335_v62 = vld [vmem:[#allocation2 + $0x418] sm:$0xff] }
 0x1e5   :  { %v6903_v18 = vcombine.low %v286_v5, %v290_v6 }
 0x1e7   :  { %3659 = vmatpush1.bf16.msra.mxu0 %v6839_v10  ;;  %3823 = vmatpush1.bf16.msra.mxu1 %v6841_v11  ;;  %v6897_v10 = vcombine.low %v279_v63, %v283_v0  ;;  %v6904_v11 = vcombine.high %v286_v5, %v290_v6  ;;  %v339_v63 = vld [vmem:[#allocation2 + $0x438] sm:$0xff]  ;;  %v346_v5 = vld [vmem:[#allocation2 + $0x470] sm:$0xff] }
 0x1e8   :  { %3660 = vmatprep.subr.bf16.mxu0 %v6848_v13  ;;  %3824 = vmatprep.subr.bf16.mxu1 %v6850_v14  ;;  %v6906_v13 = vcombine.high %v287_v7, %v291_v8  ;;  %v294_v14 = vld [vmem:[#allocation2 + $0x2d0] sm:$0xff]  ;;  %v343_v6 = vld [vmem:[#allocation2 + $0x458] sm:$0xff] }
 0x1e9   :  { %v6911_v27 = vcombine.low %v294_v14, %v298_v15 }
 0x1eb   :  { %3661 = vmatpush1.bf16.msra.mxu0 %v6847_v19  ;;  %3825 = vmatpush1.bf16.msra.mxu1 %v6849_v20  ;;  %v6905_v19 = vcombine.low %v287_v7, %v291_v8  ;;  %v6912_v20 = vcombine.high %v294_v14, %v298_v15  ;;  %v347_v7 = vld [vmem:[#allocation2 + $0x478] sm:$0xff]  ;;  %v354_v14 = vld [vmem:[#allocation2 + $0x4b0] sm:$0xff] }
 0x1ec   :  { %3662 = vmatprep.subr.bf16.mxu0 %v6856_v21  ;;  %3826 = vmatprep.subr.bf16.mxu1 %v6858_v57  ;;  %v6914_v21 = vcombine.high %v295_v16, %v299_v17  ;;  %v302_v57 = vld [vmem:[#allocation2 + $0x310] sm:$0xff]  ;;  %v351_v15 = vld [vmem:[#allocation2 + $0x498] sm:$0xff] }
 0x1ed   :  { %v6919_v36 = vcombine.low %v302_v57, %v306_v22 }
 0x1ef   :  { %3663 = vmatpush1.bf16.msra.mxu0 %v6855_v28  ;;  %3827 = vmatpush1.bf16.msra.mxu1 %v6857_v29  ;;  %v6913_v28 = vcombine.low %v295_v16, %v299_v17  ;;  %v6920_v29 = vcombine.high %v302_v57, %v306_v22  ;;  %v355_v16 = vld [vmem:[#allocation2 + $0x4b8] sm:$0xff]  ;;  %v362_v57 = vld [vmem:[#allocation2 + $0x4f0] sm:$0xff] }
 0x1f0   :  { %3664 = vmatprep.subr.bf16.mxu0 %v6864_v30  ;;  %3828 = vmatprep.subr.bf16.mxu1 %v6866_v31  ;;  %v6922_v30 = vcombine.high %v303_v24, %v307_v26  ;;  %v310_v31 = vld [vmem:[#allocation2 + $0x350] sm:$0xff]  ;;  %v359_v22 = vld [vmem:[#allocation2 + $0x4d8] sm:$0xff] }
 0x1f1   :  { %v6927_v45 = vcombine.low %v310_v31, %v314_v32 }
 0x1f3   :  { %3665 = vmatpush1.bf16.msra.mxu0 %v6863_v37  ;;  %3829 = vmatpush1.bf16.msra.mxu1 %v6865_v38  ;;  %v6921_v37 = vcombine.low %v303_v24, %v307_v26  ;;  %v6928_v38 = vcombine.high %v310_v31, %v314_v32  ;;  %v363_v24 = vld [vmem:[#allocation2 + $0x4f8] sm:$0xff] }
 0x1f4   :  { %3666 = vmatprep.subr.bf16.mxu0 %v6872_v40  ;;  %3830 = vmatprep.subr.bf16.mxu1 %v6874_v41  ;;  %v6930_v40 = vcombine.high %v311_v33, %v315_v35  ;;  %v318_v41 = vld [vmem:[#allocation2 + $0x390] sm:$0xff]  ;;  %v367_v31 = vld [vmem:[#allocation2 + $0x518] sm:$0xff] }
 0x1f5   :  { %v6935_v54 = vcombine.low %v318_v41, %v322_v42  ;;  %v371_v32 = vld [vmem:[#allocation2 + $0x538] sm:$0xff] }
 0x1f7   :  { %3667 = vmatpush1.bf16.msra.mxu0 %v6871_v46  ;;  %3831 = vmatpush1.bf16.msra.mxu1 %v6873_v47  ;;  %v6929_v46 = vcombine.low %v311_v33, %v315_v35  ;;  %v6936_v47 = vcombine.high %v318_v41, %v322_v42  ;;  %v6977_v35 = vcombine.low %v359_v22, %v363_v24  ;;  %v379_v41 = vld [vmem:[#allocation2 + $0x578] sm:$0xff] }
 0x1f8   :  { %3668 = vmatprep.subr.bf16.mxu0 %v6880_v49  ;;  %3832 = vmatprep.subr.bf16.mxu1 %v6882_v50  ;;  %v6938_v49 = vcombine.high %v319_v43, %v323_v44  ;;  %v326_v50 = vld [vmem:[#allocation2 + $0x3d0] sm:$0xff] }
 0x1f9   :  { %v6943_v0 = vcombine.low %v326_v50, %v330_v51 }
 0x1fb   :  { %3669 = vmatpush1.bf16.msra.mxu0 %v6879_v55  ;;  %3833 = vmatpush1.bf16.msra.mxu1 %v6881_v58  ;;  %v6937_v55 = vcombine.low %v319_v43, %v323_v44  ;;  %v6944_v58 = vcombine.high %v326_v50, %v330_v51  ;;  %v6985_v43 = vcombine.low %v367_v31, %v371_v32  ;;  %v387_v50 = vld [vmem:[#allocation2 + $0x5b8] sm:$0xff] }
 0x1fc   :  { %3670 = vmatprep.subr.bf16.mxu0 %v6888_v59  ;;  %3834 = vmatprep.subr.bf16.mxu1 %v6890_v60  ;;  %v6946_v59 = vcombine.high %v327_v52, %v331_v53  ;;  %v334_v60 = vld [vmem:[#allocation2 + $0x410] sm:$0xff] }
 0x1fd   :  { %v6951_v8 = vcombine.low %v334_v60, %v338_v61 }
 0x1ff   :  { %3671 = vmatpush1.bf16.msra.mxu0 %v6887_v1  ;;  %3835 = vmatpush1.bf16.msra.mxu1 %v6889_v2  ;;  %v6945_v1 = vcombine.low %v327_v52, %v331_v53  ;;  %v6952_v2 = vcombine.high %v334_v60, %v338_v61  ;;  %v395_v60 = vld [vmem:[#allocation2 + $0x5f8] sm:$0xff] }
 0x200   :  { %3672 = vmatprep.subr.bf16.mxu0 %v6896_v3  ;;  %3836 = vmatprep.subr.bf16.mxu1 %v6898_v4  ;;  %v6954_v3 = vcombine.high %v335_v62, %v339_v63  ;;  %v342_v4 = vld [vmem:[#allocation2 + $0x450] sm:$0xff] }
 0x201   :  { %v6959_v17 = vcombine.low %v342_v4, %v346_v5 }
 0x203   :  { %3673 = vmatpush1.bf16.msra.mxu0 %v6895_v9  ;;  %3837 = vmatpush1.bf16.msra.mxu1 %v6897_v10  ;;  %v6953_v9 = vcombine.low %v335_v62, %v339_v63  ;;  %v6960_v10 = vcombine.high %v342_v4, %v346_v5  ;;  %v403_v4 = vld [vmem:[#allocation2 + $0x638] sm:$0xff] }
 0x204   :  { %3674 = vmatprep.subr.bf16.mxu0 %v6904_v11  ;;  %3838 = vmatprep.subr.bf16.mxu1 %v6906_v13  ;;  %v6962_v11 = vcombine.high %v343_v6, %v347_v7  ;;  %v350_v13 = vld [vmem:[#allocation2 + $0x490] sm:$0xff] }
 0x205   :  { %v6967_v26 = vcombine.low %v350_v13, %v354_v14 }
 0x207   :  { %3675 = vmatpush1.bf16.msra.mxu0 %v6903_v18  ;;  %3839 = vmatpush1.bf16.msra.mxu1 %v6905_v19  ;;  %v6961_v18 = vcombine.low %v343_v6, %v347_v7  ;;  %v6968_v19 = vcombine.high %v350_v13, %v354_v14  ;;  %v411_v13 = vld [vmem:[#allocation2 + $0x678] sm:$0xff] }
 0x208   :  { %3676 = vmatprep.subr.bf16.mxu0 %v6912_v20  ;;  %3840 = vmatprep.subr.bf16.mxu1 %v6914_v21  ;;  %v6970_v20 = vcombine.high %v351_v15, %v355_v16  ;;  %v358_v21 = vld [vmem:[#allocation2 + $0x4d0] sm:$0xff] }
 0x209   :  { %v6975_v33 = vcombine.low %v358_v21, %v362_v57 }
 0x20b   :  { %3677 = vmatpush1.bf16.msra.mxu0 %v6911_v27  ;;  %3841 = vmatpush1.bf16.msra.mxu1 %v6913_v28  ;;  %v6976_v27 = vcombine.high %v358_v21, %v362_v57  ;;  %v6978_v28 = vcombine.high %v359_v22, %v363_v24  ;;  %v419_v21 = vld [vmem:[#allocation2 + $0x6b8] sm:$0xff] }
 0x20c   :  { %3678 = vmatprep.subr.bf16.mxu0 %v6920_v29  ;;  %3842 = vmatprep.subr.bf16.mxu1 %v6922_v30  ;;  %v366_v29 = vld [vmem:[#allocation2 + $0x510] sm:$0xff] }
 0x20d   :  { %v370_v30 = vld [vmem:[#allocation2 + $0x530] sm:$0xff] }
 0x20e   :  { %v6983_v42 = vcombine.low %v366_v29, %v370_v30 }
 0x20f   :  { %3679 = vmatpush1.bf16.msra.mxu0 %v6919_v36  ;;  %3843 = vmatpush1.bf16.msra.mxu1 %v6921_v37  ;;  %v6984_v36 = vcombine.high %v366_v29, %v370_v30  ;;  %v374_v37 = vld [vmem:[#allocation2 + $0x550] sm:$0xff]  ;;  %v427_v29 = vld [vmem:[#allocation2 + $0x6f8] sm:$0xff] }
 0x210   :  { %3680 = vmatprep.subr.bf16.mxu0 %v6928_v38  ;;  %3844 = vmatprep.subr.bf16.mxu1 %v6930_v40  ;;  %v378_v38 = vld [vmem:[#allocation2 + $0x570] sm:$0xff]  ;;  %v375_v40 = vld [vmem:[#allocation2 + $0x558] sm:$0xff] }
 0x211   :  { %v6992_v44 = vcombine.high %v374_v37, %v378_v38  ;;  %v6991_v51 = vcombine.low %v374_v37, %v378_v38  ;;  %v6993_v52 = vcombine.low %v375_v40, %v379_v41  ;;  %v435_v37 = vld [vmem:[#allocation2 + $0x738] sm:$0xff] }
 0x213   :  { %3681 = vmatpush1.bf16.msra.mxu0 %v6927_v45  ;;  %3845 = vmatpush1.bf16.msra.mxu1 %v6929_v46  ;;  %v6994_v45 = vcombine.high %v375_v40, %v379_v41  ;;  %v382_v46 = vld [vmem:[#allocation2 + $0x590] sm:$0xff] }
 0x214   :  { %3682 = vmatprep.subr.bf16.mxu0 %v6936_v47  ;;  %3846 = vmatprep.subr.bf16.mxu1 %v6938_v49  ;;  %v386_v47 = vld [vmem:[#allocation2 + $0x5b0] sm:$0xff]  ;;  %v383_v49 = vld [vmem:[#allocation2 + $0x598] sm:$0xff] }
 0x215   :  { %v7000_v53 = vcombine.high %v382_v46, %v386_v47  ;;  %v6999_v61 = vcombine.low %v382_v46, %v386_v47  ;;  %v7001_v62 = vcombine.low %v383_v49, %v387_v50  ;;  %v443_v46 = vld [vmem:[#allocation2 + $0x778] sm:$0xff] }
 0x217   :  { %3683 = vmatpush1.bf16.msra.mxu0 %v6935_v54  ;;  %3847 = vmatpush1.bf16.msra.mxu1 %v6937_v55  ;;  %v7002_v54 = vcombine.high %v383_v49, %v387_v50  ;;  %v390_v55 = vld [vmem:[#allocation2 + $0x5d0] sm:$0xff] }
 0x218   :  { %3684 = vmatprep.subr.bf16.mxu0 %v6944_v58  ;;  %3848 = vmatprep.subr.bf16.mxu1 %v6946_v59  ;;  %v394_v58 = vld [vmem:[#allocation2 + $0x5f0] sm:$0xff]  ;;  %v391_v59 = vld [vmem:[#allocation2 + $0x5d8] sm:$0xff] }
 0x219   :  { %v7008_v63 = vcombine.high %v390_v55, %v394_v58  ;;  %v7007_v5 = vcombine.low %v390_v55, %v394_v58  ;;  %v7009_v6 = vcombine.low %v391_v59, %v395_v60  ;;  %v451_v55 = vld [vmem:[#allocation2 + $0x7b8] sm:$0xff] }
 0x21b   :  { %3685 = vmatpush1.bf16.msra.mxu0 %v6943_v0  ;;  %3849 = vmatpush1.bf16.msra.mxu1 %v6945_v1  ;;  %v7010_v0 = vcombine.high %v391_v59, %v395_v60  ;;  %v398_v1 = vld [vmem:[#allocation2 + $0x610] sm:$0xff] }
 0x21c   :  { %3695 = vmatprep.subr.bf16.mxu0 %v6952_v2  ;;  %3859 = vmatprep.subr.bf16.mxu1 %v6954_v3  ;;  %v402_v2 = vld [vmem:[#allocation2 + $0x630] sm:$0xff]  ;;  %v399_v3 = vld [vmem:[#allocation2 + $0x618] sm:$0xff] }
 0x21d   :  { %v7016_v7 = vcombine.high %v398_v1, %v402_v2  ;;  %v7015_v14 = vcombine.low %v398_v1, %v402_v2  ;;  %v459_v1 = vld [vmem:[#allocation2 + $0x7f8] sm:$0xff] }
 0x21e   :  { %3687 = vmatmul.mubr.bf16.vlgmr.msra.gmra.mrb[4].mxu0 %v8931_v12  ;;  %3851 = vmatmul.mubr.bf16.vlgmr.msra.gmra.mrb[4].mxu1 %v8931_v12  ;;  %v6969_v12 = vcombine.low %v351_v15, %v355_v16  ;;  %v7017_v15 = vcombine.low %v399_v3, %v403_v4 }
 0x21f   :  { %3696 = vmatpush1.bf16.msra.mxu0 %v6951_v8  ;;  %3860 = vmatpush1.bf16.msra.mxu1 %v6953_v9  ;;  %v7018_v8 = vcombine.high %v399_v3, %v403_v4  ;;  %v406_v9 = vld [vmem:[#allocation2 + $0x650] sm:$0xff] }
 0x220   :  { %3697 = vmatprep.subr.bf16.mxu0 %v6960_v10  ;;  %3861 = vmatprep.subr.bf16.mxu1 %v6962_v11  ;;  %v410_v10 = vld [vmem:[#allocation2 + $0x670] sm:$0xff]  ;;  %v407_v11 = vld [vmem:[#allocation2 + $0x658] sm:$0xff] }
 0x221   :  { %3727 = vmatprep.mubr.bf16.mxu0 %v8936_v23  ;;  %3891 = vmatprep.mubr.bf16.mxu1 %v8936_v23  ;;  %v6986_v23 = vcombine.high %v367_v31, %v371_v32  ;;  %v7024_v16 = vcombine.high %v406_v9, %v410_v10  ;;  %v7023_v57 = vcombine.low %v406_v9, %v410_v10  ;;  %v467_v9 = vld [vmem:[#allocation2 + $0x838] sm:$0xff] }
 0x222   :  { %v7025_v22 = vcombine.low %v407_v11, %v411_v13 }
 0x223   :  { %3698 = vmatpush1.bf16.msra.mxu0 %v6959_v17  ;;  %3862 = vmatpush1.bf16.msra.mxu1 %v6961_v18  ;;  %v7026_v17 = vcombine.high %v407_v11, %v411_v13  ;;  %v414_v18 = vld [vmem:[#allocation2 + $0x690] sm:$0xff] }
 0x224   :  { %3699 = vmatprep.subr.bf16.mxu0 %v6968_v19  ;;  %3863 = vmatprep.subr.bf16.mxu1 %v6970_v20  ;;  %v418_v19 = vld [vmem:[#allocation2 + $0x6b0] sm:$0xff]  ;;  %v415_v20 = vld [vmem:[#allocation2 + $0x698] sm:$0xff] }
 0x225   :  { %v7032_v24 = vcombine.high %v414_v18, %v418_v19  ;;  %v7031_v30 = vcombine.low %v414_v18, %v418_v19  ;;  %v7033_v31 = vcombine.low %v415_v20, %v419_v21  ;;  %v475_v18 = vld [vmem:[#allocation2 + $0x878] sm:$0xff] }
 0x227   :  { %3700 = vmatpush1.bf16.msra.mxu0 %v6967_v26  ;;  %3864 = vmatpush1.bf16.msra.mxu1 %v6969_v12  ;;  %v7034_v26 = vcombine.high %v415_v20, %v419_v21  ;;  %v422_v12 = vld [vmem:[#allocation2 + $0x6d0] sm:$0xff] }
 0x228   :  { %3701 = vmatprep.subr.bf16.mxu0 %v6976_v27  ;;  %3865 = vmatprep.subr.bf16.mxu1 %v6978_v28  ;;  %v426_v27 = vld [vmem:[#allocation2 + $0x6f0] sm:$0xff]  ;;  %v423_v28 = vld [vmem:[#allocation2 + $0x6d8] sm:$0xff] }
 0x229   :  { %v7040_v32 = vcombine.high %v422_v12, %v426_v27  ;;  %v7039_v38 = vcombine.low %v422_v12, %v426_v27  ;;  %v7041_v40 = vcombine.low %v423_v28, %v427_v29  ;;  %v483_v12 = vld [vmem:[#allocation2 + $0x8b8] sm:$0xff] }
 0x22b   :  { %3702 = vmatpush1.bf16.msra.mxu0 %v6975_v33  ;;  %3866 = vmatpush1.bf16.msra.mxu1 %v6977_v35  ;;  %v7042_v33 = vcombine.high %v423_v28, %v427_v29  ;;  %v430_v35 = vld [vmem:[#allocation2 + $0x710] sm:$0xff] }
 0x22c   :  { %3703 = vmatprep.subr.bf16.mxu0 %v6984_v36  ;;  %3867 = vmatprep.subr.bf16.mxu1 %v6986_v23  ;;  %v434_v36 = vld [vmem:[#allocation2 + $0x730] sm:$0xff]  ;;  %v431_v23 = vld [vmem:[#allocation2 + $0x718] sm:$0xff] }
 0x22d   :  { %v7048_v41 = vcombine.high %v430_v35, %v434_v36  ;;  %v7047_v47 = vcombine.low %v430_v35, %v434_v36  ;;  %v7049_v49 = vcombine.low %v431_v23, %v435_v37  ;;  %v491_v35 = vld [vmem:[#allocation2 + $0x8f8] sm:$0xff] }
 0x22f   :  { %3704 = vmatpush1.bf16.msra.mxu0 %v6983_v42  ;;  %3868 = vmatpush1.bf16.msra.mxu1 %v6985_v43  ;;  %v7050_v42 = vcombine.high %v431_v23, %v435_v37  ;;  %v438_v43 = vld [vmem:[#allocation2 + $0x750] sm:$0xff] }
 0x230   :  { %3705 = vmatprep.subr.bf16.mxu0 %v6992_v44  ;;  %3869 = vmatprep.subr.bf16.mxu1 %v6994_v45  ;;  %v442_v44 = vld [vmem:[#allocation2 + $0x770] sm:$0xff]  ;;  %v439_v45 = vld [vmem:[#allocation2 + $0x758] sm:$0xff] }
 0x231   :  { %v7056_v50 = vcombine.high %v438_v43, %v442_v44  ;;  %v7055_v58 = vcombine.low %v438_v43, %v442_v44  ;;  %v7057_v59 = vcombine.low %v439_v45, %v443_v46 }
 0x233   :  { %3706 = vmatpush1.bf16.msra.mxu0 %v6991_v51  ;;  %3870 = vmatpush1.bf16.msra.mxu1 %v6993_v52  ;;  %v7058_v51 = vcombine.high %v439_v45, %v443_v46  ;;  %v446_v52 = vld [vmem:[#allocation2 + $0x790] sm:$0xff] }
 0x234   :  { %3707 = vmatprep.subr.bf16.mxu0 %v7000_v53  ;;  %3871 = vmatprep.subr.bf16.mxu1 %v7002_v54  ;;  %v450_v53 = vld [vmem:[#allocation2 + $0x7b0] sm:$0xff]  ;;  %v447_v54 = vld [vmem:[#allocation2 + $0x798] sm:$0xff] }
 0x235   :  { %v7064_v60 = vcombine.high %v446_v52, %v450_v53  ;;  %v7063_v2 = vcombine.low %v446_v52, %v450_v53  ;;  %v7065_v3 = vcombine.low %v447_v54, %v451_v55  ;;  %v502_v46 = vld [vmem:[#allocation2 + $0x950] sm:$0xff] }
 0x237   :  { %3708 = vmatpush1.bf16.msra.mxu0 %v6999_v61  ;;  %3872 = vmatpush1.bf16.msra.mxu1 %v7001_v62  ;;  %v7066_v61 = vcombine.high %v447_v54, %v451_v55  ;;  %v454_v62 = vld [vmem:[#allocation2 + $0x7d0] sm:$0xff] }
 0x238   :  { %3709 = vmatprep.subr.bf16.mxu0 %v7008_v63  ;;  %3873 = vmatprep.subr.bf16.mxu1 %v7010_v0  ;;  %v458_v63 = vld [vmem:[#allocation2 + $0x7f0] sm:$0xff]  ;;  %v455_v0 = vld [vmem:[#allocation2 + $0x7d8] sm:$0xff] }
 0x239   :  { %v7072_v4 = vcombine.high %v454_v62, %v458_v63  ;;  %v7071_v10 = vcombine.low %v454_v62, %v458_v63  ;;  %v7073_v11 = vcombine.low %v455_v0, %v459_v1  ;;  %v510_v55 = vld [vmem:[#allocation2 + $0x990] sm:$0xff] }
 0x23b   :  { %3710 = vmatpush1.bf16.msra.mxu0 %v7007_v5  ;;  %3874 = vmatpush1.bf16.msra.mxu1 %v7009_v6  ;;  %v7074_v5 = vcombine.high %v455_v0, %v459_v1  ;;  %v462_v6 = vld [vmem:[#allocation2 + $0x810] sm:$0xff] }
 0x23c   :  { %3711 = vmatprep.subr.bf16.mxu0 %v7016_v7  ;;  %3875 = vmatprep.subr.bf16.mxu1 %v7018_v8  ;;  %v466_v7 = vld [vmem:[#allocation2 + $0x830] sm:$0xff]  ;;  %v463_v8 = vld [vmem:[#allocation2 + $0x818] sm:$0xff] }
 0x23d   :  { %v7080_v13 = vcombine.high %v462_v6, %v466_v7  ;;  %v7079_v19 = vcombine.low %v462_v6, %v466_v7  ;;  %v7081_v20 = vcombine.low %v463_v8, %v467_v9  ;;  %v518_v1 = vld [vmem:[#allocation2 + $0x9d0] sm:$0xff] }
 0x23f   :  { %3712 = vmatpush1.bf16.msra.mxu0 %v7015_v14  ;;  %3876 = vmatpush1.bf16.msra.mxu1 %v7017_v15  ;;  %v7082_v14 = vcombine.high %v463_v8, %v467_v9  ;;  %v470_v15 = vld [vmem:[#allocation2 + $0x850] sm:$0xff] }
 0x240   :  { %3713 = vmatprep.subr.bf16.mxu0 %v7024_v16  ;;  %3877 = vmatprep.subr.bf16.mxu1 %v7026_v17  ;;  %v474_v16 = vld [vmem:[#allocation2 + $0x870] sm:$0xff]  ;;  %v471_v17 = vld [vmem:[#allocation2 + $0x858] sm:$0xff] }
 0x241   :  { %v7088_v21 = vcombine.high %v470_v15, %v474_v16  ;;  %v7087_v27 = vcombine.low %v470_v15, %v474_v16  ;;  %v7089_v28 = vcombine.low %v471_v17, %v475_v18  ;;  %v526_v9 = vld [vmem:[#allocation2 + $0xa10] sm:$0xff] }
 0x243   :  { %3714 = vmatpush1.bf16.msra.mxu0 %v7023_v57  ;;  %3878 = vmatpush1.bf16.msra.mxu1 %v7025_v22  ;;  %v7090_v57 = vcombine.high %v471_v17, %v475_v18  ;;  %v478_v22 = vld [vmem:[#allocation2 + $0x890] sm:$0xff] }
 0x244   :  { %3715 = vmatprep.subr.bf16.mxu0 %v7032_v24  ;;  %3879 = vmatprep.subr.bf16.mxu1 %v7034_v26  ;;  %v482_v24 = vld [vmem:[#allocation2 + $0x8b0] sm:$0xff]  ;;  %v479_v26 = vld [vmem:[#allocation2 + $0x898] sm:$0xff] }
 0x245   :  { %v7096_v29 = vcombine.high %v478_v22, %v482_v24  ;;  %v7095_v36 = vcombine.low %v478_v22, %v482_v24  ;;  %v534_v18 = vld [vmem:[#allocation2 + $0xa50] sm:$0xff] }
 0x247   :  { %3716 = vmatpush1.bf16.msra.mxu0 %v7031_v30  ;;  %3880 = vmatpush1.bf16.msra.mxu1 %v7033_v31  ;;  %v7098_v30 = vcombine.high %v479_v26, %v483_v12  ;;  %v486_v31 = vld [vmem:[#allocation2 + $0x8d0] sm:$0xff] }
 0x248   :  { %3717 = vmatprep.subr.bf16.mxu0 %v7040_v32  ;;  %3881 = vmatprep.subr.bf16.mxu1 %v7042_v33  ;;  %v490_v32 = vld [vmem:[#allocation2 + $0x8f0] sm:$0xff]  ;;  %v487_v33 = vld [vmem:[#allocation2 + $0x8d8] sm:$0xff] }
 0x249   :  { %v7104_v23 = vcombine.high %v486_v31, %v490_v32  ;;  %v7106_v37 = vcombine.high %v487_v33, %v491_v35  ;;  %v7103_v43 = vcombine.low %v486_v31, %v490_v32  ;;  %v7105_v44 = vcombine.low %v487_v33, %v491_v35  ;;  %v550_v35 = vld [vmem:[#allocation2 + $0xad0] sm:$0xff] }
 0x24b   :  { %3718 = vmatpush1.bf16.msra.mxu0 %v7039_v38  ;;  %3882 = vmatpush1.bf16.msra.mxu1 %v7041_v40  ;;  %v494_v38 = vld [vmem:[#allocation2 + $0x910] sm:$0xff] }
 0x24c   :  { %3719 = vmatprep.subr.bf16.mxu0 %v7048_v41  ;;  %3883 = vmatprep.subr.bf16.mxu1 %v7050_v42  ;;  %v498_v40 = vld [vmem:[#allocation2 + $0x930] sm:$0xff]  ;;  %v495_v41 = vld [vmem:[#allocation2 + $0x918] sm:$0xff] }
 0x24d   :  { %v499_v42 = vld [vmem:[#allocation2 + $0x938] sm:$0xff]  ;;  %v7112_v45 = vcombine.high %v494_v38, %v498_v40 }
 0x24e   :  { %v7113_v52 = vcombine.low %v495_v41, %v499_v42 }
 0x24f   :  { %3720 = vmatpush1.bf16.msra.mxu0 %v7047_v47  ;;  %3884 = vmatpush1.bf16.msra.mxu1 %v7049_v49  ;;  %v506_v47 = vld [vmem:[#allocation2 + $0x970] sm:$0xff]  ;;  %v503_v49 = vld [vmem:[#allocation2 + $0x958] sm:$0xff] }
 0x250   :  { %3721 = vmatprep.subr.bf16.mxu0 %v7056_v50  ;;  %3885 = vmatprep.subr.bf16.mxu1 %v7058_v51  ;;  %v507_v50 = vld [vmem:[#allocation2 + $0x978] sm:$0xff]  ;;  %v7111_v51 = vcombine.low %v494_v38, %v498_v40  ;;  %v7120_v53 = vcombine.high %v502_v46, %v506_v47 }
 0x251   :  { %v7122_v54 = vcombine.high %v503_v49, %v507_v50  ;;  %v7121_v62 = vcombine.low %v503_v49, %v507_v50  ;;  %v566_v50 = vld [vmem:[#allocation2 + $0xb50] sm:$0xff] }
 0x253   :  { %3722 = vmatpush1.bf16.msra.mxu0 %v7055_v58  ;;  %3886 = vmatpush1.bf16.msra.mxu1 %v7057_v59  ;;  %v514_v58 = vld [vmem:[#allocation2 + $0x9b0] sm:$0xff]  ;;  %v511_v59 = vld [vmem:[#allocation2 + $0x998] sm:$0xff] }
 0x254   :  { %3723 = vmatprep.subr.bf16.mxu0 %v7064_v60  ;;  %3887 = vmatprep.subr.bf16.mxu1 %v7066_v61  ;;  %v515_v60 = vld [vmem:[#allocation2 + $0x9b8] sm:$0xff]  ;;  %v7119_v61 = vcombine.low %v502_v46, %v506_v47  ;;  %v7128_v63 = vcombine.high %v510_v55, %v514_v58 }
 0x255   :  { %v7130_v0 = vcombine.high %v511_v59, %v515_v60  ;;  %v7129_v6 = vcombine.low %v511_v59, %v515_v60  ;;  %v574_v60 = vld [vmem:[#allocation2 + $0xb90] sm:$0xff] }
 0x257   :  { %3724 = vmatpush1.bf16.msra.mxu0 %v7063_v2  ;;  %3888 = vmatpush1.bf16.msra.mxu1 %v7065_v3  ;;  %v522_v2 = vld [vmem:[#allocation2 + $0x9f0] sm:$0xff]  ;;  %v519_v3 = vld [vmem:[#allocation2 + $0x9d8] sm:$0xff] }
 0x258   :  { %3725 = vmatprep.subr.bf16.mxu0 %v7072_v4  ;;  %3889 = vmatprep.subr.bf16.mxu1 %v7074_v5  ;;  %v523_v4 = vld [vmem:[#allocation2 + $0x9f8] sm:$0xff]  ;;  %v7127_v5 = vcombine.low %v510_v55, %v514_v58  ;;  %v7136_v7 = vcombine.high %v518_v1, %v522_v2 }
 0x259   :  { %v7138_v8 = vcombine.high %v519_v3, %v523_v4  ;;  %v7137_v15 = vcombine.low %v519_v3, %v523_v4  ;;  %v582_v4 = vld [vmem:[#allocation2 + $0xbd0] sm:$0xff] }
 0x25b   :  { %3726 = vmatpush1.bf16.msra.mxu0 %v7071_v10  ;;  %3890 = vmatpush1.bf16.msra.mxu1 %v7073_v11  ;;  %v530_v10 = vld [vmem:[#allocation2 + $0xa30] sm:$0xff]  ;;  %v527_v11 = vld [vmem:[#allocation2 + $0xa18] sm:$0xff] }
 0x25c   :  { %3736 = vmatprep.subr.bf16.mxu0 %v7080_v13  ;;  %3900 = vmatprep.subr.bf16.mxu1 %v7082_v14  ;;  %v531_v13 = vld [vmem:[#allocation2 + $0xa38] sm:$0xff]  ;;  %v7135_v14 = vcombine.low %v518_v1, %v522_v2  ;;  %v7144_v16 = vcombine.high %v526_v9, %v530_v10 }
 0x25d   :  { %v7146_v17 = vcombine.high %v527_v11, %v531_v13  ;;  %v7145_v22 = vcombine.low %v527_v11, %v531_v13  ;;  %v590_v13 = vld [vmem:[#allocation2 + $0xc10] sm:$0xff] }
 0x25e   :  { %3728 = vmatmul.mubr.bf16.vlgmr.msra.gmra.mrb[4].mxu0 %v8948_v25  ;;  %3892 = vmatmul.mubr.bf16.vlgmr.msra.gmra.mrb[4].mxu1 %v8948_v25  ;;  %v7097_v25 = vcombine.low %v479_v26, %v483_v12  ;;  %v542_v12 = vld [vmem:[#allocation2 + $0xa90] sm:$0xff] }
 0x25f   :  { %3737 = vmatpush1.bf16.msra.mxu0 %v7079_v19  ;;  %3901 = vmatpush1.bf16.msra.mxu1 %v7081_v20  ;;  %v538_v19 = vld [vmem:[#allocation2 + $0xa70] sm:$0xff]  ;;  %v535_v20 = vld [vmem:[#allocation2 + $0xa58] sm:$0xff] }
 0x260   :  { %3738 = vmatprep.subr.bf16.mxu0 %v7088_v21  ;;  %3902 = vmatprep.subr.bf16.mxu1 %v7090_v57  ;;  %v539_v21 = vld [vmem:[#allocation2 + $0xa78] sm:$0xff]  ;;  %v7143_v57 = vcombine.low %v526_v9, %v530_v10  ;;  %v7152_v24 = vcombine.high %v534_v18, %v538_v19 }
 0x261   :  { %3768 = vmatprep.mubr.bf16.mxu0 %v8950_v34  ;;  %3932 = vmatprep.mubr.bf16.mxu1 %v8950_v34  ;;  %v7114_v34 = vcombine.high %v495_v41, %v499_v42  ;;  %v7154_v26 = vcombine.high %v535_v20, %v539_v21  ;;  %v7153_v31 = vcombine.low %v535_v20, %v539_v21  ;;  %v558_v42 = vld [vmem:[#allocation2 + $0xb10] sm:$0xff] }
 0x262   :  { %v598_v21 = vld [vmem:[#allocation2 + $0xc50] sm:$0xff] }
 0x263   :  { %3739 = vmatpush1.bf16.msra.mxu0 %v7087_v27  ;;  %3903 = vmatpush1.bf16.msra.mxu1 %v7089_v28  ;;  %v546_v27 = vld [vmem:[#allocation2 + $0xab0] sm:$0xff]  ;;  %v543_v28 = vld [vmem:[#allocation2 + $0xa98] sm:$0xff] }
 0x264   :  { %3740 = vmatprep.subr.bf16.mxu0 %v7096_v29  ;;  %3904 = vmatprep.subr.bf16.mxu1 %v7098_v30  ;;  %v547_v29 = vld [vmem:[#allocation2 + $0xab8] sm:$0xff]  ;;  %v7151_v30 = vcombine.low %v534_v18, %v538_v19  ;;  %v7160_v32 = vcombine.high %v542_v12, %v546_v27 }
 0x265   :  { %v7162_v33 = vcombine.high %v543_v28, %v547_v29  ;;  %v7161_v38 = vcombine.low %v543_v28, %v547_v29  ;;  %v606_v29 = vld [vmem:[#allocation2 + $0xc90] sm:$0xff] }
 0x267   :  { %3741 = vmatpush1.bf16.msra.mxu0 %v7095_v36  ;;  %3905 = vmatpush1.bf16.msra.mxu1 %v7097_v25  ;;  %v554_v36 = vld [vmem:[#allocation2 + $0xaf0] sm:$0xff]  ;;  %v551_v25 = vld [vmem:[#allocation2 + $0xad8] sm:$0xff] }
 0x268   :  { %3742 = vmatprep.subr.bf16.mxu0 %v7104_v23  ;;  %3906 = vmatprep.subr.bf16.mxu1 %v7106_v37  ;;  %v555_v23 = vld [vmem:[#allocation2 + $0xaf8] sm:$0xff]  ;;  %v7159_v37 = vcombine.low %v542_v12, %v546_v27  ;;  %v7168_v40 = vcombine.high %v550_v35, %v554_v36 }
 0x269   :  { %v7170_v41 = vcombine.high %v551_v25, %v555_v23  ;;  %v7169_v46 = vcombine.low %v551_v25, %v555_v23  ;;  %v614_v23 = vld [vmem:[#allocation2 + $0xcd0] sm:$0xff] }
 0x26b   :  { %3743 = vmatpush1.bf16.msra.mxu0 %v7103_v43  ;;  %3907 = vmatpush1.bf16.msra.mxu1 %v7105_v44  ;;  %v562_v43 = vld [vmem:[#allocation2 + $0xb30] sm:$0xff]  ;;  %v559_v44 = vld [vmem:[#allocation2 + $0xb18] sm:$0xff] }
 0x26c   :  { %3744 = vmatprep.subr.bf16.mxu0 %v7112_v45  ;;  %3908 = vmatprep.subr.bf16.mxu1 %v7114_v34  ;;  %v563_v45 = vld [vmem:[#allocation2 + $0xb38] sm:$0xff]  ;;  %v7167_v34 = vcombine.low %v550_v35, %v554_v36  ;;  %v7176_v47 = vcombine.high %v558_v42, %v562_v43 }
 0x26d   :  { %v7178_v49 = vcombine.high %v559_v44, %v563_v45  ;;  %v7177_v55 = vcombine.low %v559_v44, %v563_v45  ;;  %v622_v44 = vld [vmem:[#allocation2 + $0xd10] sm:$0xff] }
 0x26e   :  { %v626_v45 = vld [vmem:[#allocation2 + $0xd30] sm:$0xff] }
 0x26f   :  { %3745 = vmatpush1.bf16.msra.mxu0 %v7111_v51  ;;  %3909 = vmatpush1.bf16.msra.mxu1 %v7113_v52  ;;  %v570_v51 = vld [vmem:[#allocation2 + $0xb70] sm:$0xff]  ;;  %v567_v52 = vld [vmem:[#allocation2 + $0xb58] sm:$0xff] }
 0x270   :  { %3746 = vmatprep.subr.bf16.mxu0 %v7120_v53  ;;  %3910 = vmatprep.subr.bf16.mxu1 %v7122_v54  ;;  %v571_v53 = vld [vmem:[#allocation2 + $0xb78] sm:$0xff]  ;;  %v7175_v54 = vcombine.low %v558_v42, %v562_v43  ;;  %v7184_v58 = vcombine.high %v566_v50, %v570_v51 }
 0x271   :  { %v7186_v59 = vcombine.high %v567_v52, %v571_v53  ;;  %v7185_v1 = vcombine.low %v567_v52, %v571_v53  ;;  %v634_v52 = vld [vmem:[#allocation2 + $0xd70] sm:$0xff]  ;;  %v631_v53 = vld [vmem:[#allocation2 + $0xd58] sm:$0xff] }
 0x273   :  { %3747 = vmatpush1.bf16.msra.mxu0 %v7119_v61  ;;  %3911 = vmatpush1.bf16.msra.mxu1 %v7121_v62  ;;  %v578_v61 = vld [vmem:[#allocation2 + $0xbb0] sm:$0xff]  ;;  %v575_v62 = vld [vmem:[#allocation2 + $0xb98] sm:$0xff] }
 0x274   :  { %3748 = vmatprep.subr.bf16.mxu0 %v7128_v63  ;;  %3912 = vmatprep.subr.bf16.mxu1 %v7130_v0  ;;  %v579_v63 = vld [vmem:[#allocation2 + $0xbb8] sm:$0xff]  ;;  %v7183_v0 = vcombine.low %v566_v50, %v570_v51  ;;  %v7192_v2 = vcombine.high %v574_v60, %v578_v61  ;;  %v7240_v50 = vcombine.high %v622_v44, %v626_v45  ;;  %v630_v51 = vld [vmem:[#allocation2 + $0xd50] sm:$0xff] }
 0x275   :  { %v7194_v3 = vcombine.high %v575_v62, %v579_v63  ;;  %v7193_v9 = vcombine.low %v575_v62, %v579_v63  ;;  %v642_v62 = vld [vmem:[#allocation2 + $0xdb0] sm:$0xff]  ;;  %v639_v63 = vld [vmem:[#allocation2 + $0xd98] sm:$0xff] }
 0x277   :  { %3749 = vmatpush1.bf16.msra.mxu0 %v7127_v5  ;;  %3913 = vmatpush1.bf16.msra.mxu1 %v7129_v6  ;;  %v586_v5 = vld [vmem:[#allocation2 + $0xbf0] sm:$0xff]  ;;  %v583_v6 = vld [vmem:[#allocation2 + $0xbd8] sm:$0xff] }
 0x278   :  { %3750 = vmatprep.subr.bf16.mxu0 %v7136_v7  ;;  %3914 = vmatprep.subr.bf16.mxu1 %v7138_v8  ;;  %v587_v7 = vld [vmem:[#allocation2 + $0xbf8] sm:$0xff]  ;;  %v7191_v8 = vcombine.low %v574_v60, %v578_v61  ;;  %v7200_v10 = vcombine.high %v582_v4, %v586_v5  ;;  %v638_v61 = vld [vmem:[#allocation2 + $0xd90] sm:$0xff] }
 0x279   :  { %v7202_v11 = vcombine.high %v583_v6, %v587_v7  ;;  %v7201_v18 = vcombine.low %v583_v6, %v587_v7  ;;  %v646_v6 = vld [vmem:[#allocation2 + $0xdd0] sm:$0xff] }
 0x27a   :  { %v650_v7 = vld [vmem:[#allocation2 + $0xdf0] sm:$0xff] }
 0x27b   :  { %3751 = vmatpush1.bf16.msra.mxu0 %v7135_v14  ;;  %3915 = vmatpush1.bf16.msra.mxu1 %v7137_v15  ;;  %v594_v14 = vld [vmem:[#allocation2 + $0xc30] sm:$0xff]  ;;  %v591_v15 = vld [vmem:[#allocation2 + $0xc18] sm:$0xff] }
 0x27c   :  { %3752 = vmatprep.subr.bf16.mxu0 %v7144_v16  ;;  %3916 = vmatprep.subr.bf16.mxu1 %v7146_v17  ;;  %v595_v16 = vld [vmem:[#allocation2 + $0xc38] sm:$0xff]  ;;  %v7199_v17 = vcombine.low %v582_v4, %v586_v5  ;;  %v7208_v19 = vcombine.high %v590_v13, %v594_v14 }
 0x27d   :  { %v7210_v20 = vcombine.high %v591_v15, %v595_v16  ;;  %v7209_v12 = vcombine.low %v591_v15, %v595_v16  ;;  %v7255_v15 = vcombine.low %v638_v61, %v642_v62 }
 0x27f   :  { %3753 = vmatpush1.bf16.msra.mxu0 %v7143_v57  ;;  %3917 = vmatpush1.bf16.msra.mxu1 %v7145_v22  ;;  %v602_v57 = vld [vmem:[#allocation2 + $0xc70] sm:$0xff]  ;;  %v599_v22 = vld [vmem:[#allocation2 + $0xc58] sm:$0xff] }
 0x280   :  { %3754 = vmatprep.subr.bf16.mxu0 %v7152_v24  ;;  %3918 = vmatprep.subr.bf16.mxu1 %v7154_v26  ;;  %v603_v24 = vld [vmem:[#allocation2 + $0xc78] sm:$0xff]  ;;  %v7207_v26 = vcombine.low %v590_v13, %v594_v14  ;;  %v7216_v27 = vcombine.high %v598_v21, %v602_v57 }
 0x281   :  { %v7218_v28 = vcombine.high %v599_v22, %v603_v24  ;;  %v7217_v35 = vcombine.low %v599_v22, %v603_v24  ;;  %v655_v24 = vld [vmem:[#allocation2 + $0xe18] sm:$0xff] }
 0x283   :  { %3755 = vmatpush1.bf16.msra.mxu0 %v7151_v30  ;;  %3919 = vmatpush1.bf16.msra.mxu1 %v7153_v31  ;;  %v610_v30 = vld [vmem:[#allocation2 + $0xcb0] sm:$0xff]  ;;  %v607_v31 = vld [vmem:[#allocation2 + $0xc98] sm:$0xff] }
 0x284   :  { %3756 = vmatprep.subr.bf16.mxu0 %v7160_v32  ;;  %3920 = vmatprep.subr.bf16.mxu1 %v7162_v33  ;;  %v611_v32 = vld [vmem:[#allocation2 + $0xcb8] sm:$0xff]  ;;  %v7215_v33 = vcombine.low %v598_v21, %v602_v57  ;;  %v7224_v36 = vcombine.high %v606_v29, %v610_v30  ;;  %v654_v21 = vld [vmem:[#allocation2 + $0xe10] sm:$0xff] }
 0x285   :  { %v7226_v25 = vcombine.high %v607_v31, %v611_v32  ;;  %v658_v57 = vld [vmem:[#allocation2 + $0xe30] sm:$0xff] }
 0x287   :  { %3757 = vmatpush1.bf16.msra.mxu0 %v7159_v37  ;;  %3921 = vmatpush1.bf16.msra.mxu1 %v7161_v38  ;;  %v618_v37 = vld [vmem:[#allocation2 + $0xcf0] sm:$0xff]  ;;  %v615_v38 = vld [vmem:[#allocation2 + $0xcd8] sm:$0xff] }
 0x288   :  { %3758 = vmatprep.subr.bf16.mxu0 %v7168_v40  ;;  %3922 = vmatprep.subr.bf16.mxu1 %v7170_v41  ;;  %v619_v40 = vld [vmem:[#allocation2 + $0xcf8] sm:$0xff]  ;;  %v7223_v41 = vcombine.low %v606_v29, %v610_v30  ;;  %v7232_v42 = vcombine.high %v614_v23, %v618_v37  ;;  %v662_v30 = vld [vmem:[#allocation2 + $0xe50] sm:$0xff] }
 0x289   :  { %v7234_v43 = vcombine.high %v615_v38, %v619_v40 }
 0x28b   :  { %3759 = vmatpush1.bf16.msra.mxu0 %v7167_v34  ;;  %3923 = vmatpush1.bf16.msra.mxu1 %v7169_v46  ;;  %v623_v34 = vld [vmem:[#allocation2 + $0xd18] sm:$0xff] }
 0x28c   :  { %3760 = vmatprep.subr.bf16.mxu0 %v7176_v47  ;;  %3924 = vmatprep.subr.bf16.mxu1 %v7178_v49  ;;  %v627_v46 = vld [vmem:[#allocation2 + $0xd38] sm:$0xff]  ;;  %v7231_v47 = vcombine.low %v614_v23, %v618_v37  ;;  %v7233_v49 = vcombine.low %v615_v38, %v619_v40  ;;  %v670_v37 = vld [vmem:[#allocation2 + $0xe90] sm:$0xff] }
 0x28d   :  { %v674_v38 = vld [vmem:[#allocation2 + $0xeb0] sm:$0xff]  ;;  %v671_v40 = vld [vmem:[#allocation2 + $0xe98] sm:$0xff] }
 0x28f   :  { %3761 = vmatpush1.bf16.msra.mxu0 %v7175_v54  ;;  %3925 = vmatpush1.bf16.msra.mxu1 %v7177_v55  ;;  %v635_v54 = vld [vmem:[#allocation2 + $0xd78] sm:$0xff]  ;;  %v7239_v55 = vcombine.low %v622_v44, %v626_v45  ;;  %v678_v45 = vld [vmem:[#allocation2 + $0xed0] sm:$0xff] }
 0x290   :  { %3762 = vmatprep.subr.bf16.mxu0 %v7184_v58  ;;  %3926 = vmatprep.subr.bf16.mxu1 %v7186_v59  ;;  %v7241_v58 = vcombine.low %v623_v34, %v627_v46  ;;  %v7248_v59 = vcombine.high %v630_v51, %v634_v52  ;;  %v7250_v60 = vcombine.high %v631_v53, %v635_v54 }
 0x293   :  { %3763 = vmatpush1.bf16.msra.mxu0 %v7183_v0  ;;  %3927 = vmatpush1.bf16.msra.mxu1 %v7185_v1  ;;  %v643_v0 = vld [vmem:[#allocation2 + $0xdb8] sm:$0xff]  ;;  %v7247_v1 = vcombine.low %v630_v51, %v634_v52 }
 0x294   :  { %3764 = vmatprep.subr.bf16.mxu0 %v7192_v2  ;;  %3928 = vmatprep.subr.bf16.mxu1 %v7194_v3  ;;  %v7249_v2 = vcombine.low %v631_v53, %v635_v54  ;;  %v7256_v3 = vcombine.high %v638_v61, %v642_v62  ;;  %v7258_v5 = vcombine.high %v639_v63, %v643_v0  ;;  %v686_v53 = vld [vmem:[#allocation2 + $0xf10] sm:$0xff] }
 0x295   :  { %v690_v54 = vld [vmem:[#allocation2 + $0xf30] sm:$0xff] }
 0x296   :  { %v7304_v62 = vcombine.high %v686_v53, %v690_v54 }
 0x297   :  { %3765 = vmatpush1.bf16.msra.mxu0 %v7191_v8  ;;  %3929 = vmatpush1.bf16.msra.mxu1 %v7193_v9 }
 0x298   :  { %3766 = vmatprep.subr.bf16.mxu0 %v7200_v10  ;;  %3930 = vmatprep.subr.bf16.mxu1 %v7202_v11  ;;  %v647_v10 = vld [vmem:[#allocation2 + $0xdd8] sm:$0xff] }
 0x299   :  { %v651_v11 = vld [vmem:[#allocation2 + $0xdf8] sm:$0xff] }
 0x29b   :  { %3767 = vmatpush1.bf16.msra.mxu0 %v7199_v17  ;;  %3931 = vmatpush1.bf16.msra.mxu1 %v7201_v18  ;;  %v7257_v18 = vcombine.low %v639_v63, %v643_v0  ;;  %v694_v0 = vld [vmem:[#allocation2 + $0xf50] sm:$0xff] }
 0x29c   :  { %3777 = vmatprep.subr.bf16.mxu0 %v7208_v19  ;;  %3941 = vmatprep.subr.bf16.mxu1 %v7210_v20  ;;  %v7264_v19 = vcombine.high %v646_v6, %v650_v7  ;;  %v7266_v20 = vcombine.high %v647_v10, %v651_v11 }
 0x29e   :  { %3769 = vmatmul.mubr.bf16.vlgmr.msra.gmra.mrb[4].mxu0 %v8962_v39  ;;  %3933 = vmatmul.mubr.bf16.vlgmr.msra.gmra.mrb[4].mxu1 %v8962_v39  ;;  %v7225_v39 = vcombine.low %v607_v31, %v611_v32  ;;  %v666_v31 = vld [vmem:[#allocation2 + $0xe70] sm:$0xff]  ;;  %v663_v32 = vld [vmem:[#allocation2 + $0xe58] sm:$0xff] }
 0x29f   :  { %3778 = vmatpush1.bf16.msra.mxu0 %v7207_v26  ;;  %3942 = vmatpush1.bf16.msra.mxu1 %v7209_v12  ;;  %v659_v26 = vld [vmem:[#allocation2 + $0xe38] sm:$0xff]  ;;  %v7263_v12 = vcombine.low %v646_v6, %v650_v7  ;;  %v7303_v6 = vcombine.low %v686_v53, %v690_v54  ;;  %v9004_v7 = vld [vmem:[#allocation4] sm:$0xff] }
 0x2a0   :  { %3779 = vmatprep.subr.bf16.mxu0 %v7216_v27  ;;  %3943 = vmatprep.subr.bf16.mxu1 %v7218_v28  ;;  %v7265_v27 = vcombine.low %v647_v10, %v651_v11  ;;  %v7272_v28 = vcombine.high %v654_v21, %v658_v57  ;;  %v7274_v29 = vcombine.high %v655_v24, %v659_v26  ;;  %v7905_v53 = vld [vmem:[#allocation6 + $0x88] ss:$16 sps:$4 sm:$0xff]   ;;  %v7910_v54 = vld [vmem:[#allocation6 + $0xa4] ss:$16 sps:$4 sm:$0xff]  }
 0x2a1   :  { %3809 = vmatprep.mubr.bf16.mxu0 %v8964_v48  ;;  %3973 = vmatprep.mubr.bf16.mxu1 %v8964_v48  ;;  %v7242_v48 = vcombine.high %v623_v34, %v627_v46  ;;  %v682_v34 = vld [vmem:[#allocation2 + $0xef0] sm:$0xff]  ;;  %v679_v46 = vld [vmem:[#allocation2 + $0xed8] sm:$0xff] }
 0x2a2   :  { %v7296_v51 = vcombine.high %v678_v45, %v682_v34 }
 0x2a3   :  { %3780 = vmatpush1.bf16.msra.mxu0 %v7215_v33  ;;  %3944 = vmatpush1.bf16.msra.mxu1 %v7217_v35  ;;  %v667_v33 = vld [vmem:[#allocation2 + $0xe78] sm:$0xff]  ;;  %v7271_v35 = vcombine.low %v654_v21, %v658_v57 }
 0x2a4   :  { %3781 = vmatprep.subr.bf16.mxu0 %v7224_v36  ;;  %3945 = vmatprep.subr.bf16.mxu1 %v7226_v25  ;;  %v7273_v36 = vcombine.low %v655_v24, %v659_v26  ;;  %v7280_v25 = vcombine.high %v662_v30, %v666_v31  ;;  %v7282_v23 = vcombine.high %v663_v32, %v667_v33  ;;  %v710_v24 = vld [vmem:[#allocation2 + $0xfd0] sm:$0xff] }
 0x2a5   :  { %v714_v26 = vld [vmem:[#allocation2 + $0xff0] sm:$0xff] }
 0x2a7   :  { %3782 = vmatpush1.bf16.msra.mxu0 %v7223_v41  ;;  %3946 = vmatpush1.bf16.msra.mxu1 %v7225_v39  ;;  %v675_v41 = vld [vmem:[#allocation2 + $0xeb8] sm:$0xff]  ;;  %v7279_v39 = vcombine.low %v662_v30, %v666_v31  ;;  %v7328_v31 = vcombine.high %v710_v24, %v714_v26 }
 0x2a8   :  { %3783 = vmatprep.subr.bf16.mxu0 %v7232_v42  ;;  %3947 = vmatprep.subr.bf16.mxu1 %v7234_v43  ;;  %v7281_v42 = vcombine.low %v663_v32, %v667_v33  ;;  %v7288_v43 = vcombine.high %v670_v37, %v674_v38  ;;  %v7290_v44 = vcombine.high %v671_v40, %v675_v41 }
 0x2ab   :  { %3784 = vmatpush1.bf16.msra.mxu0 %v7231_v47  ;;  %3948 = vmatpush1.bf16.msra.mxu1 %v7233_v49  ;;  %v683_v47 = vld [vmem:[#allocation2 + $0xef8] sm:$0xff]  ;;  %v726_v49 = vlaneseq }
 0x2ac   :  { %3785 = vmatprep.subr.bf16.mxu0 %v7240_v50  ;;  %3949 = vmatprep.subr.bf16.mxu1 %v7242_v48  ;;  %v7287_v50 = vcombine.low %v670_v37, %v674_v38  ;;  %v7289_v48 = vcombine.low %v671_v40, %v675_v41  ;;  %v7298_v52 = vcombine.high %v679_v46, %v683_v47  ;;  %v7881_v38 = vld [vmem:[#allocation6 + $0x8] ss:$16 sps:$4 sm:$0xff]   ;;  %v7886_v40 = vld [vmem:[#allocation6 + $0x24] ss:$16 sps:$4 sm:$0xff]  }
 0x2ad   :  { %v7297_v61 = vcombine.low %v679_v46, %v683_v47  ;;  %v7893_v46 = vld [vmem:[#allocation6 + $0x48] ss:$16 sps:$4 sm:$0xff]   ;;  %v7898_v47 = vld [vmem:[#allocation6 + $0x64] ss:$16 sps:$4 sm:$0xff]  }
 0x2af   :  { %3786 = vmatpush1.bf16.msra.mxu0 %v7239_v55  ;;  %3950 = vmatpush1.bf16.msra.mxu1 %v7241_v58  ;;  %v687_v55 = vld [vmem:[#allocation2 + $0xf18] sm:$0xff] }
 0x2b0   :  { %3787 = vmatprep.subr.bf16.mxu0 %v7248_v59  ;;  %3951 = vmatprep.subr.bf16.mxu1 %v7250_v60  ;;  %v691_v58 = vld [vmem:[#allocation2 + $0xf38] sm:$0xff]  ;;  %v8999_v59 = vshrl.u32 %v726_v49, 7  ;;  %v7295_v60 = vcombine.low %v678_v45, %v682_v34  ;;  %v7895_v45 = vld [vmem:[#allocation6 + $0x4c] ss:$16 sps:$4 sm:$0xff]  }
 0x2b1   :  { %v8991_v4 = vpop.f32.mrb[0].mxu0  ;;  %v8993_v8 = vpop.f32.mrb[0].mxu1  ;;  %v7306_v63 = vcombine.high %v687_v55, %v691_v58  ;;  %v7305_v10 = vcombine.low %v687_v55, %v691_v58  ;;  %v7890_v34 = vld [vmem:[#allocation6 + $0x40] ss:$16 sps:$4 sm:$0xff]   ;;  %v7901_v49 = vld [vmem:[#allocation6 + $0x6c] ss:$16 sps:$4 sm:$0xff]  }
 0x2b2   :  { %v8995_v9 = vpop.f32.mrb[1].mxu0  ;;  %v8997_v13 = vpop.f32.mrb[1].mxu1  ;;  %v7913_v55 = vld [vmem:[#allocation6 + $0xac] ss:$16 sps:$4 sm:$0xff]   ;;  %v7908_v58 = vld [vmem:[#allocation6 + $0xa0] ss:$16 sps:$4 sm:$0xff]  }
 0x2b3   :  { %v3487_v14 = vpop.f32.mrb[2].mxu0  ;;  %3788 = vmatpush1.bf16.msra.mxu0 %v7247_v1  ;;  %v3651_v16 = vpop.f32.mrb[2].mxu1  ;;  %3952 = vmatpush1.bf16.msra.mxu1 %v7249_v2  ;;  %v698_v1 = vld [vmem:[#allocation2 + $0xf70] sm:$0xff]  ;;  %v695_v2 = vld [vmem:[#allocation2 + $0xf58] sm:$0xff] }
 0x2b4   :  { %v3488_v17 = vpop.f32.mrb[3].mxu0  ;;  %3789 = vmatprep.subr.bf16.mxu0 %v7256_v3  ;;  %3953 = vmatprep.subr.bf16.mxu1 %v7258_v5  ;;  %v3652_v22 = vpop.f32.mrb[3].mxu1  ;;  %v699_v3 = vld [vmem:[#allocation2 + $0xf78] sm:$0xff]  ;;  %v9002_v5 = vsub.s32 1, %v8999_v59  ;;  %v7312_v11 = vcombine.high %v694_v0, %v698_v1  ;;  %v706_v16 = vld [vmem:[#allocation2 + $0xfb0] sm:$0xff] }
 0x2b5   :  { %v7314_v14 = vcombine.high %v695_v2, %v699_v3  ;;  %v703_v17 = vld [vmem:[#allocation2 + $0xf98] sm:$0xff]  ;;  %v7313_v21 = vcombine.low %v695_v2, %v699_v3  ;;  %v7925_v2 = vld [vmem:[#allocation6 + $0xec] ss:$16 sps:$4 sm:$0xff]  }
 0x2b6   :  { %v7920_v3 = vld [vmem:[#allocation6 + $0xe0] ss:$16 sps:$4 sm:$0xff]  }
 0x2b7   :  { %3790 = vmatpush1.bf16.msra.mxu0 %v7255_v15  ;;  %3954 = vmatpush1.bf16.msra.mxu1 %v7257_v18  ;;  %v702_v15 = vld [vmem:[#allocation2 + $0xf90] sm:$0xff]  ;;  %v707_v18 = vld [vmem:[#allocation2 + $0xfb8] sm:$0xff] }
 0x2b8   :  { %3791 = vmatprep.subr.bf16.mxu0 %v7264_v19  ;;  %3955 = vmatprep.subr.bf16.mxu1 %v7266_v20  ;;  %v733_v19 = vrot.slane %v9004_v7, %v9002_v5  ;;  %v7311_v20 = vcombine.low %v694_v0, %v698_v1  ;;  %v7320_v57 = vcombine.high %v702_v15, %v706_v16  ;;  %v7917_v0 = vld [vmem:[#allocation6 + $0xc8] ss:$16 sps:$4 sm:$0xff]   ;;  %v7922_v1 = vld [vmem:[#allocation6 + $0xe4] ss:$16 sps:$4 sm:$0xff]  }
 0x2b9   :  { %v7322_v22 = vcombine.high %v703_v17, %v707_v18  ;;  %v7321_v30 = vcombine.low %v703_v17, %v707_v18  ;;  %v7937_v17 = vld [vmem:[#allocation6 + $0x12c] ss:$16 sps:$4 sm:$0xff]   ;;  %v7932_v18 = vld [vmem:[#allocation6 + $0x120] ss:$16 sps:$4 sm:$0xff]  }
 0x2bb   :  { %3792 = vmatpush1.bf16.msra.mxu0 %v7263_v12  ;;  %3956 = vmatpush1.bf16.msra.mxu1 %v7265_v27  ;;  %v711_v12 = vld [vmem:[#allocation2 + $0xfd8] sm:$0xff] }
 0x2bc   :  { %3793 = vmatprep.subr.bf16.mxu0 %v7272_v28  ;;  %3957 = vmatprep.subr.bf16.mxu1 %v7274_v29  ;;  %v715_v27 = vld [vmem:[#allocation2 + $0xff8] sm:$0xff]  ;;  %v7767_v28 = vadd.f32 %v8995_v9, %v733_v19  ;;  %v7319_v29 = vcombine.low %v702_v15, %v706_v16  ;;  %v7929_v15 = vld [vmem:[#allocation6 + $0x108] ss:$16 sps:$4 sm:$0xff]  }
 0x2bd   :  { %v7330_v32 = vcombine.high %v711_v12, %v715_v27  ;;  %v7878_v9 = vld [vmem:[#allocation6] ss:$16 sps:$4 sm:$0xff]   ;;  %v7934_v16 = vld [vmem:[#allocation6 + $0x124] ss:$16 sps:$4 sm:$0xff]   ;;  %v7935_v19 = vld [vmem:[#allocation6 + $0x128] ss:$16 sps:$4 sm:$0xff]  }
 0x2be   :  { %v3991_v33 = vmul.f32 0.2, %v7767_v28  ;;  %vm3983_vm0 = vcmp.gt.f32.partialorder %v7767_v28, 0.0 }
 0x2bf   :  { %3794 = vmatpush1.bf16.msra.mxu0 %v7271_v35  ;;  %3958 = vmatpush1.bf16.msra.mxu1 %v7273_v36  ;;  %v7327_v35 = vcombine.low %v710_v24, %v714_v26  ;;  %v7329_v36 = vcombine.low %v711_v12, %v715_v27  ;;  %v7946_v24 = vld [vmem:[#allocation6 + $0x164] ss:$16 sps:$4 sm:$0xff]   ;;  %v7949_v26 = vld [vmem:[#allocation6 + $0x16c] ss:$16 sps:$4 sm:$0xff]   ;;  %v7944_v12 = vld [vmem:[#allocation6 + $0x160] ss:$16 sps:$4 sm:$0xff]  }
 0x2c0   :  { %3795 = vmatprep.subr.bf16.mxu0 %v7280_v25  ;;  %3959 = vmatprep.subr.bf16.mxu1 %v7282_v23  ;;  %v7880_v25 = vld [vmem:[#allocation6 + $0x4] ss:$16 sps:$4 sm:$0xff]   ;;  %v7883_v23 = vld [vmem:[#allocation6 + $0xc] ss:$16 sps:$4 sm:$0xff]   ;;  %v3999_v37 = vsel %vm3983_vm0, %v7767_v28, %v3991_v33  ;;  %v7947_v27 = vld [vmem:[#allocation6 + $0x168] ss:$16 sps:$4 sm:$0xff]  }
 0x2c1   :  { %v4264_v41 = vpack.c.bf16 %v3999_v37, %v3999_v37  ;;  %v7952_v28 = vld [vmem:[#allocation6 + $0x184] ss:$16 sps:$4 sm:$0xff]   ;;  %v7953_v33 = vld [vmem:[#allocation6 + $0x188] ss:$16 sps:$4 sm:$0xff]  }
 0x2c2   :  { %v7959_v37 = vld [vmem:[#allocation6 + $0x1a8] ss:$16 sps:$4 sm:$0xff]  }
 0x2c3   :  { %3796 = vmatpush1.bf16.msra.mxu0 %v7279_v39  ;;  %3960 = vmatpush1.bf16.msra.mxu1 %v7281_v42  ;;  %v7889_v39 = vld [vmem:[#allocation6 + $0x2c] ss:$16 sps:$4 sm:$0xff]   ;;  %v7884_v42 = vld [vmem:[#allocation6 + $0x20] ss:$16 sps:$4 sm:$0xff]  }
 0x2c4   :  { %3797 = vmatprep.subr.bf16.mxu0 %v7288_v43  ;;  %3961 = vmatprep.subr.bf16.mxu1 %v7290_v44  ;;  %v7887_v43 = vld [vmem:[#allocation6 + $0x28] ss:$16 sps:$4 sm:$0xff]   ;;  %v7892_v44 = vld [vmem:[#allocation6 + $0x44] ss:$16 sps:$4 sm:$0xff]  }
 0x2c7   :  { %3798 = vmatpush1.bf16.msra.mxu0 %v7287_v50  ;;  %3962 = vmatpush1.bf16.msra.mxu1 %v7289_v48  ;;  %v7899_v50 = vld [vmem:[#allocation6 + $0x68] ss:$16 sps:$4 sm:$0xff]   ;;  %v7904_v48 = vld [vmem:[#allocation6 + $0x84] ss:$16 sps:$4 sm:$0xff]  }
 0x2c8   :  { %3799 = vmatprep.subr.bf16.mxu0 %v7296_v51  ;;  %3963 = vmatprep.subr.bf16.mxu1 %v7298_v52  ;;  %v7907_v51 = vld [vmem:[#allocation6 + $0x8c] ss:$16 sps:$4 sm:$0xff]   ;;  %v7902_v52 = vld [vmem:[#allocation6 + $0x80] ss:$16 sps:$4 sm:$0xff]  }
 0x2cb   :  { %3800 = vmatpush1.bf16.msra.mxu0 %v7295_v60  ;;  %3964 = vmatpush1.bf16.msra.mxu1 %v7297_v61  ;;  %v7911_v60 = vld [vmem:[#allocation6 + $0xa8] ss:$16 sps:$4 sm:$0xff]   ;;  %v7916_v61 = vld [vmem:[#allocation6 + $0xc4] ss:$16 sps:$4 sm:$0xff]  }
 0x2cc   :  { %3801 = vmatprep.subr.bf16.mxu0 %v7304_v62  ;;  %3965 = vmatprep.subr.bf16.mxu1 %v7306_v63  ;;  %v7919_v62 = vld [vmem:[#allocation6 + $0xcc] ss:$16 sps:$4 sm:$0xff]   ;;  %v7914_v63 = vld [vmem:[#allocation6 + $0xc0] ss:$16 sps:$4 sm:$0xff]  }
 0x2cf   :  { %3802 = vmatpush1.bf16.msra.mxu0 %v7303_v6  ;;  %3966 = vmatpush1.bf16.msra.mxu1 %v7305_v10  ;;  %v7923_v6 = vld [vmem:[#allocation6 + $0xe8] ss:$16 sps:$4 sm:$0xff]   ;;  %v7928_v10 = vld [vmem:[#allocation6 + $0x104] ss:$16 sps:$4 sm:$0xff]  }
 0x2d0   :  { %3803 = vmatprep.subr.bf16.mxu0 %v7312_v11  ;;  %3967 = vmatprep.subr.bf16.mxu1 %v7314_v14  ;;  %v7931_v11 = vld [vmem:[#allocation6 + $0x10c] ss:$16 sps:$4 sm:$0xff]   ;;  %v7926_v14 = vld [vmem:[#allocation6 + $0x100] ss:$16 sps:$4 sm:$0xff]  }
 0x2d3   :  { %3804 = vmatpush1.bf16.msra.mxu0 %v7311_v20  ;;  %3968 = vmatpush1.bf16.msra.mxu1 %v7313_v21  ;;  %v7940_v20 = vld [vmem:[#allocation6 + $0x144] ss:$16 sps:$4 sm:$0xff]   ;;  %v7943_v21 = vld [vmem:[#allocation6 + $0x14c] ss:$16 sps:$4 sm:$0xff]  }
 0x2d4   :  { %3805 = vmatprep.subr.bf16.mxu0 %v7320_v57  ;;  %3969 = vmatprep.subr.bf16.mxu1 %v7322_v22  ;;  %v7938_v57 = vld [vmem:[#allocation6 + $0x140] ss:$16 sps:$4 sm:$0xff]   ;;  %v7941_v22 = vld [vmem:[#allocation6 + $0x148] ss:$16 sps:$4 sm:$0xff]  }
 0x2d7   :  { %3806 = vmatpush1.bf16.msra.mxu0 %v7319_v29  ;;  %3970 = vmatpush1.bf16.msra.mxu1 %v7321_v30  ;;  %v9012_v29 = vsub.s32 0, %v8999_v59  ;;  %v7955_v30 = vld [vmem:[#allocation6 + $0x18c] ss:$16 sps:$4 sm:$0xff]  }
 0x2d8   :  { %3807 = vmatprep.subr.bf16.mxu0 %v7328_v31  ;;  %3971 = vmatprep.subr.bf16.mxu1 %v7330_v32  ;;  %v740_v31 = vsub.s32 3, %v8999_v59  ;;  %v7950_v32 = vld [vmem:[#allocation6 + $0x180] ss:$16 sps:$4 sm:$0xff]  }
 0x2db   :  { %3808 = vmatpush1.bf16.msra.mxu0 %v7327_v35  ;;  %3972 = vmatpush1.bf16.msra.mxu1 %v7329_v36  ;;  %v7958_v35 = vld [vmem:[#allocation6 + $0x1a4] ss:$16 sps:$4 sm:$0xff]   ;;  %v729_v36 = vrot.slane %v9004_v7, %v9012_v29 }
 0x2dc   :  { %5572 = vmatprep.subr.bf16.mxu0 %v7880_v25  ;;  %5736 = vmatprep.subr.bf16.mxu1 %v7883_v23  ;;  %v7961_v25 = vld [vmem:[#allocation6 + $0x1ac] ss:$16 sps:$4 sm:$0xff]   ;;  %v741_v23 = vrot.slane %v9004_v7, %v740_v31 }
 0x2de   :  { %3810 = vmatmul.mubr.bf16.vlgmr.msra.gmra.mrb[4].mxu0 %v8973_v56  ;;  %3974 = vmatmul.mubr.bf16.vlgmr.msra.gmra.mrb[4].mxu1 %v8973_v56  ;;  %v7896_v56 = vld [vmem:[#allocation6 + $0x60] ss:$16 sps:$4 sm:$0xff]  }
 0x2df   :  { %5573 = vmatpush1.bf16.msra.mxu0 %v7878_v9  ;;  %5604 = vmatprep.mubr.bf16.mxu0 %v4264_v41  ;;  %v7956_v9 = vld [vmem:[#allocation6 + $0x1a0] ss:$16 sps:$4 sm:$0xff]  }
 0x2e0   :  { %5737 = vmatpush1.bf16.msra.mxu1 %v7881_v38  ;;  %5768 = vmatprep.mubr.bf16.mxu1 %v4264_v41  ;;  %v7964_v38 = vld [vmem:[#allocation6 + $0x1c4] ss:$16 sps:$4 sm:$0xff]   ;;  %v7967_v41 = vld [vmem:[#allocation6 + $0x1cc] ss:$16 sps:$4 sm:$0xff]  }
 0x2e1   :  { %5574 = vmatprep.subr.bf16.mxu0 %v7886_v40  ;;  %5738 = vmatprep.subr.bf16.mxu1 %v7889_v39  ;;  %v7766_v40 = vadd.f32 %v8991_v4, %v729_v36  ;;  %v7769_v39 = vadd.f32 %v8997_v13, %v741_v23  ;;  %v7971_v4 = vld [vmem:[#allocation6 + $0x1e8] ss:$16 sps:$4 sm:$0xff]   ;;  %v7979_v13 = vld [vmem:[#allocation6 + $0x20c] ss:$16 sps:$4 sm:$0xff]  }
 0x2e2   :  { %v8033_v36 = vld [vmem:[#allocation6 + $0x32c] ss:$16 sps:$4 sm:$0xff]   ;;  %v8031_v23 = vld [vmem:[#allocation6 + $0x328] ss:$16 sps:$4 sm:$0xff]  }
 0x2e3   :  { %5575 = vmatpush1.bf16.msra.mxu0 %v7884_v42  ;;  %v7962_v42 = vld [vmem:[#allocation6 + $0x1c0] ss:$16 sps:$4 sm:$0xff]   ;;  %vm3982_vm1 = vcmp.gt.f32.partialorder %v7766_v40, 0.0  ;;  %vm3985_vm2 = vcmp.gt.f32.partialorder %v7769_v39, 0.0 }
 0x2e4   :  { %5739 = vmatpush1.bf16.msra.mxu1 %v7887_v43  ;;  %5576 = vmatprep.subr.bf16.mxu0 %v7892_v44  ;;  %v7965_v43 = vld [vmem:[#allocation6 + $0x1c8] ss:$16 sps:$4 sm:$0xff]   ;;  %v7970_v44 = vld [vmem:[#allocation6 + $0x1e4] ss:$16 sps:$4 sm:$0xff]  }
 0x2e5   :  { %5740 = vmatprep.subr.bf16.mxu1 %v7895_v45  ;;  %v3990_v45 = vmul.f32 0.2, %v7766_v40 }
 0x2e7   :  { %5577 = vmatpush1.bf16.msra.mxu0 %v7890_v34  ;;  %v7973_v34 = vld [vmem:[#allocation6 + $0x1ec] ss:$16 sps:$4 sm:$0xff]  }
 0x2e8   :  { %5741 = vmatpush1.bf16.msra.mxu1 %v7893_v46  ;;  %5578 = vmatprep.subr.bf16.mxu0 %v7898_v47  ;;  %v3993_v46 = vmul.f32 0.2, %v7769_v39  ;;  %v7968_v47 = vld [vmem:[#allocation6 + $0x1e0] ss:$16 sps:$4 sm:$0xff]  }
 0x2e9   :  { %5742 = vmatprep.subr.bf16.mxu1 %v7901_v49  ;;  %v7976_v49 = vld [vmem:[#allocation6 + $0x204] ss:$16 sps:$4 sm:$0xff]  }
 0x2eb   :  { %5579 = vmatpush1.bf16.msra.mxu0 %v7896_v56  ;;  %v3998_v56 = vsel %vm3982_vm1, %v7766_v40, %v3990_v45  ;;  %v8037_v40 = vld [vmem:[#allocation6 + $0x348] ss:$16 sps:$4 sm:$0xff]   ;;  %v736_v45 = vsub.s32 2, %v8999_v59 }
 0x2ec   :  { %5743 = vmatpush1.bf16.msra.mxu1 %v7899_v50  ;;  %5580 = vmatprep.subr.bf16.mxu0 %v7904_v48  ;;  %v7974_v50 = vld [vmem:[#allocation6 + $0x200] ss:$16 sps:$4 sm:$0xff]   ;;  %v4001_v48 = vsel %vm3985_vm2, %v7769_v39, %v3993_v46  ;;  %v8045_v39 = vld [vmem:[#allocation6 + $0x36c] ss:$16 sps:$4 sm:$0xff]  }
 0x2ed   :  { %5744 = vmatprep.subr.bf16.mxu1 %v7907_v51  ;;  %v4263_v51 = vpack.c.bf16 %v3998_v56, %v3998_v56  ;;  %v8046_v46 = vld [vmem:[#allocation6 + $0x380] ss:$16 sps:$4 sm:$0xff]   ;;  %v8057_v56 = vld [vmem:[#allocation6 + $0x3ac] ss:$16 sps:$4 sm:$0xff]  }
 0x2ef   :  { %5581 = vmatpush1.bf16.msra.mxu0 %v7902_v52  ;;  %v7977_v52 = vld [vmem:[#allocation6 + $0x208] ss:$16 sps:$4 sm:$0xff]  }
 0x2f0   :  { %5745 = vmatpush1.bf16.msra.mxu1 %v7905_v53  ;;  %5582 = vmatprep.subr.bf16.mxu0 %v7910_v54  ;;  %v7982_v53 = vld [vmem:[#allocation6 + $0x224] ss:$16 sps:$4 sm:$0xff]   ;;  %v4266_v54 = vpack.c.bf16 %v4001_v48, %v4001_v48 }
 0x2f1   :  { %5746 = vmatprep.subr.bf16.mxu1 %v7913_v55  ;;  %v7985_v55 = vld [vmem:[#allocation6 + $0x22c] ss:$16 sps:$4 sm:$0xff]   ;;  %v8060_v48 = vld [vmem:[#allocation6 + $0x3c4] ss:$16 sps:$4 sm:$0xff]  }
 0x2f3   :  { %5583 = vmatpush1.bf16.msra.mxu0 %v7908_v58  ;;  %v7980_v58 = vld [vmem:[#allocation6 + $0x220] ss:$16 sps:$4 sm:$0xff]  }
 0x2f4   :  { %5747 = vmatpush1.bf16.msra.mxu1 %v7911_v60  ;;  %5584 = vmatprep.subr.bf16.mxu0 %v7916_v61  ;;  %v7983_v60 = vld [vmem:[#allocation6 + $0x228] ss:$16 sps:$4 sm:$0xff]   ;;  %v7988_v61 = vld [vmem:[#allocation6 + $0x244] ss:$16 sps:$4 sm:$0xff]  }
 0x2f5   :  { %5748 = vmatprep.subr.bf16.mxu1 %v7919_v62  ;;  %v7991_v62 = vld [vmem:[#allocation6 + $0x24c] ss:$16 sps:$4 sm:$0xff]  }
 0x2f7   :  { %5585 = vmatpush1.bf16.msra.mxu0 %v7914_v63  ;;  %v7986_v63 = vld [vmem:[#allocation6 + $0x240] ss:$16 sps:$4 sm:$0xff]  }
 0x2f8   :  { %5749 = vmatpush1.bf16.msra.mxu1 %v7917_v0  ;;  %5586 = vmatprep.subr.bf16.mxu0 %v7922_v1  ;;  %v7989_v0 = vld [vmem:[#allocation6 + $0x248] ss:$16 sps:$4 sm:$0xff]   ;;  %v7994_v1 = vld [vmem:[#allocation6 + $0x264] ss:$16 sps:$4 sm:$0xff]  }
 0x2f9   :  { %5750 = vmatprep.subr.bf16.mxu1 %v7925_v2  ;;  %v7997_v2 = vld [vmem:[#allocation6 + $0x26c] ss:$16 sps:$4 sm:$0xff]  }
 0x2fb   :  { %5587 = vmatpush1.bf16.msra.mxu0 %v7920_v3  ;;  %v7992_v3 = vld [vmem:[#allocation6 + $0x260] ss:$16 sps:$4 sm:$0xff]  }
 0x2fc   :  { %5751 = vmatpush1.bf16.msra.mxu1 %v7923_v6  ;;  %5588 = vmatprep.subr.bf16.mxu0 %v7928_v10  ;;  %v7995_v6 = vld [vmem:[#allocation6 + $0x268] ss:$16 sps:$4 sm:$0xff]   ;;  %v8000_v10 = vld [vmem:[#allocation6 + $0x284] ss:$16 sps:$4 sm:$0xff]  }
 0x2fd   :  { %5752 = vmatprep.subr.bf16.mxu1 %v7931_v11  ;;  %v8003_v11 = vld [vmem:[#allocation6 + $0x28c] ss:$16 sps:$4 sm:$0xff]  }
 0x2ff   :  { %5589 = vmatpush1.bf16.msra.mxu0 %v7926_v14  ;;  %v7998_v14 = vld [vmem:[#allocation6 + $0x280] ss:$16 sps:$4 sm:$0xff]  }
 0x300   :  { %5753 = vmatpush1.bf16.msra.mxu1 %v7929_v15  ;;  %5590 = vmatprep.subr.bf16.mxu0 %v7934_v16  ;;  %v8001_v15 = vld [vmem:[#allocation6 + $0x288] ss:$16 sps:$4 sm:$0xff]   ;;  %v8006_v16 = vld [vmem:[#allocation6 + $0x2a4] ss:$16 sps:$4 sm:$0xff]  }
 0x301   :  { %5754 = vmatprep.subr.bf16.mxu1 %v7937_v17  ;;  %v8009_v17 = vld [vmem:[#allocation6 + $0x2ac] ss:$16 sps:$4 sm:$0xff]  }
 0x303   :  { %5591 = vmatpush1.bf16.msra.mxu0 %v7932_v18  ;;  %v8004_v18 = vld [vmem:[#allocation6 + $0x2a0] ss:$16 sps:$4 sm:$0xff]  }
 0x304   :  { %5755 = vmatpush1.bf16.msra.mxu1 %v7935_v19  ;;  %5592 = vmatprep.subr.bf16.mxu0 %v7940_v20  ;;  %v8007_v19 = vld [vmem:[#allocation6 + $0x2a8] ss:$16 sps:$4 sm:$0xff]   ;;  %v8012_v20 = vld [vmem:[#allocation6 + $0x2c4] ss:$16 sps:$4 sm:$0xff]  }
 0x305   :  { %5756 = vmatprep.subr.bf16.mxu1 %v7943_v21  ;;  %v8015_v21 = vld [vmem:[#allocation6 + $0x2cc] ss:$16 sps:$4 sm:$0xff]  }
 0x307   :  { %5593 = vmatpush1.bf16.msra.mxu0 %v7938_v57  ;;  %v8010_v57 = vld [vmem:[#allocation6 + $0x2c0] ss:$16 sps:$4 sm:$0xff]  }
 0x308   :  { %5757 = vmatpush1.bf16.msra.mxu1 %v7941_v22  ;;  %5594 = vmatprep.subr.bf16.mxu0 %v7946_v24  ;;  %v8013_v22 = vld [vmem:[#allocation6 + $0x2c8] ss:$16 sps:$4 sm:$0xff]   ;;  %v8018_v24 = vld [vmem:[#allocation6 + $0x2e4] ss:$16 sps:$4 sm:$0xff]  }
 0x309   :  { %5758 = vmatprep.subr.bf16.mxu1 %v7949_v26  ;;  %v8021_v26 = vld [vmem:[#allocation6 + $0x2ec] ss:$16 sps:$4 sm:$0xff]  }
 0x30b   :  { %5595 = vmatpush1.bf16.msra.mxu0 %v7944_v12  ;;  %v8016_v12 = vld [vmem:[#allocation6 + $0x2e0] ss:$16 sps:$4 sm:$0xff]  }
 0x30c   :  { %5759 = vmatpush1.bf16.msra.mxu1 %v7947_v27  ;;  %5596 = vmatprep.subr.bf16.mxu0 %v7952_v28  ;;  %v8019_v27 = vld [vmem:[#allocation6 + $0x2e8] ss:$16 sps:$4 sm:$0xff]   ;;  %v8024_v28 = vld [vmem:[#allocation6 + $0x304] ss:$16 sps:$4 sm:$0xff]  }
 0x30d   :  { %5760 = vmatprep.subr.bf16.mxu1 %v7955_v30  ;;  %v8027_v30 = vld [vmem:[#allocation6 + $0x30c] ss:$16 sps:$4 sm:$0xff]  }
 0x30f   :  { %5597 = vmatpush1.bf16.msra.mxu0 %v7950_v32  ;;  %v8022_v32 = vld [vmem:[#allocation6 + $0x300] ss:$16 sps:$4 sm:$0xff]  }
 0x310   :  { %5761 = vmatpush1.bf16.msra.mxu1 %v7953_v33  ;;  %5598 = vmatprep.subr.bf16.mxu0 %v7958_v35  ;;  %v8025_v33 = vld [vmem:[#allocation6 + $0x308] ss:$16 sps:$4 sm:$0xff]   ;;  %v8030_v35 = vld [vmem:[#allocation6 + $0x324] ss:$16 sps:$4 sm:$0xff]  }
 0x311   :  { %5762 = vmatprep.subr.bf16.mxu1 %v7961_v25  ;;  %v8028_v25 = vld [vmem:[#allocation6 + $0x320] ss:$16 sps:$4 sm:$0xff]  }
 0x313   :  { %5599 = vmatpush1.bf16.msra.mxu0 %v7956_v9  ;;  %v8036_v9 = vld [vmem:[#allocation6 + $0x344] ss:$16 sps:$4 sm:$0xff]  }
 0x314   :  { %5763 = vmatpush1.bf16.msra.mxu1 %v7959_v37  ;;  %5600 = vmatprep.subr.bf16.mxu0 %v7964_v38  ;;  %v8039_v37 = vld [vmem:[#allocation6 + $0x34c] ss:$16 sps:$4 sm:$0xff]   ;;  %v8034_v38 = vld [vmem:[#allocation6 + $0x340] ss:$16 sps:$4 sm:$0xff]  }
 0x315   :  { %5764 = vmatprep.subr.bf16.mxu1 %v7967_v41  ;;  %v8042_v41 = vld [vmem:[#allocation6 + $0x364] ss:$16 sps:$4 sm:$0xff]  }
 0x317   :  { %5601 = vmatpush1.bf16.msra.mxu0 %v7962_v42  ;;  %v8040_v42 = vld [vmem:[#allocation6 + $0x360] ss:$16 sps:$4 sm:$0xff]  }
 0x318   :  { %5765 = vmatpush1.bf16.msra.mxu1 %v7965_v43  ;;  %5602 = vmatprep.subr.bf16.mxu0 %v7970_v44  ;;  %v8043_v43 = vld [vmem:[#allocation6 + $0x368] ss:$16 sps:$4 sm:$0xff]   ;;  %v8048_v44 = vld [vmem:[#allocation6 + $0x384] ss:$16 sps:$4 sm:$0xff]  }
 0x319   :  { %5766 = vmatprep.subr.bf16.mxu1 %v7973_v34  ;;  %v8051_v34 = vld [vmem:[#allocation6 + $0x38c] ss:$16 sps:$4 sm:$0xff]  }
 0x31b   :  { %5603 = vmatpush1.bf16.msra.mxu0 %v7968_v47  ;;  %v8049_v47 = vld [vmem:[#allocation6 + $0x388] ss:$16 sps:$4 sm:$0xff]  }
 0x31c   :  { %5767 = vmatpush1.bf16.msra.mxu1 %v7971_v4  ;;  %5613 = vmatprep.subr.bf16.mxu0 %v7976_v49  ;;  %v8054_v4 = vld [vmem:[#allocation6 + $0x3a4] ss:$16 sps:$4 sm:$0xff]   ;;  %v737_v49 = vrot.slane %v9004_v7, %v736_v45 }
 0x31d   :  { %5777 = vmatprep.subr.bf16.mxu1 %v7979_v13  ;;  %v8052_v13 = vld [vmem:[#allocation6 + $0x3a0] ss:$16 sps:$4 sm:$0xff]  }
 0x31e   :  { %5605 = vmatmul.mubr.bf16.vlgmr.msra.gmra.mrb[8].mxu0 %v4263_v51 }
 0x31f   :  { %5769 = vmatmul.mubr.bf16.vlgmr.msra.gmra.mrb[8].mxu1 %v4263_v51  ;;  %5614 = vmatpush1.bf16.msra.mxu0 %v7974_v50  ;;  %v8055_v50 = vld [vmem:[#allocation6 + $0x3a8] ss:$16 sps:$4 sm:$0xff]   ;;  %v7768_v51 = vadd.f32 %v8993_v8, %v737_v49  ;;  %v8075_v8 = vld [vmem:[#allocation6 + $0x40c] ss:$16 sps:$4 sm:$0xff]   ;;  %v8130_v49 = vld [vmem:[#allocation6 + $0x540] ss:$16 sps:$4 sm:$0xff]  }
 0x320   :  { %5645 = vmatprep.mubr.bf16.mxu0 %v4266_v54  ;;  %5778 = vmatpush1.bf16.msra.mxu1 %v7977_v52  ;;  %v8063_v52 = vld [vmem:[#allocation6 + $0x3cc] ss:$16 sps:$4 sm:$0xff]  }
 0x321   :  { %5809 = vmatprep.mubr.bf16.mxu1 %v4266_v54  ;;  %5615 = vmatprep.subr.bf16.mxu0 %v7982_v53  ;;  %v8058_v53 = vld [vmem:[#allocation6 + $0x3c0] ss:$16 sps:$4 sm:$0xff]   ;;  %v8061_v54 = vld [vmem:[#allocation6 + $0x3c8] ss:$16 sps:$4 sm:$0xff]   ;;  %vm3984_vm3 = vcmp.gt.f32.partialorder %v7768_v51, 0.0 }
 0x322   :  { %5779 = vmatprep.subr.bf16.mxu1 %v7985_v55  ;;  %v8066_v55 = vld [vmem:[#allocation6 + $0x3e4] ss:$16 sps:$4 sm:$0xff]  }
 0x323   :  { %5616 = vmatpush1.bf16.msra.mxu0 %v7980_v58  ;;  %v3992_v58 = vmul.f32 0.2, %v7768_v51 }
 0x324   :  { %5780 = vmatpush1.bf16.msra.mxu1 %v7983_v60  ;;  %5617 = vmatprep.subr.bf16.mxu0 %v7988_v61  ;;  %v8069_v60 = vld [vmem:[#allocation6 + $0x3ec] ss:$16 sps:$4 sm:$0xff]   ;;  %v8064_v61 = vld [vmem:[#allocation6 + $0x3e0] ss:$16 sps:$4 sm:$0xff]  }
 0x325   :  { %5781 = vmatprep.subr.bf16.mxu1 %v7991_v62  ;;  %v8067_v62 = vld [vmem:[#allocation6 + $0x3e8] ss:$16 sps:$4 sm:$0xff]  }
 0x327   :  { %5618 = vmatpush1.bf16.msra.mxu0 %v7986_v63  ;;  %v8072_v63 = vld [vmem:[#allocation6 + $0x404] ss:$16 sps:$4 sm:$0xff]  }
 0x328   :  { %5782 = vmatpush1.bf16.msra.mxu1 %v7989_v0  ;;  %5619 = vmatprep.subr.bf16.mxu0 %v7994_v1  ;;  %v4000_v0 = vsel %vm3984_vm3, %v7768_v51, %v3992_v58  ;;  %v8070_v1 = vld [vmem:[#allocation6 + $0x400] ss:$16 sps:$4 sm:$0xff]   ;;  %v8139_v51 = vld [vmem:[#allocation6 + $0x568] ss:$16 sps:$4 sm:$0xff]   ;;  %v8150_v58 = vld [vmem:[#allocation6 + $0x5a4] ss:$16 sps:$4 sm:$0xff]  }
 0x329   :  { %5783 = vmatprep.subr.bf16.mxu1 %v7997_v2  ;;  %v4265_v2 = vpack.c.bf16 %v4000_v0, %v4000_v0  ;;  %v8159_v0 = vld [vmem:[#allocation6 + $0x5cc] ss:$16 sps:$4 sm:$0xff]  }
 0x32b   :  { %5620 = vmatpush1.bf16.msra.mxu0 %v7992_v3  ;;  %v8073_v3 = vld [vmem:[#allocation6 + $0x408] ss:$16 sps:$4 sm:$0xff]  }
 0x32c   :  { %5784 = vmatpush1.bf16.msra.mxu1 %v7995_v6  ;;  %5621 = vmatprep.subr.bf16.mxu0 %v8000_v10  ;;  %v8078_v6 = vld [vmem:[#allocation6 + $0x424] ss:$16 sps:$4 sm:$0xff]   ;;  %v8081_v10 = vld [vmem:[#allocation6 + $0x42c] ss:$16 sps:$4 sm:$0xff]  }
 0x32d   :  { %5785 = vmatprep.subr.bf16.mxu1 %v8003_v11  ;;  %v8076_v11 = vld [vmem:[#allocation6 + $0x420] ss:$16 sps:$4 sm:$0xff]  }
 0x32f   :  { %5622 = vmatpush1.bf16.msra.mxu0 %v7998_v14  ;;  %v8079_v14 = vld [vmem:[#allocation6 + $0x428] ss:$16 sps:$4 sm:$0xff]  }
 0x330   :  { %5786 = vmatpush1.bf16.msra.mxu1 %v8001_v15  ;;  %5623 = vmatprep.subr.bf16.mxu0 %v8006_v16  ;;  %v8084_v15 = vld [vmem:[#allocation6 + $0x444] ss:$16 sps:$4 sm:$0xff]   ;;  %v8087_v16 = vld [vmem:[#allocation6 + $0x44c] ss:$16 sps:$4 sm:$0xff]  }
 0x331   :  { %5787 = vmatprep.subr.bf16.mxu1 %v8009_v17  ;;  %v8082_v17 = vld [vmem:[#allocation6 + $0x440] ss:$16 sps:$4 sm:$0xff]  }
 0x333   :  { %5624 = vmatpush1.bf16.msra.mxu0 %v8004_v18  ;;  %v8085_v18 = vld [vmem:[#allocation6 + $0x448] ss:$16 sps:$4 sm:$0xff]  }
 0x334   :  { %5788 = vmatpush1.bf16.msra.mxu1 %v8007_v19  ;;  %5625 = vmatprep.subr.bf16.mxu0 %v8012_v20  ;;  %v8090_v19 = vld [vmem:[#allocation6 + $0x464] ss:$16 sps:$4 sm:$0xff]   ;;  %v8093_v20 = vld [vmem:[#allocation6 + $0x46c] ss:$16 sps:$4 sm:$0xff]  }
 0x335   :  { %5789 = vmatprep.subr.bf16.mxu1 %v8015_v21  ;;  %v8088_v21 = vld [vmem:[#allocation6 + $0x460] ss:$16 sps:$4 sm:$0xff]  }
 0x337   :  { %5626 = vmatpush1.bf16.msra.mxu0 %v8010_v57  ;;  %v8091_v57 = vld [vmem:[#allocation6 + $0x468] ss:$16 sps:$4 sm:$0xff]  }
 0x338   :  { %5790 = vmatpush1.bf16.msra.mxu1 %v8013_v22  ;;  %5627 = vmatprep.subr.bf16.mxu0 %v8018_v24  ;;  %v8096_v22 = vld [vmem:[#allocation6 + $0x484] ss:$16 sps:$4 sm:$0xff]   ;;  %v8099_v24 = vld [vmem:[#allocation6 + $0x48c] ss:$16 sps:$4 sm:$0xff]  }
 0x339   :  { %5791 = vmatprep.subr.bf16.mxu1 %v8021_v26  ;;  %v8094_v26 = vld [vmem:[#allocation6 + $0x480] ss:$16 sps:$4 sm:$0xff]  }
 0x33b   :  { %5628 = vmatpush1.bf16.msra.mxu0 %v8016_v12  ;;  %v8097_v12 = vld [vmem:[#allocation6 + $0x488] ss:$16 sps:$4 sm:$0xff]  }
 0x33c   :  { %5792 = vmatpush1.bf16.msra.mxu1 %v8019_v27  ;;  %5629 = vmatprep.subr.bf16.mxu0 %v8024_v28  ;;  %v8102_v27 = vld [vmem:[#allocation6 + $0x4a4] ss:$16 sps:$4 sm:$0xff]   ;;  %v8105_v28 = vld [vmem:[#allocation6 + $0x4ac] ss:$16 sps:$4 sm:$0xff]  }
 0x33d   :  { %5793 = vmatprep.subr.bf16.mxu1 %v8027_v30  ;;  %v8100_v30 = vld [vmem:[#allocation6 + $0x4a0] ss:$16 sps:$4 sm:$0xff]  }
 0x33f   :  { %5630 = vmatpush1.bf16.msra.mxu0 %v8022_v32  ;;  %v8103_v32 = vld [vmem:[#allocation6 + $0x4a8] ss:$16 sps:$4 sm:$0xff]  }
 0x340   :  { %5794 = vmatpush1.bf16.msra.mxu1 %v8025_v33  ;;  %5631 = vmatprep.subr.bf16.mxu0 %v8030_v35  ;;  %v8108_v33 = vld [vmem:[#allocation6 + $0x4c4] ss:$16 sps:$4 sm:$0xff]   ;;  %v8111_v35 = vld [vmem:[#allocation6 + $0x4cc] ss:$16 sps:$4 sm:$0xff]  }
 0x341   :  { %5795 = vmatprep.subr.bf16.mxu1 %v8033_v36  ;;  %v8106_v36 = vld [vmem:[#allocation6 + $0x4c0] ss:$16 sps:$4 sm:$0xff]  }
 0x343   :  { %5632 = vmatpush1.bf16.msra.mxu0 %v8028_v25  ;;  %v8109_v25 = vld [vmem:[#allocation6 + $0x4c8] ss:$16 sps:$4 sm:$0xff]  }
 0x344   :  { %5796 = vmatpush1.bf16.msra.mxu1 %v8031_v23  ;;  %5633 = vmatprep.subr.bf16.mxu0 %v8036_v9  ;;  %v8114_v23 = vld [vmem:[#allocation6 + $0x4e4] ss:$16 sps:$4 sm:$0xff]   ;;  %v8117_v9 = vld [vmem:[#allocation6 + $0x4ec] ss:$16 sps:$4 sm:$0xff]  }
 0x345   :  { %5797 = vmatprep.subr.bf16.mxu1 %v8039_v37  ;;  %v8112_v37 = vld [vmem:[#allocation6 + $0x4e0] ss:$16 sps:$4 sm:$0xff]  }
 0x347   :  { %5634 = vmatpush1.bf16.msra.mxu0 %v8034_v38  ;;  %v8115_v38 = vld [vmem:[#allocation6 + $0x4e8] ss:$16 sps:$4 sm:$0xff]  }
 0x348   :  { %5798 = vmatpush1.bf16.msra.mxu1 %v8037_v40  ;;  %5635 = vmatprep.subr.bf16.mxu0 %v8042_v41  ;;  %v8120_v40 = vld [vmem:[#allocation6 + $0x504] ss:$16 sps:$4 sm:$0xff]   ;;  %v8123_v41 = vld [vmem:[#allocation6 + $0x50c] ss:$16 sps:$4 sm:$0xff]  }
 0x349   :  { %5799 = vmatprep.subr.bf16.mxu1 %v8045_v39  ;;  %v8118_v39 = vld [vmem:[#allocation6 + $0x500] ss:$16 sps:$4 sm:$0xff]  }
 0x34b   :  { %5636 = vmatpush1.bf16.msra.mxu0 %v8040_v42  ;;  %v8121_v42 = vld [vmem:[#allocation6 + $0x508] ss:$16 sps:$4 sm:$0xff]  }
 0x34c   :  { %5800 = vmatpush1.bf16.msra.mxu1 %v8043_v43  ;;  %5637 = vmatprep.subr.bf16.mxu0 %v8048_v44  ;;  %v8126_v43 = vld [vmem:[#allocation6 + $0x524] ss:$16 sps:$4 sm:$0xff]   ;;  %v8129_v44 = vld [vmem:[#allocation6 + $0x52c] ss:$16 sps:$4 sm:$0xff]  }
 0x34d   :  { %5801 = vmatprep.subr.bf16.mxu1 %v8051_v34  ;;  %v8124_v34 = vld [vmem:[#allocation6 + $0x520] ss:$16 sps:$4 sm:$0xff]  }
 0x34f   :  { %5638 = vmatpush1.bf16.msra.mxu0 %v8046_v46  ;;  %v8127_v46 = vld [vmem:[#allocation6 + $0x528] ss:$16 sps:$4 sm:$0xff]  }
 0x350   :  { %5802 = vmatpush1.bf16.msra.mxu1 %v8049_v47  ;;  %5639 = vmatprep.subr.bf16.mxu0 %v8054_v4  ;;  %v8132_v47 = vld [vmem:[#allocation6 + $0x544] ss:$16 sps:$4 sm:$0xff]   ;;  %v8135_v4 = vld [vmem:[#allocation6 + $0x54c] ss:$16 sps:$4 sm:$0xff]  }
 0x351   :  { %5803 = vmatprep.subr.bf16.mxu1 %v8057_v56  ;;  %v8133_v56 = vld [vmem:[#allocation6 + $0x548] ss:$16 sps:$4 sm:$0xff]  }
 0x353   :  { %5640 = vmatpush1.bf16.msra.mxu0 %v8052_v13  ;;  %v8138_v13 = vld [vmem:[#allocation6 + $0x564] ss:$16 sps:$4 sm:$0xff]  }
 0x354   :  { %5804 = vmatpush1.bf16.msra.mxu1 %v8055_v50  ;;  %5641 = vmatprep.subr.bf16.mxu0 %v8060_v48  ;;  %v8141_v50 = vld [vmem:[#allocation6 + $0x56c] ss:$16 sps:$4 sm:$0xff]   ;;  %v8136_v48 = vld [vmem:[#allocation6 + $0x560] ss:$16 sps:$4 sm:$0xff]  }
 0x355   :  { %5805 = vmatprep.subr.bf16.mxu1 %v8063_v52  ;;  %v8144_v52 = vld [vmem:[#allocation6 + $0x584] ss:$16 sps:$4 sm:$0xff]  }
 0x357   :  { %5642 = vmatpush1.bf16.msra.mxu0 %v8058_v53  ;;  %v8147_v53 = vld [vmem:[#allocation6 + $0x58c] ss:$16 sps:$4 sm:$0xff]  }
 0x358   :  { %5806 = vmatpush1.bf16.msra.mxu1 %v8061_v54  ;;  %5643 = vmatprep.subr.bf16.mxu0 %v8066_v55  ;;  %v8142_v54 = vld [vmem:[#allocation6 + $0x580] ss:$16 sps:$4 sm:$0xff]   ;;  %v8145_v55 = vld [vmem:[#allocation6 + $0x588] ss:$16 sps:$4 sm:$0xff]  }
 0x359   :  { %5807 = vmatprep.subr.bf16.mxu1 %v8069_v60  ;;  %v8153_v60 = vld [vmem:[#allocation6 + $0x5ac] ss:$16 sps:$4 sm:$0xff]  }
 0x35b   :  { %5644 = vmatpush1.bf16.msra.mxu0 %v8064_v61  ;;  %v8148_v61 = vld [vmem:[#allocation6 + $0x5a0] ss:$16 sps:$4 sm:$0xff]  }
 0x35c   :  { %5808 = vmatpush1.bf16.msra.mxu1 %v8067_v62  ;;  %5654 = vmatprep.subr.bf16.mxu0 %v8072_v63  ;;  %v8151_v62 = vld [vmem:[#allocation6 + $0x5a8] ss:$16 sps:$4 sm:$0xff]   ;;  %v8156_v63 = vld [vmem:[#allocation6 + $0x5c4] ss:$16 sps:$4 sm:$0xff]  }
 0x35d   :  { %5818 = vmatprep.subr.bf16.mxu1 %v8075_v8  ;;  %v8154_v8 = vld [vmem:[#allocation6 + $0x5c0] ss:$16 sps:$4 sm:$0xff]  }
 0x35e   :  { %5646 = vmatmul.mubr.bf16.vlgmr.msra.gmra.mrb[8].mxu0 %v4265_v2 }
 0x35f   :  { %5810 = vmatmul.mubr.bf16.vlgmr.msra.gmra.mrb[8].mxu1 %v4265_v2  ;;  %5655 = vmatpush1.bf16.msra.mxu0 %v8070_v1  ;;  %v8157_v1 = vld [vmem:[#allocation6 + $0x5c8] ss:$16 sps:$4 sm:$0xff]   ;;  %v8162_v2 = vld [vmem:[#allocation6 + $0x5e4] ss:$16 sps:$4 sm:$0xff]  }
 0x360   :  { %5819 = vmatpush1.bf16.msra.mxu1 %v8073_v3  ;;  %5656 = vmatprep.subr.bf16.mxu0 %v8078_v6  ;;  %v8165_v3 = vld [vmem:[#allocation6 + $0x5ec] ss:$16 sps:$4 sm:$0xff]   ;;  %v8160_v6 = vld [vmem:[#allocation6 + $0x5e0] ss:$16 sps:$4 sm:$0xff]  }
 0x361   :  { %5820 = vmatprep.subr.bf16.mxu1 %v8081_v10  ;;  %v8163_v10 = vld [vmem:[#allocation6 + $0x5e8] ss:$16 sps:$4 sm:$0xff]  }
 0x363   :  { %5657 = vmatpush1.bf16.msra.mxu0 %v8076_v11  ;;  %v8168_v11 = vld [vmem:[#allocation6 + $0x604] ss:$16 sps:$4 sm:$0xff]  }
 0x364   :  { %5821 = vmatpush1.bf16.msra.mxu1 %v8079_v14  ;;  %5658 = vmatprep.subr.bf16.mxu0 %v8084_v15  ;;  %v8171_v14 = vld [vmem:[#allocation6 + $0x60c] ss:$16 sps:$4 sm:$0xff]   ;;  %v744_v15 = vsub.s32 4, %v8999_v59 }
 0x365   :  { %5822 = vmatprep.subr.bf16.mxu1 %v8087_v16  ;;  %v748_v16 = vsub.s32 5, %v8999_v59 }
 0x367   :  { %5659 = vmatpush1.bf16.msra.mxu0 %v8082_v17  ;;  %v756_v17 = vsub.s32 7, %v8999_v59 }
 0x368   :  { %5823 = vmatpush1.bf16.msra.mxu1 %v8085_v18  ;;  %5660 = vmatprep.subr.bf16.mxu0 %v8090_v19  ;;  %v745_v18 = vrot.slane %v9004_v7, %v744_v15  ;;  %v749_v19 = vrot.slane %v9004_v7, %v748_v16  ;;  %v8217_v15 = vld [vmem:[#allocation6 + $0x708] ss:$16 sps:$4 sm:$0xff]   ;;  %v8222_v16 = vld [vmem:[#allocation6 + $0x724] ss:$16 sps:$4 sm:$0xff]  }
 0x369   :  { %5824 = vmatprep.subr.bf16.mxu1 %v8093_v20  ;;  %v757_v20 = vrot.slane %v9004_v7, %v756_v17  ;;  %v8225_v17 = vld [vmem:[#allocation6 + $0x72c] ss:$16 sps:$4 sm:$0xff]  }
 0x36b   :  { %5661 = vmatpush1.bf16.msra.mxu0 %v8088_v21 }
 0x36c   :  { %5825 = vmatpush1.bf16.msra.mxu1 %v8091_v57  ;;  %5662 = vmatprep.subr.bf16.mxu0 %v8096_v22 }
 0x36d   :  { %5826 = vmatprep.subr.bf16.mxu1 %v8099_v24 }
 0x36f   :  { %5663 = vmatpush1.bf16.msra.mxu0 %v8094_v26 }
 0x370   :  { %5827 = vmatpush1.bf16.msra.mxu1 %v8097_v12  ;;  %5664 = vmatprep.subr.bf16.mxu0 %v8102_v27 }
 0x371   :  { %5828 = vmatprep.subr.bf16.mxu1 %v8105_v28 }
 0x373   :  { %5665 = vmatpush1.bf16.msra.mxu0 %v8100_v30 }
 0x374   :  { %5829 = vmatpush1.bf16.msra.mxu1 %v8103_v32  ;;  %5666 = vmatprep.subr.bf16.mxu0 %v8108_v33 }
 0x375   :  { %5830 = vmatprep.subr.bf16.mxu1 %v8111_v35 }
 0x377   :  { %5667 = vmatpush1.bf16.msra.mxu0 %v8106_v36 }
 0x378   :  { %5831 = vmatpush1.bf16.msra.mxu1 %v8109_v25  ;;  %5668 = vmatprep.subr.bf16.mxu0 %v8114_v23 }
 0x379   :  { %5832 = vmatprep.subr.bf16.mxu1 %v8117_v9 }
 0x37b   :  { %5669 = vmatpush1.bf16.msra.mxu0 %v8112_v37  ;;  %v8166_v37 = vld [vmem:[#allocation6 + $0x600] ss:$16 sps:$4 sm:$0xff]  }
 0x37c   :  { %5833 = vmatpush1.bf16.msra.mxu1 %v8115_v38  ;;  %5670 = vmatprep.subr.bf16.mxu0 %v8120_v40  ;;  %v8169_v38 = vld [vmem:[#allocation6 + $0x608] ss:$16 sps:$4 sm:$0xff]  }
 0x37d   :  { %5834 = vmatprep.subr.bf16.mxu1 %v8123_v41 }
 0x37f   :  { %5671 = vmatpush1.bf16.msra.mxu0 %v8118_v39  ;;  %v8174_v39 = vld [vmem:[#allocation6 + $0x624] ss:$16 sps:$4 sm:$0xff]  }
 0x380   :  { %5835 = vmatpush1.bf16.msra.mxu1 %v8121_v42  ;;  %5672 = vmatprep.subr.bf16.mxu0 %v8126_v43  ;;  %v8177_v42 = vld [vmem:[#allocation6 + $0x62c] ss:$16 sps:$4 sm:$0xff]  }
 0x381   :  { %5836 = vmatprep.subr.bf16.mxu1 %v8129_v44  ;;  %v8172_v44 = vld [vmem:[#allocation6 + $0x620] ss:$16 sps:$4 sm:$0xff]  }
 0x383   :  { %5673 = vmatpush1.bf16.msra.mxu0 %v8124_v34  ;;  %v8175_v34 = vld [vmem:[#allocation6 + $0x628] ss:$16 sps:$4 sm:$0xff]  }
 0x384   :  { %5837 = vmatpush1.bf16.msra.mxu1 %v8127_v46  ;;  %5674 = vmatprep.subr.bf16.mxu0 %v8132_v47  ;;  %v8180_v46 = vld [vmem:[#allocation6 + $0x644] ss:$16 sps:$4 sm:$0xff]   ;;  %v8183_v47 = vld [vmem:[#allocation6 + $0x64c] ss:$16 sps:$4 sm:$0xff]  }
 0x385   :  { %5838 = vmatprep.subr.bf16.mxu1 %v8135_v4  ;;  %v8178_v4 = vld [vmem:[#allocation6 + $0x640] ss:$16 sps:$4 sm:$0xff]  }
 0x387   :  { %5675 = vmatpush1.bf16.msra.mxu0 %v8130_v49  ;;  %v8181_v49 = vld [vmem:[#allocation6 + $0x648] ss:$16 sps:$4 sm:$0xff]  }
 0x388   :  { %5839 = vmatpush1.bf16.msra.mxu1 %v8133_v56  ;;  %5676 = vmatprep.subr.bf16.mxu0 %v8138_v13  ;;  %v8186_v56 = vld [vmem:[#allocation6 + $0x664] ss:$16 sps:$4 sm:$0xff]   ;;  %v8189_v13 = vld [vmem:[#allocation6 + $0x66c] ss:$16 sps:$4 sm:$0xff]  }
 0x389   :  { %5840 = vmatprep.subr.bf16.mxu1 %v8141_v50  ;;  %v8184_v50 = vld [vmem:[#allocation6 + $0x660] ss:$16 sps:$4 sm:$0xff]  }
 0x38b   :  { %5677 = vmatpush1.bf16.msra.mxu0 %v8136_v48  ;;  %v8187_v48 = vld [vmem:[#allocation6 + $0x668] ss:$16 sps:$4 sm:$0xff]  }
 0x38c   :  { %5841 = vmatpush1.bf16.msra.mxu1 %v8139_v51  ;;  %5678 = vmatprep.subr.bf16.mxu0 %v8144_v52  ;;  %v8192_v51 = vld [vmem:[#allocation6 + $0x684] ss:$16 sps:$4 sm:$0xff]   ;;  %v8195_v52 = vld [vmem:[#allocation6 + $0x68c] ss:$16 sps:$4 sm:$0xff]  }
 0x38d   :  { %5842 = vmatprep.subr.bf16.mxu1 %v8147_v53  ;;  %v8190_v53 = vld [vmem:[#allocation6 + $0x680] ss:$16 sps:$4 sm:$0xff]  }
 0x38f   :  { %5679 = vmatpush1.bf16.msra.mxu0 %v8142_v54  ;;  %v8193_v54 = vld [vmem:[#allocation6 + $0x688] ss:$16 sps:$4 sm:$0xff]  }
 0x390   :  { %5843 = vmatpush1.bf16.msra.mxu1 %v8145_v55  ;;  %5680 = vmatprep.subr.bf16.mxu0 %v8150_v58  ;;  %v8198_v55 = vld [vmem:[#allocation6 + $0x6a4] ss:$16 sps:$4 sm:$0xff]   ;;  %v8201_v58 = vld [vmem:[#allocation6 + $0x6ac] ss:$16 sps:$4 sm:$0xff]  }
 0x391   :  { %5844 = vmatprep.subr.bf16.mxu1 %v8153_v60  ;;  %v8196_v60 = vld [vmem:[#allocation6 + $0x6a0] ss:$16 sps:$4 sm:$0xff]  }
 0x393   :  { %5681 = vmatpush1.bf16.msra.mxu0 %v8148_v61  ;;  %v8199_v61 = vld [vmem:[#allocation6 + $0x6a8] ss:$16 sps:$4 sm:$0xff]  }
 0x394   :  { %5845 = vmatpush1.bf16.msra.mxu1 %v8151_v62  ;;  %5682 = vmatprep.subr.bf16.mxu0 %v8156_v63  ;;  %v8204_v62 = vld [vmem:[#allocation6 + $0x6c4] ss:$16 sps:$4 sm:$0xff]   ;;  %v8207_v63 = vld [vmem:[#allocation6 + $0x6cc] ss:$16 sps:$4 sm:$0xff]  }
 0x395   :  { %5846 = vmatprep.subr.bf16.mxu1 %v8159_v0  ;;  %v8202_v0 = vld [vmem:[#allocation6 + $0x6c0] ss:$16 sps:$4 sm:$0xff]  }
 0x397   :  { %5683 = vmatpush1.bf16.msra.mxu0 %v8154_v8  ;;  %v8205_v8 = vld [vmem:[#allocation6 + $0x6c8] ss:$16 sps:$4 sm:$0xff]  }
 0x398   :  { %5847 = vmatpush1.bf16.msra.mxu1 %v8157_v1  ;;  %5684 = vmatprep.subr.bf16.mxu0 %v8162_v2  ;;  %v8210_v1 = vld [vmem:[#allocation6 + $0x6e4] ss:$16 sps:$4 sm:$0xff]   ;;  %v8213_v2 = vld [vmem:[#allocation6 + $0x6ec] ss:$16 sps:$4 sm:$0xff]  }
 0x399   :  { %5848 = vmatprep.subr.bf16.mxu1 %v8165_v3  ;;  %v8208_v3 = vld [vmem:[#allocation6 + $0x6e0] ss:$16 sps:$4 sm:$0xff]  }
 0x39b   :  { %5685 = vmatpush1.bf16.msra.mxu0 %v8160_v6  ;;  %v8211_v6 = vld [vmem:[#allocation6 + $0x6e8] ss:$16 sps:$4 sm:$0xff]  }
 0x39c   :  { %5849 = vmatpush1.bf16.msra.mxu1 %v8163_v10  ;;  %5695 = vmatprep.subr.bf16.mxu0 %v8168_v11  ;;  %v8216_v10 = vld [vmem:[#allocation6 + $0x704] ss:$16 sps:$4 sm:$0xff]   ;;  %v8219_v11 = vld [vmem:[#allocation6 + $0x70c] ss:$16 sps:$4 sm:$0xff]  }
 0x39d   :  { %5859 = vmatprep.subr.bf16.mxu1 %v8171_v14  ;;  %v8214_v14 = vld [vmem:[#allocation6 + $0x700] ss:$16 sps:$4 sm:$0xff]  }
 0x3b1   :  { %v3811_v21 = vpop.f32.mrb[4].mxu0  ;;  %v9033_v22 = vpop.f32.mrb[4].mxu1 }
 0x3b2   :  { %v7770_v57 = vadd.f32 %v3811_v21, %v745_v18  ;;  %v3813_v24 = vpop.f32.mrb[5].mxu0  ;;  %v3977_v12 = vpop.f32.mrb[5].mxu1  ;;  %v8220_v18 = vld [vmem:[#allocation6 + $0x720] ss:$16 sps:$4 sm:$0xff]   ;;  %v8231_v21 = vld [vmem:[#allocation6 + $0x74c] ss:$16 sps:$4 sm:$0xff]  }
 0x3b3   :  { %v7771_v26 = vadd.f32 %v3813_v24, %v749_v19  ;;  %v3815_v27 = vpop.f32.mrb[6].mxu0  ;;  %v7773_v30 = vadd.f32 %v3977_v12, %v757_v20  ;;  %v3979_v32 = vpop.f32.mrb[6].mxu1  ;;  %v8223_v19 = vld [vmem:[#allocation6 + $0x728] ss:$16 sps:$4 sm:$0xff]   ;;  %v8228_v20 = vld [vmem:[#allocation6 + $0x744] ss:$16 sps:$4 sm:$0xff]  }
 0x3b4   :  { %vm3986_vm4 = vcmp.gt.f32.partialorder %v7770_v57, 0.0  ;;  %v3994_v28 = vmul.f32 0.2, %v7770_v57  ;;  %v3816_v33 = vpop.f32.mrb[7].mxu0  ;;  %v3980_v23 = vpop.f32.mrb[7].mxu1 }
 0x3b5   :  { %vm3987_vm5 = vcmp.gt.f32.partialorder %v7771_v26, 0.0  ;;  %v3995_v35 = vmul.f32 0.2, %v7771_v26  ;;  %vm3989_vm6 = vcmp.gt.f32.partialorder %v7773_v30, 0.0  ;;  %v3997_v25 = vmul.f32 0.2, %v7773_v30 }
 0x3b6   :  { %v4002_v36 = vsel %vm3986_vm4, %v7770_v57, %v3994_v28  ;;  %v8226_v57 = vld [vmem:[#allocation6 + $0x740] ss:$16 sps:$4 sm:$0xff]   ;;  %v8229_v24 = vld [vmem:[#allocation6 + $0x748] ss:$16 sps:$4 sm:$0xff]   ;;  %v8237_v12 = vld [vmem:[#allocation6 + $0x76c] ss:$16 sps:$4 sm:$0xff]  }
 0x3b7   :  { %v4003_v7 = vsel %vm3987_vm5, %v7771_v26, %v3995_v35  ;;  %v4005_v40 = vsel %vm3989_vm6, %v7773_v30, %v3997_v25  ;;  %v4267_v41 = vpack.c.bf16 %v4002_v36, %v4002_v36  ;;  %v8234_v26 = vld [vmem:[#allocation6 + $0x764] ss:$16 sps:$4 sm:$0xff]   ;;  %v8232_v27 = vld [vmem:[#allocation6 + $0x760] ss:$16 sps:$4 sm:$0xff]   ;;  %v8235_v28 = vld [vmem:[#allocation6 + $0x768] ss:$16 sps:$4 sm:$0xff]  }
 0x3b8   :  { %v4268_v9 = vpack.c.bf16 %v4003_v7, %v4003_v7  ;;  %v4270_v43 = vpack.c.bf16 %v4005_v40, %v4005_v40  ;;  %v8240_v30 = vld [vmem:[#allocation6 + $0x784] ss:$16 sps:$4 sm:$0xff]   ;;  %v8243_v32 = vld [vmem:[#allocation6 + $0x78c] ss:$16 sps:$4 sm:$0xff]   ;;  %v752_v33 = vsub.s32 6, %v8999_v59 }
 0x3b9   :  { %v8238_v35 = vld [vmem:[#allocation6 + $0x780] ss:$16 sps:$4 sm:$0xff]   ;;  %v8241_v36 = vld [vmem:[#allocation6 + $0x788] ss:$16 sps:$4 sm:$0xff]   ;;  %v8246_v25 = vld [vmem:[#allocation6 + $0x7a4] ss:$16 sps:$4 sm:$0xff]  }
 0x3ba   :  { %5686 = vmatprep.mubr.bf16.mxu0 %v4268_v9  ;;  %5850 = vmatprep.mubr.bf16.mxu1 %v4268_v9  ;;  %v8249_v23 = vld [vmem:[#allocation6 + $0x7ac] ss:$16 sps:$4 sm:$0xff]   ;;  %v8252_v40 = vld [vmem:[#allocation6 + $0x7c4] ss:$16 sps:$4 sm:$0xff]  }
 0x3bb   :  { %5687 = vmatmul.mubr.bf16.vlgmr.msra.gmra.mrb[8].mxu0 %v4267_v41  ;;  %5851 = vmatmul.mubr.bf16.vlgmr.msra.gmra.mrb[8].mxu1 %v4267_v41  ;;  %v8390_v7 = vld [vmem:[#allocation4] sm:$0xff] }
 0x3bc   :  { %5696 = vmatpush1.bf16.msra.mxu0 %v8166_v37  ;;  %5860 = vmatpush1.bf16.msra.mxu1 %v8169_v38  ;;  %v753_v9 = vrot.slane %v8390_v7, %v752_v33  ;;  %v8244_v37 = vld [vmem:[#allocation6 + $0x7a0] ss:$16 sps:$4 sm:$0xff]   ;;  %v8247_v38 = vld [vmem:[#allocation6 + $0x7a8] ss:$16 sps:$4 sm:$0xff]   ;;  %v8255_v41 = vld [vmem:[#allocation6 + $0x7cc] ss:$16 sps:$4 sm:$0xff]  }
 0x3bd   :  { %5727 = vmatprep.mubr.bf16.mxu0 %v4270_v43  ;;  %5891 = vmatprep.mubr.bf16.mxu1 %v4270_v43  ;;  %v8253_v43 = vld [vmem:[#allocation6 + $0x7c8] ss:$16 sps:$4 sm:$0xff]   ;;  %v8368_v7 = vld [vmem:[#allocation12 + $0x68] sm:$0xff]  }
 0x3be   :  { %5697 = vmatprep.subr.bf16.mxu0 %v8174_v39  ;;  %5861 = vmatprep.subr.bf16.mxu1 %v8177_v42  ;;  %v7772_v39 = vadd.f32 %v9033_v22, %v753_v9  ;;  %v8250_v42 = vld [vmem:[#allocation6 + $0x7c0] ss:$16 sps:$4 sm:$0xff]   ;;  %v8262_v22 = vld [vmem:[#allocation9] ss:$8 sps:$4 sm:$0xff]   ;;  %v8363_v33 = vld [vmem:[#allocation12 + $0x10] sm:$0xff]  }
 0x3bf   :  { %v8369_v9 = vld [vmem:[#allocation12 + $0x28] sm:$0xff]  }
 0x3c0   :  { %5698 = vmatpush1.bf16.msra.mxu0 %v8172_v44  ;;  %5862 = vmatpush1.bf16.msra.mxu1 %v8175_v34  ;;  %v8258_v44 = vld [vmem:[#allocation6 + $0x7e4] ss:$16 sps:$4 sm:$0xff]   ;;  %v8261_v34 = vld [vmem:[#allocation6 + $0x7ec] ss:$16 sps:$4 sm:$0xff]   ;;  %vm3988_vm7 = vcmp.gt.f32.partialorder %v7772_v39, 0.0 }
 0x3c1   :  { %5699 = vmatprep.subr.bf16.mxu0 %v8180_v46  ;;  %5863 = vmatprep.subr.bf16.mxu1 %v8183_v47  ;;  %v3996_v46 = vmul.f32 0.2, %v7772_v39  ;;  %v8256_v47 = vld [vmem:[#allocation6 + $0x7e0] ss:$16 sps:$4 sm:$0xff]  }
 0x3c4   :  { %5700 = vmatpush1.bf16.msra.mxu0 %v8178_v4  ;;  %5864 = vmatpush1.bf16.msra.mxu1 %v8181_v49  ;;  %v8259_v4 = vld [vmem:[#allocation6 + $0x7e8] ss:$16 sps:$4 sm:$0xff]  }
 0x3c5   :  { %5701 = vmatprep.subr.bf16.mxu0 %v8186_v56  ;;  %5865 = vmatprep.subr.bf16.mxu1 %v8189_v13  ;;  %v8264_v49 = vld [vmem:[#allocation9 + $0x4] ss:$8 sps:$4 sm:$0xff]   ;;  %v4004_v56 = vsel %vm3988_vm7, %v7772_v39, %v3996_v46 }
 0x3c6   :  { %v4269_v13 = vpack.c.bf16 %v4004_v56, %v4004_v56 }
 0x3c8   :  { %5702 = vmatpush1.bf16.msra.mxu0 %v8184_v50  ;;  %5866 = vmatpush1.bf16.msra.mxu1 %v8187_v48  ;;  %v8267_v50 = vld [vmem:[#allocation9 + $0x14] ss:$8 sps:$4 sm:$0xff]   ;;  %v8265_v48 = vld [vmem:[#allocation9 + $0x10] ss:$8 sps:$4 sm:$0xff]  }
 0x3c9   :  { %5703 = vmatprep.subr.bf16.mxu0 %v8192_v51  ;;  %5867 = vmatprep.subr.bf16.mxu1 %v8195_v52  ;;  %v8270_v51 = vld [vmem:[#allocation9 + $0x24] ss:$8 sps:$4 sm:$0xff]   ;;  %v8268_v52 = vld [vmem:[#allocation9 + $0x20] ss:$8 sps:$4 sm:$0xff]  }
 0x3cc   :  { %5704 = vmatpush1.bf16.msra.mxu0 %v8190_v53  ;;  %5868 = vmatpush1.bf16.msra.mxu1 %v8193_v54  ;;  %v8273_v53 = vld [vmem:[#allocation9 + $0x34] ss:$8 sps:$4 sm:$0xff]   ;;  %v8271_v54 = vld [vmem:[#allocation9 + $0x30] ss:$8 sps:$4 sm:$0xff]  }
 0x3cd   :  { %5705 = vmatprep.subr.bf16.mxu0 %v8198_v55  ;;  %5869 = vmatprep.subr.bf16.mxu1 %v8201_v58  ;;  %v8276_v55 = vld [vmem:[#allocation9 + $0x44] ss:$8 sps:$4 sm:$0xff]   ;;  %v8274_v58 = vld [vmem:[#allocation9 + $0x40] ss:$8 sps:$4 sm:$0xff]  }
 0x3d0   :  { %5706 = vmatpush1.bf16.msra.mxu0 %v8196_v60  ;;  %5870 = vmatpush1.bf16.msra.mxu1 %v8199_v61  ;;  %v8279_v60 = vld [vmem:[#allocation9 + $0x54] ss:$8 sps:$4 sm:$0xff]   ;;  %v8277_v61 = vld [vmem:[#allocation9 + $0x50] ss:$8 sps:$4 sm:$0xff]  }
 0x3d1   :  { %5707 = vmatprep.subr.bf16.mxu0 %v8204_v62  ;;  %5871 = vmatprep.subr.bf16.mxu1 %v8207_v63  ;;  %v8282_v62 = vld [vmem:[#allocation9 + $0x64] ss:$8 sps:$4 sm:$0xff]   ;;  %v8280_v63 = vld [vmem:[#allocation9 + $0x60] ss:$8 sps:$4 sm:$0xff]  }
 0x3d4   :  { %5708 = vmatpush1.bf16.msra.mxu0 %v8202_v0  ;;  %5872 = vmatpush1.bf16.msra.mxu1 %v8205_v8  ;;  %v8285_v0 = vld [vmem:[#allocation9 + $0x74] ss:$8 sps:$4 sm:$0xff]   ;;  %v8283_v8 = vld [vmem:[#allocation9 + $0x70] ss:$8 sps:$4 sm:$0xff]  }
 0x3d5   :  { %5709 = vmatprep.subr.bf16.mxu0 %v8210_v1  ;;  %5873 = vmatprep.subr.bf16.mxu1 %v8213_v2  ;;  %v8288_v1 = vld [vmem:[#allocation9 + $0x84] ss:$8 sps:$4 sm:$0xff]   ;;  %v8286_v2 = vld [vmem:[#allocation9 + $0x80] ss:$8 sps:$4 sm:$0xff]  }
 0x3d8   :  { %5710 = vmatpush1.bf16.msra.mxu0 %v8208_v3  ;;  %5874 = vmatpush1.bf16.msra.mxu1 %v8211_v6  ;;  %v8291_v3 = vld [vmem:[#allocation9 + $0x94] ss:$8 sps:$4 sm:$0xff]   ;;  %v8289_v6 = vld [vmem:[#allocation9 + $0x90] ss:$8 sps:$4 sm:$0xff]  }
 0x3d9   :  { %5711 = vmatprep.subr.bf16.mxu0 %v8216_v10  ;;  %5875 = vmatprep.subr.bf16.mxu1 %v8219_v11  ;;  %v8294_v10 = vld [vmem:[#allocation9 + $0xa4] ss:$8 sps:$4 sm:$0xff]   ;;  %v8292_v11 = vld [vmem:[#allocation9 + $0xa0] ss:$8 sps:$4 sm:$0xff]  }
 0x3dc   :  { %5712 = vmatpush1.bf16.msra.mxu0 %v8214_v14  ;;  %5876 = vmatpush1.bf16.msra.mxu1 %v8217_v15  ;;  %v8297_v14 = vld [vmem:[#allocation9 + $0xb4] ss:$8 sps:$4 sm:$0xff]   ;;  %v8295_v15 = vld [vmem:[#allocation9 + $0xb0] ss:$8 sps:$4 sm:$0xff]  }
 0x3dd   :  { %5713 = vmatprep.subr.bf16.mxu0 %v8222_v16  ;;  %5877 = vmatprep.subr.bf16.mxu1 %v8225_v17  ;;  %v8300_v16 = vld [vmem:[#allocation9 + $0xc4] ss:$8 sps:$4 sm:$0xff]   ;;  %v8298_v17 = vld [vmem:[#allocation9 + $0xc0] ss:$8 sps:$4 sm:$0xff]  }
 0x3e0   :  { %5714 = vmatpush1.bf16.msra.mxu0 %v8220_v18  ;;  %5878 = vmatpush1.bf16.msra.mxu1 %v8223_v19  ;;  %v8303_v18 = vld [vmem:[#allocation9 + $0xd4] ss:$8 sps:$4 sm:$0xff]   ;;  %v8301_v19 = vld [vmem:[#allocation9 + $0xd0] ss:$8 sps:$4 sm:$0xff]  }
 0x3e1   :  { %5715 = vmatprep.subr.bf16.mxu0 %v8228_v20  ;;  %5879 = vmatprep.subr.bf16.mxu1 %v8231_v21  ;;  %v8306_v20 = vld [vmem:[#allocation9 + $0xe4] ss:$8 sps:$4 sm:$0xff]   ;;  %v8304_v21 = vld [vmem:[#allocation9 + $0xe0] ss:$8 sps:$4 sm:$0xff]  }
 0x3e4   :  { %5716 = vmatpush1.bf16.msra.mxu0 %v8226_v57  ;;  %5880 = vmatpush1.bf16.msra.mxu1 %v8229_v24  ;;  %v8309_v57 = vld [vmem:[#allocation9 + $0xf4] ss:$8 sps:$4 sm:$0xff]   ;;  %v8307_v24 = vld [vmem:[#allocation9 + $0xf0] ss:$8 sps:$4 sm:$0xff]  }
 0x3e5   :  { %5717 = vmatprep.subr.bf16.mxu0 %v8234_v26  ;;  %5881 = vmatprep.subr.bf16.mxu1 %v8237_v12  ;;  %v8312_v26 = vld [vmem:[#allocation9 + $0x104] ss:$8 sps:$4 sm:$0xff]  }
 0x3e6   :  { %v8358_v12 = vld [vmem:[#allocation12 + $0x40] sm:$0xff]  }
 0x3e8   :  { %5718 = vmatpush1.bf16.msra.mxu0 %v8232_v27  ;;  %5882 = vmatpush1.bf16.msra.mxu1 %v8235_v28  ;;  %v8359_v27 = vld [vmem:[#allocation12] sm:$0xff]   ;;  %v8360_v28 = vld [vmem:[#allocation12 + $0x48] sm:$0xff]  }
 0x3e9   :  { %5719 = vmatprep.subr.bf16.mxu0 %v8240_v30  ;;  %5883 = vmatprep.subr.bf16.mxu1 %v8243_v32  ;;  %v8361_v30 = vld [vmem:[#allocation12 + $0x8] sm:$0xff]   ;;  %v8362_v32 = vld [vmem:[#allocation12 + $0x50] sm:$0xff]  }
 0x3ec   :  { %5720 = vmatpush1.bf16.msra.mxu0 %v8238_v35  ;;  %5884 = vmatpush1.bf16.msra.mxu1 %v8241_v36  ;;  %v8364_v35 = vld [vmem:[#allocation12 + $0x58] sm:$0xff]  }
 0x3ed   :  { %5721 = vmatprep.subr.bf16.mxu0 %v8246_v25  ;;  %5885 = vmatprep.subr.bf16.mxu1 %v8249_v23  ;;  %v8365_v36 = vld [vmem:[#allocation12 + $0x18] sm:$0xff]   ;;  %v8366_v25 = vld [vmem:[#allocation12 + $0x60] sm:$0xff]  }
 0x3ee   :  { %v8367_v23 = vld [vmem:[#allocation12 + $0x20] sm:$0xff]  }
 0x3f0   :  { %5722 = vmatpush1.bf16.msra.mxu0 %v8244_v37  ;;  %5886 = vmatpush1.bf16.msra.mxu1 %v8247_v38  ;;  %v9037_v37 = vld [vmem:[#allocation7] sm:$0xf] }
 0x3f1   :  { %5723 = vmatprep.subr.bf16.mxu0 %v8252_v40  ;;  %5887 = vmatprep.subr.bf16.mxu1 %v8255_v41  ;;  %v4275_v38 = vrot.slane %v9037_v37, %v9012_v29  ;;  %v4279_v40 = vrot.slane %v9037_v37, %v9002_v5  ;;  %v4287_v41 = vrot.slane %v9037_v37, %v740_v31 }
 0x3f4   :  { %5724 = vmatpush1.bf16.msra.mxu0 %v8250_v42  ;;  %5888 = vmatpush1.bf16.msra.mxu1 %v8253_v43 }
 0x3f5   :  { %5725 = vmatprep.subr.bf16.mxu0 %v8258_v44  ;;  %5889 = vmatprep.subr.bf16.mxu1 %v8261_v34 }
 0x3f8   :  { %5726 = vmatpush1.bf16.msra.mxu0 %v8256_v47  ;;  %5890 = vmatpush1.bf16.msra.mxu1 %v8259_v4 }
 0x3f9   :  { %6312 = vmatprep.subr.bf16.mxu0 %v8264_v49  ;;  %7686 = vmatprep.subr.bf16.mxu1 %v8358_v12  ;;  %v8346_v12 = vld [vmem:[#allocation9 + $0x1c0] ss:$8 sps:$4 sm:$0xff]  }
 0x3fb   :  { %5728 = vmatmul.mubr.bf16.vlgmr.msra.gmra.mrb[8].mxu0 %v4269_v13  ;;  %5892 = vmatmul.mubr.bf16.vlgmr.msra.gmra.mrb[8].mxu1 %v4269_v13 }
 0x3fc   :  { %6313 = vmatpush1.bf16.msra.mxu0 %v8262_v22  ;;  %7687 = vmatpush3.bf16.msra.mxu1 %v8359_v27  ;;  %v8351_v27 = vld [vmem:[#allocation9 + $0x1d4] ss:$8 sps:$4 sm:$0xff]  }
 0x3fd   :  { %6314 = vmatprep.subr.bf16.mxu0 %v8267_v50  ;;  %7688 = vmatprep.subr.bf16.mxu1 %v8360_v28  ;;  %v4283_v28 = vrot.slane %v9037_v37, %v736_v45  ;;  %v8370_v45 = vld [vmem:[#allocation12 + $0x70] sm:$0xff]   ;;  %v8372_v37 = vld [vmem:[#allocation12 + $0x78] sm:$0xff]  }
 0x400   :  { %6315 = vmatpush1.bf16.msra.mxu0 %v8265_v48  ;;  %7689 = vmatpush3.bf16.msra.mxu1 %v8361_v30  ;;  %v8349_v30 = vld [vmem:[#allocation9 + $0x1d0] ss:$8 sps:$4 sm:$0xff]  }
 0x401   :  { %6316 = vmatprep.subr.bf16.mxu0 %v8270_v51  ;;  %7690 = vmatprep.subr.bf16.mxu1 %v8362_v32  ;;  %v8354_v32 = vld [vmem:[#allocation9 + $0x1e4] ss:$8 sps:$4 sm:$0xff]  }
 0x404   :  { %6317 = vmatpush1.bf16.msra.mxu0 %v8268_v52  ;;  %7691 = vmatpush3.bf16.msra.mxu1 %v8363_v33 }
 0x405   :  { %6318 = vmatprep.subr.bf16.mxu0 %v8273_v53  ;;  %7692 = vmatprep.subr.bf16.mxu1 %v8364_v35  ;;  %v8352_v35 = vld [vmem:[#allocation9 + $0x1e0] ss:$8 sps:$4 sm:$0xff]  }
 0x408   :  { %6319 = vmatpush1.bf16.msra.mxu0 %v8271_v54  ;;  %7693 = vmatpush3.bf16.msra.mxu1 %v8365_v36  ;;  %v8310_v54 = vld [vmem:[#allocation9 + $0x100] ss:$8 sps:$4 sm:$0xff]   ;;  %v8357_v36 = vld [vmem:[#allocation9 + $0x1f4] ss:$8 sps:$4 sm:$0xff]  }
 0x409   :  { %6320 = vmatprep.subr.bf16.mxu0 %v8276_v55  ;;  %7694 = vmatprep.subr.bf16.mxu1 %v8366_v25 }
 0x40c   :  { %6321 = vmatpush1.bf16.msra.mxu0 %v8274_v58  ;;  %7695 = vmatpush3.bf16.msra.mxu1 %v8367_v23  ;;  %v8315_v58 = vld [vmem:[#allocation9 + $0x114] ss:$8 sps:$4 sm:$0xff]   ;;  %v8355_v23 = vld [vmem:[#allocation9 + $0x1f0] ss:$8 sps:$4 sm:$0xff]  }
 0x40d   :  { %6322 = vmatprep.subr.bf16.mxu0 %v8279_v60  ;;  %7696 = vmatprep.subr.bf16.mxu1 %v8368_v7 }
 0x410   :  { %6323 = vmatpush1.bf16.msra.mxu0 %v8277_v61  ;;  %7697 = vmatpush3.bf16.msra.mxu1 %v8369_v9  ;;  %v8313_v61 = vld [vmem:[#allocation9 + $0x110] ss:$8 sps:$4 sm:$0xff]  }
 0x411   :  { %6324 = vmatprep.subr.bf16.mxu0 %v8282_v62  ;;  %v8318_v62 = vld [vmem:[#allocation9 + $0x124] ss:$8 sps:$4 sm:$0xff]   ;;  %v8371_v9 = vld [vmem:[#allocation12 + $0x30] sm:$0xff]   ;;  %7698 = vmatprep.subr.bf16.mxu1 %v8370_v45 }
 0x414   :  { %6325 = vmatpush1.bf16.msra.mxu0 %v8280_v63  ;;  %v8316_v63 = vld [vmem:[#allocation9 + $0x120] ss:$8 sps:$4 sm:$0xff]   ;;  %7699 = vmatpush3.bf16.msra.mxu1 %v8371_v9 }
 0x415   :  { %6326 = vmatprep.subr.bf16.mxu0 %v8285_v0  ;;  %v8321_v0 = vld [vmem:[#allocation9 + $0x134] ss:$8 sps:$4 sm:$0xff]   ;;  %7700 = vmatprep.subr.bf16.mxu1 %v8372_v37 }
 0x418   :  { %6327 = vmatpush1.bf16.msra.mxu0 %v8283_v8  ;;  %v8319_v8 = vld [vmem:[#allocation9 + $0x130] ss:$8 sps:$4 sm:$0xff]  }
 0x419   :  { %6328 = vmatprep.subr.bf16.mxu0 %v8288_v1  ;;  %v8324_v1 = vld [vmem:[#allocation9 + $0x144] ss:$8 sps:$4 sm:$0xff]  }
 0x41c   :  { %6329 = vmatpush1.bf16.msra.mxu0 %v8286_v2  ;;  %v8322_v2 = vld [vmem:[#allocation9 + $0x140] ss:$8 sps:$4 sm:$0xff]  }
 0x41d   :  { %6330 = vmatprep.subr.bf16.mxu0 %v8291_v3  ;;  %v8327_v3 = vld [vmem:[#allocation9 + $0x154] ss:$8 sps:$4 sm:$0xff]  }
 0x420   :  { %6331 = vmatpush1.bf16.msra.mxu0 %v8289_v6  ;;  %v8325_v6 = vld [vmem:[#allocation9 + $0x150] ss:$8 sps:$4 sm:$0xff]  }
 0x421   :  { %6332 = vmatprep.subr.bf16.mxu0 %v8294_v10  ;;  %v8330_v10 = vld [vmem:[#allocation9 + $0x164] ss:$8 sps:$4 sm:$0xff]  }
 0x424   :  { %6333 = vmatpush1.bf16.msra.mxu0 %v8292_v11  ;;  %v8328_v11 = vld [vmem:[#allocation9 + $0x160] ss:$8 sps:$4 sm:$0xff]  }
 0x425   :  { %6334 = vmatprep.subr.bf16.mxu0 %v8297_v14  ;;  %v8333_v14 = vld [vmem:[#allocation9 + $0x174] ss:$8 sps:$4 sm:$0xff]  }
 0x428   :  { %6335 = vmatpush1.bf16.msra.mxu0 %v8295_v15  ;;  %v8331_v15 = vld [vmem:[#allocation9 + $0x170] ss:$8 sps:$4 sm:$0xff]  }
 0x429   :  { %6336 = vmatprep.subr.bf16.mxu0 %v8300_v16  ;;  %v8336_v16 = vld [vmem:[#allocation9 + $0x184] ss:$8 sps:$4 sm:$0xff]  }
 0x42c   :  { %6337 = vmatpush1.bf16.msra.mxu0 %v8298_v17  ;;  %v8334_v17 = vld [vmem:[#allocation9 + $0x180] ss:$8 sps:$4 sm:$0xff]  }
 0x42d   :  { %6338 = vmatprep.subr.bf16.mxu0 %v8303_v18  ;;  %v8339_v18 = vld [vmem:[#allocation9 + $0x194] ss:$8 sps:$4 sm:$0xff]  }
 0x430   :  { %6339 = vmatpush1.bf16.msra.mxu0 %v8301_v19  ;;  %v8337_v19 = vld [vmem:[#allocation9 + $0x190] ss:$8 sps:$4 sm:$0xff]  }
 0x431   :  { %6340 = vmatprep.subr.bf16.mxu0 %v8306_v20  ;;  %v8342_v20 = vld [vmem:[#allocation9 + $0x1a4] ss:$8 sps:$4 sm:$0xff]  }
 0x434   :  { %6341 = vmatpush1.bf16.msra.mxu0 %v8304_v21  ;;  %v8340_v21 = vld [vmem:[#allocation9 + $0x1a0] ss:$8 sps:$4 sm:$0xff]  }
 0x435   :  { %6342 = vmatprep.subr.bf16.mxu0 %v8309_v57  ;;  %v8345_v57 = vld [vmem:[#allocation9 + $0x1b4] ss:$8 sps:$4 sm:$0xff]  }
 0x438   :  { %6343 = vmatpush1.bf16.msra.mxu0 %v8307_v24  ;;  %v8343_v24 = vld [vmem:[#allocation9 + $0x1b0] ss:$8 sps:$4 sm:$0xff]  }
 0x439   :  { %6353 = vmatprep.subr.bf16.mxu0 %v8312_v26  ;;  %v8348_v26 = vld [vmem:[#allocation9 + $0x1c4] ss:$8 sps:$4 sm:$0xff]  }
 0x4ce   :  { %v5729_v39 = vpop.f32.mrb[8].mxu0  ;;  %v9046_v42 = vpop.f32.mrb[8].mxu1 }
 0x4cf   :  { %v7774_v43 = vadd.f32 %v5729_v39, %v4275_v38  ;;  %v5731_v44 = vpop.f32.mrb[9].mxu0  ;;  %v5895_v34 = vpop.f32.mrb[9].mxu1  ;;  %v7776_v33 = vadd.f32 %v9046_v42, %v4283_v28  ;;  %v8373_v38 = vld [vmem:[#allocation12 + $0x38] sm:$0xff]  }
 0x4d0   :  { %v7775_v46 = vadd.f32 %v5731_v44, %v4279_v40  ;;  %v7777_v47 = vadd.f32 %v5895_v34, %v4287_v41  ;;  %v5733_v4 = vpop.f32.mrb[10].mxu0  ;;  %v5897_v49 = vpop.f32.mrb[10].mxu1  ;;  %7701 = vmatpush3.bf16.msra.mxu1 %v8373_v38  ;;  %v8689_v40 = vmov 0.0   ;;  %v5976_v41 = vld [vmem:[#allocation10] sm:$0x3] }
 0x4d1   :  { %vm5900_vm8 = vcmp.gt.f32.partialorder %v7774_v43, 0.0  ;;  %v5904_v56 = vmul.f32 0.2, %v7774_v43  ;;  %v5734_v48 = vpop.f32.mrb[11].mxu0  ;;  %v5898_v51 = vpop.f32.mrb[11].mxu1  ;;  %vm5902_vm11 = vcmp.gt.f32.partialorder %v7776_v33, 0.0  ;;  %7726 = vmatprep.subr.bf16.mxu1 %v8689_v40  ;;  %v5985_v39 = vrot.slane %v5976_v41, %v9012_v29 }
 0x4d2   :  { %vm5901_vm9 = vcmp.gt.f32.partialorder %v7775_v46, 0.0  ;;  %v5905_v22 = vmul.f32 0.2, %v7775_v46  ;;  %vm5903_vm10 = vcmp.gt.f32.partialorder %v7777_v47, 0.0  ;;  %v5907_v13 = vmul.f32 0.2, %v7777_v47 }
 0x4d3   :  { %v5908_v50 = vsel %vm5900_vm8, %v7774_v43, %v5904_v56  ;;  %v5906_v25 = vmul.f32 0.2, %v7776_v33  ;;  %v5989_v42 = vrot.slane %v5976_v41, %v9002_v5  ;;  %v8374_v48 = vld [vmem:[#allocation15] sm:$0xff]   ;;  %v8375_v29 = vld [vmem:[#allocation15 + $0x8] sm:$0xff]   ;;  %v8376_v5 = vld [vmem:[#allocation15 + $0x10] sm:$0xff]  }
 0x4d4   :  { %v5909_v31 = vsel %vm5901_vm9, %v7775_v46, %v5905_v22  ;;  %v5911_v52 = vsel %vm5903_vm10, %v7777_v47, %v5907_v13  ;;  %v5977_v55 = vpack.c.bf16 %v5908_v50, %v5908_v50 }
 0x4d5   :  { %v5978_v53 = vpack.c.bf16 %v5909_v31, %v5909_v31  ;;  %v5980_v60 = vpack.c.bf16 %v5911_v52, %v5911_v52  ;;  %v5910_v7 = vsel %vm5902_vm11, %v7776_v33, %v5906_v25  ;;  %v8377_v31 = vld [vmem:[#allocation15 + $0x18] sm:$0xff]   ;;  %v8378_v52 = vld [vmem:[#allocation15 + $0x20] sm:$0xff]  }
 0x4d6   :  { %v5979_v59 = vpack.c.bf16 %v5910_v7, %v5910_v7 }
 0x4d7   :  { %6344 = vmatprep.mubr.bf16.mxu0 %v5978_v53  ;;  %v8379_v53 = vld [vmem:[#allocation15 + $0x28] sm:$0xff]  }
 0x4d8   :  { %6345 = vmatmul.mubr.bf16.vlgmr.msra.gmra.mrb[12].mxu0 %v5977_v55  ;;  %v8381_v55 = vld [vmem:[#allocation15 + $0x38] sm:$0xff]  }
 0x4d9   :  { %6354 = vmatpush1.bf16.msra.mxu0 %v8310_v54  ;;  %6385 = vmatprep.mubr.bf16.mxu0 %v5980_v60  ;;  %v8380_v54 = vld [vmem:[#allocation15 + $0x30] sm:$0xff]   ;;  %v7651_v60 = vld [vmem:[#allocation13] ss:$0 sm:$0xff] }
 0x4da   :  { %6355 = vmatprep.subr.bf16.mxu0 %v8315_v58 }
 0x4dd   :  { %6356 = vmatpush1.bf16.msra.mxu0 %v8313_v61 }
 0x4de   :  { %6357 = vmatprep.subr.bf16.mxu0 %v8318_v62 }
 0x4e1   :  { %6358 = vmatpush1.bf16.msra.mxu0 %v8316_v63 }
 0x4e2   :  { %6359 = vmatprep.subr.bf16.mxu0 %v8321_v0 }
 0x4e5   :  { %6360 = vmatpush1.bf16.msra.mxu0 %v8319_v8 }
 0x4e6   :  { %6361 = vmatprep.subr.bf16.mxu0 %v8324_v1 }
 0x4e9   :  { %6362 = vmatpush1.bf16.msra.mxu0 %v8322_v2 }
 0x4ea   :  { %6363 = vmatprep.subr.bf16.mxu0 %v8327_v3  ;;  %v8382_v3 = vld [vmem:[#allocation18] sm:$0xff]  }
 0x4ed   :  { %6364 = vmatpush1.bf16.msra.mxu0 %v8325_v6 }
 0x4ee   :  { %6365 = vmatprep.subr.bf16.mxu0 %v8330_v10  ;;  %v8383_v10 = vld [vmem:[#allocation18 + $0x8] sm:$0xff]  }
 0x4f1   :  { %6366 = vmatpush1.bf16.msra.mxu0 %v8328_v11  ;;  %v8384_v11 = vld [vmem:[#allocation18 + $0x10] sm:$0xff]  }
 0x4f2   :  { %6367 = vmatprep.subr.bf16.mxu0 %v8333_v14  ;;  %v8385_v14 = vld [vmem:[#allocation18 + $0x18] sm:$0xff]  }
 0x4f5   :  { %6368 = vmatpush1.bf16.msra.mxu0 %v8331_v15  ;;  %v8386_v15 = vld [vmem:[#allocation18 + $0x20] sm:$0xff]  }
 0x4f6   :  { %6369 = vmatprep.subr.bf16.mxu0 %v8336_v16  ;;  %v8387_v16 = vld [vmem:[#allocation18 + $0x28] sm:$0xff]  }
 0x4f9   :  { %6370 = vmatpush1.bf16.msra.mxu0 %v8334_v17  ;;  %v8388_v17 = vld [vmem:[#allocation18 + $0x30] sm:$0xff]  }
 0x4fa   :  { %6371 = vmatprep.subr.bf16.mxu0 %v8339_v18  ;;  %v8389_v18 = vld [vmem:[#allocation18 + $0x38] sm:$0xff]  }
 0x4fd   :  { %6372 = vmatpush1.bf16.msra.mxu0 %v8337_v19  ;;  %v7668_v19 = vld [vmem:[#allocation16] ss:$0 sm:$0xff] }
 0x4fe   :  { %6373 = vmatprep.subr.bf16.mxu0 %v8342_v20 }
 0x501   :  { %6374 = vmatpush1.bf16.msra.mxu0 %v8340_v21 }
 0x502   :  { %6375 = vmatprep.subr.bf16.mxu0 %v8345_v57 }
 0x505   :  { %6376 = vmatpush1.bf16.msra.mxu0 %v8343_v24 }
 0x506   :  { %6377 = vmatprep.subr.bf16.mxu0 %v8348_v26 }
 0x509   :  { %6378 = vmatpush1.bf16.msra.mxu0 %v8346_v12 }
 0x50a   :  { %6379 = vmatprep.subr.bf16.mxu0 %v8351_v27 }
 0x50d   :  { %6380 = vmatpush1.bf16.msra.mxu0 %v8349_v30  ;;  %v7677_v30 = vld [vmem:[#allocation19] ss:$0 sm:$0xff] }
 0x50e   :  { %6381 = vmatprep.subr.bf16.mxu0 %v8354_v32 }
 0x511   :  { %6382 = vmatpush1.bf16.msra.mxu0 %v8352_v35 }
 0x512   :  { %6383 = vmatprep.subr.bf16.mxu0 %v8357_v36 }
 0x515   :  { %6384 = vmatpush1.bf16.msra.mxu0 %v8355_v23 }
 0x518   :  { %6386 = vmatmul.mubr.bf16.vlgmr.msra.gmra.mrb[12].mxu0 %v5979_v59 }
 0x5eb   :  { %v6387_v43 = vpop.f32.mrb[12].mxu0 }
 0x5ec   :  { %v7778_v44 = vadd.f32 %v6387_v43, %v5985_v39  ;;  %v6389_v34 = vpop.f32.mrb[13].mxu0 }
 0x5ed   :  { %v7779_v46 = vadd.f32 %v6389_v34, %v5989_v42  ;;  %v6391_v47 = vpop.f32.mrb[14].mxu0 }
 0x5ee   :  { %vm6394_vm12 = vcmp.gt.f32.partialorder %v7778_v44, 0.0  ;;  %v6396_v4 = vmul.f32 0.2, %v7778_v44  ;;  %v6392_v49 = vpop.f32.mrb[15].mxu0 }
 0x5ef   :  { %vm6395_vm13 = vcmp.gt.f32.partialorder %v7779_v46, 0.0  ;;  %v6397_v56 = vmul.f32 0.2, %v7779_v46 }
 0x5f0   :  { %v6398_v22 = vsel %vm6394_vm12, %v7778_v44, %v6396_v4 }
 0x5f1   :  { %v6399_v13 = vsel %vm6395_vm13, %v7779_v46, %v6397_v56  ;;  %v6433_v51 = vpack.c.bf16 %v6398_v22, %v6398_v22 }
 0x5f2   :  { %v6434_v50 = vpack.c.bf16 %v6399_v13, %v6399_v13 }
 0x5f4   :  { %6569 = vmatprep.mubr.bf16.mxu1 %v6434_v50 }
 0x5f5   :  { %6570 = vmatmul.mubr.bf16.vlgmr.msra.gmra.mrb[12].mxu1 %v6433_v51 }
 0x5f6   :  { %7727 = vmatpush3.bf16.msra.mxu1 %v8374_v48  ;;  %7742 = vmatprep.mubr.msk.bf16.mxu1 %vm8690_vm14, %v8689_v40 }
 0x5f7   :  { %7728 = vmatprep.subr.bf16.mxu1 %v8689_v40 }
 0x5fa   :  { %7729 = vmatpush3.bf16.msra.mxu1 %v8375_v29 }
 0x5fb   :  { %7730 = vmatprep.subr.bf16.mxu1 %v8689_v40 }
 0x5fe   :  { %7731 = vmatpush3.bf16.msra.mxu1 %v8376_v5 }
 0x5ff   :  { %7732 = vmatprep.subr.bf16.mxu1 %v8689_v40 }
 0x602   :  { %7733 = vmatpush3.bf16.msra.mxu1 %v8377_v31 }
 0x603   :  { %7734 = vmatprep.subr.bf16.mxu1 %v8689_v40 }
 0x606   :  { %7735 = vmatpush3.bf16.msra.mxu1 %v8378_v52 }
 0x607   :  { %7736 = vmatprep.subr.bf16.mxu1 %v8689_v40 }
 0x60a   :  { %7737 = vmatpush3.bf16.msra.mxu1 %v8379_v53 }
 0x60b   :  { %7738 = vmatprep.subr.bf16.mxu1 %v8689_v40 }
 0x60e   :  { %7739 = vmatpush3.bf16.msra.mxu1 %v8380_v54 }
 0x60f   :  { %7740 = vmatprep.subr.bf16.mxu1 %v8689_v40 }
 0x612   :  { %7741 = vmatpush3.bf16.msra.mxu1 %v8381_v55 }
 0x613   :  { %7746 = vmatprep.subr.bf16.mxu1 %v8689_v40 }
 0x6c8   :  { %v7702_v58 = vpop.f32.mrb[12].mxu1 }
 0x6c9   :  { %v7703_v61 = vpop.f32.mrb[13].mxu1 }
 0x6ca   :  { %v7704_v62 = vadd.f32 %v7703_v61, %v7702_v58  ;;  %v7705_v63 = vpop.f32.mrb[14].mxu1 }
 0x6cb   :  { %v7706_v0 = vpop.f32.mrb[15].mxu1 }
 0x6cc   :  { %v6572_v8 = vadd.f32 %v7704_v62, %v7651_v60 }
 0x6ce   :  { %vm6577_vm15 = vcmp.gt.f32.partialorder %v6572_v8, 0.0  ;;  %v6578_v1 = vmul.f32 0.2, %v6572_v8 }
 0x6d0   :  { %v6579_v2 = vsel %vm6577_vm15, %v6572_v8, %v6578_v1 }
 0x6d1   :  { %v6597_v6 = vpack.c.bf16 %v6579_v2, %v6579_v2 }
 0x6d3   :  { %7743 = vmatmul.mubr.bf16.vlgmr.msra.gmra.mrb[16].mxu1 %v6597_v6 }
 0x6d4   :  { %7747 = vmatpush3.bf16.msra.mxu1 %v8382_v3  ;;  %7762 = vmatprep.mubr.msk.bf16.mxu1 %vm8690_vm14, %v8689_v40 }
 0x6d5   :  { %7748 = vmatprep.subr.bf16.mxu1 %v8689_v40 }
 0x6d8   :  { %7749 = vmatpush3.bf16.msra.mxu1 %v8383_v10 }
 0x6d9   :  { %7750 = vmatprep.subr.bf16.mxu1 %v8689_v40 }
 0x6dc   :  { %7751 = vmatpush3.bf16.msra.mxu1 %v8384_v11 }
 0x6dd   :  { %7752 = vmatprep.subr.bf16.mxu1 %v8689_v40 }
 0x6e0   :  { %7753 = vmatpush3.bf16.msra.mxu1 %v8385_v14 }
 0x6e1   :  { %7754 = vmatprep.subr.bf16.mxu1 %v8689_v40 }
 0x6e4   :  { %7755 = vmatpush3.bf16.msra.mxu1 %v8386_v15 }
 0x6e5   :  { %7756 = vmatprep.subr.bf16.mxu1 %v8689_v40 }
 0x6e8   :  { %7757 = vmatpush3.bf16.msra.mxu1 %v8387_v16 }
 0x6e9   :  { %7758 = vmatprep.subr.bf16.mxu1 %v8689_v40 }
 0x6ec   :  { %7759 = vmatpush3.bf16.msra.mxu1 %v8388_v17 }
 0x6ed   :  { %7760 = vmatprep.subr.bf16.mxu1 %v8689_v40 }
 0x6f0   :  { %7761 = vmatpush3.bf16.msra.mxu1 %v8389_v18 }
 0x7a6   :  { %v6686_v20 = vpop.f32.mrb[16].mxu1 }
 0x7a7   :  { %v6687_v21 = vadd.f32 %v7668_v19, %v6686_v20  ;;  %v7744_v57 = vpop.f32.mrb[17].mxu1 }
 0x7a8   :  { %v6689_v24 = vpop.f32.mrb[18].mxu1 }
 0x7a9   :  { %vm6692_vm0 = vcmp.gt.f32.partialorder %v6687_v21, 0.0  ;;  %v6693_v26 = vmul.f32 0.2, %v6687_v21  ;;  %v7745_v12 = vpop.f32.mrb[19].mxu1 }
 0x7ab   :  { %v6694_v27 = vsel %vm6692_vm0, %v6687_v21, %v6693_v26 }
 0x7ac   :  { %v6712_v28 = vpack.c.bf16 %v6694_v27, %v6694_v27 }
 0x7ae   :  { %7763 = vmatmul.mubr.bf16.vlgmr.msra.gmra.mrb[20].mxu1 %v6712_v28 }
 0x881   :  { %v6801_v32 = vpop.f32.mrb[20].mxu1 }
 0x882   :  { %v6802_v33 = vadd.f32 %v7677_v30, %v6801_v32  ;;  %v7764_v35 = vpop.f32.mrb[21].mxu1 }
 0x883   :  { %v6804_v36 = vpop.f32.mrb[22].mxu1 }
 0x884   :  { %6807 = vst [vmem:[%s9090_s13] sm:$0xff] %v6802_v33  ;;  %v7765_v25 = vpop.f32.mrb[23].mxu1 }
 0x885   :  { %6812 = vsyncpa [#allocation3], 1 }
 0x886   :  { %6813 = vsyncpa [#allocation5], 1 }
 0x887   :  { %6814 = vsyncpa [#allocation8], 1 }
 0x888   :  { %6815 = vsyncpa [#allocation11], 1 }
 0x889   :  { %6816 = vsyncpa [#allocation14], 1 }
 0x88a   :  { %6817 = vsyncpa [#allocation17], 1 }
 0x88b   :  { %6818 = vsyncpa [#allocation20], 1 }

</bundles_post_ra>
